<compile_context>
chip_gen: v5e
topology: v5e:2x2
jax: 0.10.0
libtpu: 0.0.40
codegen_flags: <defaults>
</compile_context>

<pallas_src>
import functools

import numpy as np
import jax
import jax.numpy as jnp
from jax.experimental import pallas as pl
from jax.experimental.pallas import tpu as pltpu


# ----------------------------------------------------------------------------
# Kernel 1: batched session fusion (CNNFusing.get_final_s_GCE_GNN x2 + coo gate)
#   grid = (B_pad // TB,)  — TB padded sessions per program, fully parallel.
#   Also fuses the Embedding2Score `scale * normalize(final_s)` step.
# ----------------------------------------------------------------------------
def fusion_kernel(intra_ref, inter_ref, lens_ref, pos_tab_ref, len_tab_ref,
                  wcat_ref, small_ref, out_f32_ref, out_bf16_ref, *, scale):
    TB, L, H = intra_ref.shape
    Lp1 = pos_tab_ref.shape[0]
    TBL = TB * L

    intra3 = intra_ref[...]                       # (TB, L, H)
    inter3 = inter_ref[...]                       # (TB, L, H)
    lens_i = lens_ref[...]                        # (TB, 1) int32
    lens_f = lens_i.astype(jnp.float32)
    inv_len = 1.0 / jnp.maximum(lens_f, 1.0)      # guard empty (padded) sessions

    pos_tab = pos_tab_ref[...]                    # (L+1, H)
    len_tab = len_tab_ref[...]                    # (L+1, H)

    # concatenated (H,H) weights: [wph, wpp, w1, w2, wca, wcb]
    wph = wcat_ref[0:H, :]
    wpp = wcat_ref[H:2 * H, :]
    w1 = wcat_ref[2 * H:3 * H, :]
    w2 = wcat_ref[3 * H:4 * H, :]
    wca = wcat_ref[4 * H:5 * H, :]
    wcb = wcat_ref[5 * H:6 * H, :]

    # concatenated row params: [bp, b1, b2, bc, qw_row, qb*ones]
    small = small_ref[...]                        # (6, H)
    bp, b1, b2, bc = small[0:1], small[1:2], small[2:3], small[3:4]
    qw_row = small[4:5]                           # (1, H)
    qb = small[5:6, 0:1]                          # (1, 1)

    def mm(a, b):
        return jnp.dot(a, b, preferred_element_type=jnp.float32)

    # ---- in-kernel masks + reversed-position / length one-hots (no HBM gathers) ----
    lens3 = lens_i[:, None, :]                                            # (TB,1,1)
    pos_l = jax.lax.broadcasted_iota(jnp.int32, (TB, L, 1), 1)
    valid = (pos_l < lens3).astype(jnp.float32)                           # (TB,L,1)
    lastm = (pos_l == lens3 - 1).astype(jnp.float32)                      # (TB,L,1)

    iota_l = jax.lax.broadcasted_iota(jnp.int32, (TB, L, Lp1), 1)
    iota_j = jax.lax.broadcasted_iota(jnp.int32, (TB, L, Lp1), 2)
    onehot_pos = ((lens3 - 1 - iota_l) == iota_j).astype(jnp.float32)     # (TB,L,L+1)
    pos2 = mm(onehot_pos.reshape(TBL, Lp1), pos_tab)                      # (TBL,H)

    iota_len = jax.lax.broadcasted_iota(jnp.int32, (TB, Lp1), 1)
    onehot_len = (iota_len == lens_i).astype(jnp.float32)                 # (TB,L+1)
    len_emb = mm(onehot_len, len_tab)                                     # (TB,H)

    # shared position projection (hoisted: identical for intra and inter branches)
    pos_proj = mm(pos2, wpp) + bp                                         # (TBL,H)

    intra2 = intra3.reshape(TBL, H)
    inter2 = inter3.reshape(TBL, H)

    def session_attn(h3, h2):
        # nodes.mean(dim=0) per session
        mean = jnp.sum(h3 * valid, axis=1) * inv_len                      # (TB,H)
        # pos_hidden = tanh(W_pos_inter(cat([hidden, pos_emb], -1)))
        ph = jnp.tanh(mm(h2, wph) + pos_proj)                             # (TBL,H)
        t1 = mm(mean, w1) + b1                                            # (TB,H)
        t2 = mm(ph, w2) + b2                                              # (TBL,H)
        g = jax.nn.sigmoid(t1[:, None, :] + t2.reshape(TB, L, H))         # (TB,L,H)
        # alpha = q_inter(.) as a lane reduction instead of an N=1 MXU matmul
        alpha = jnp.sum(g * qw_row, axis=-1, keepdims=True) + qb          # (TB,L,1)
        hs = jnp.sum(alpha * h3 * valid, axis=1)                          # (TB,H)
        return hs, mean

    hs_intra, v_mean = session_attn(intra3, intra2)
    hs_inter, _ = session_attn(inter3, inter2)

    # use_alternative_coo == 15
    v_last = jnp.sum(intra3 * lastm, axis=1)                              # (TB,H)
    coo = jax.nn.sigmoid(mm(v_mean - v_last, wca) + mm(len_emb, wcb) + bc)

    # use_alternative_final_s == 1
    final_s = coo * hs_inter + (1.0 - coo) * hs_intra                     # (TB,H)

    # fused Embedding2Score left side: scale * final_s / max(||final_s||, 1e-12)
    inv_norm = jax.lax.rsqrt(jnp.maximum(
        jnp.sum(final_s * final_s, axis=-1, keepdims=True), 1e-24))
    fs_n = (scale * inv_norm) * final_s
    out_f32_ref[...] = fs_n
    out_bf16_ref[...] = fs_n.astype(jnp.bfloat16)


def fused_final_s(params, intra, inter, lens_i32, scale, tb=16):
    B_pad, L, H = intra.shape
    assert B_pad % tb == 0
    Lp1 = params["pos_emb"].shape[0]

    wcat = jnp.concatenate([params["wp"][:H], params["wp"][H:],
                            params["w1"], params["w2"],
                            params["wcoo"][:H], params["wcoo"][H:]], axis=0)      # (6H,H)
    small = jnp.concatenate([params["bp"], params["b1"], params["b2"], params["bc"],
                             params["qw"].T,
                             jnp.broadcast_to(params["qb"], (1, H))], axis=0)     # (6,H)

    sess = lambda shape: pl.BlockSpec(shape, lambda s, _s=len(shape): (s,) + (0,) * (_s - 1))
    full = lambda shape: pl.BlockSpec(shape, lambda s, _s=len(shape): (0,) * _s)

    out_f32, out_bf16 = pl.pallas_call(
        functools.partial(fusion_kernel, scale=scale),
        out_shape=(jax.ShapeDtypeStruct((B_pad, H), jnp.float32),
                   jax.ShapeDtypeStruct((B_pad, H), jnp.bfloat16)),
        grid=(B_pad // tb,),
        in_specs=[sess((tb, L, H)), sess((tb, L, H)), sess((tb, 1)),
                  full((Lp1, H)), full((Lp1, H)),
                  full((6 * H, H)), full((6, H))],
        out_specs=(pl.BlockSpec((tb, H), lambda s: (s, 0)),
                   pl.BlockSpec((tb, H), lambda s: (s, 0))),
        compiler_params=pltpu.CompilerParams(dimension_semantics=("parallel",)),
    )(intra, inter, lens_i32, params["pos_emb"], params["len_emb"], wcat, small)
    return out_f32, out_bf16


# ----------------------------------------------------------------------------
# Kernel 2: Embedding2Score (item_fusing=True)
#   scores = fs_norm_bf16 @ item_norm_bf16.T    (f32 accumulation)
#   final_s is already normalized+scaled by kernel 1; item table is normalized
#   once per forward (batch-independent) and streamed in bf16.
# ----------------------------------------------------------------------------
def score_kernel(fs_ref, item_ref, out_ref):
    out_ref[...] = jax.lax.dot_general(
        fs_ref[...], item_ref[...], (((1,), (1,)), ((), ())),
        preferred_element_type=jnp.float32)                   # (B_pad, TN)


def embedding2score(fs_bf16, item_norm_bf16, tn):
    B_pad, H = fs_bf16.shape
    N = item_norm_bf16.shape[0]
    assert N % tn == 0   # TODO(synk): if the real vocab is padded to a tn multiple, mask padded rows
    return pl.pallas_call(
        score_kernel,
        out_shape=jax.ShapeDtypeStruct((B_pad, N), jnp.float32),
        grid=(N // tn,),
        in_specs=[pl.BlockSpec((B_pad, H), lambda j: (0, 0)),
                  pl.BlockSpec((tn, H), lambda j: (j, 0))],
        out_specs=pl.BlockSpec((B_pad, tn), lambda j: (0, j)),
        compiler_params=pltpu.CompilerParams(dimension_semantics=("parallel",)),
    )(fs_bf16, item_norm_bf16)


# ----------------------------------------------------------------------------
# Plain-JAX glue (parameter setup, batch padding, one-time item-table prep)
# ----------------------------------------------------------------------------
def init_params(key, hidden, n_node, max_len):
    H = hidden
    stdv = 1.0 / np.sqrt(H)   # matches GraphModel.reset_parameters
    names_shapes = [
        ("item_emb", (n_node, H)),          # self.embedding
        ("pos_emb", (max_len + 1, H)),      # CNNFusing.position_emb
        ("len_emb", (max_len + 1, H)),      # self.length_emb
        ("wp", (2 * H, H)), ("bp", (1, H)),     # W_pos_inter (stored (in, out))
        ("w1", (H, H)), ("b1", (1, H)),         # W_1_inter
        ("w2", (H, H)), ("b2", (1, H)),         # W_2_inter
        ("qw", (H, 1)), ("qb", (1, 1)),         # q_inter
        ("wcoo", (2 * H, H)), ("bc", (1, H)),   # W_coo_15
    ]
    params = {}
    for k, (name, shape) in zip(jax.random.split(key, len(names_shapes)), names_shapes):
        params[name] = jax.random.uniform(k, shape, jnp.float32, -stdv, stdv)
    return params


def graph_model_forward(params, intra_item_emb, inter_item_emb, seq_lens, scale,
                        tb=16, tn=None):
    B, L, H = intra_item_emb.shape
    N = params["item_emb"].shape[0]

    # pad batch to a multiple of TB (padded sessions have length 0; guarded in-kernel)
    B_pad = ((B + tb - 1) // tb) * tb
    pad = B_pad - B
    intra_p = jnp.pad(intra_item_emb, ((0, pad), (0, 0), (0, 0)))
    inter_p = jnp.pad(inter_item_emb, ((0, pad), (0, 0), (0, 0)))
    lens_p = jnp.pad(seq_lens, (0, pad)).astype(jnp.int32)[:, None]       # (B_pad, 1)

    fs_f32, fs_bf16 = fused_final_s(params, intra_p, inter_p, lens_p, scale, tb=tb)

    # one-time, batch-independent: L2-normalize item table and cast to bf16
    it = params["item_emb"]
    it_n = (it * jax.lax.rsqrt(jnp.maximum(
        jnp.sum(it * it, axis=-1, keepdims=True), 1e-24))).astype(jnp.bfloat16)

    if tn is None:
        tn = 512 if N % 512 == 0 else (256 if N % 256 == 0 else 128)
    scores = embedding2score(fs_bf16, it_n, tn)[:B]

    l0_penalty = jnp.float32(0.0)   # TODO(synk): GroupGraph L0 penalty (module not provided)
    return scores, fs_f32[:B], l0_penalty


# ----------------------------------------------------------------------------
# Pure-JAX f32 reference (same padded semantics as the ragged PyTorch code)
# ----------------------------------------------------------------------------
def reference_forward(params, intra, inter, seq_lens, scale):
    B, L, H = intra.shape
    pos_ids = jnp.arange(L)[None, :]
    mask = (pos_ids < seq_lens[:, None]).astype(jnp.float32)[..., None]
    last = (pos_ids == seq_lens[:, None] - 1).astype(jnp.float32)[..., None]
    reverse_pos = jnp.maximum(seq_lens[:, None] - 1 - pos_ids, 0)
    pos_emb = params["pos_emb"][reverse_pos]
    len_emb = params["len_emb"][seq_lens]
    wp_h, wp_p = params["wp"][:H], params["wp"][H:]
    wc_a, wc_b = params["wcoo"][:H], params["wcoo"][H:]
    lens_f = jnp.maximum(seq_lens.astype(jnp.float32), 1.0)[:, None]

    def h_s(hidden):
        mean = jnp.sum(hidden * mask, axis=1) / lens_f
        ph = jnp.tanh(hidden @ wp_h + pos_emb @ wp_p + params["bp"])
        g = jax.nn.sigmoid((mean @ params["w1"] + params["b1"])[:, None, :]
                           + ph @ params["w2"] + params["b2"])
        alpha = g @ params["qw"] + params["qb"]
        return jnp.sum(alpha * hidden * mask, axis=1), mean

    hs_a, v_mean = h_s(intra)
    hs_b, _ = h_s(inter)
    v_last = jnp.sum(intra * last, axis=1)
    coo = jax.nn.sigmoid((v_mean - v_last) @ wc_a + len_emb @ wc_b + params["bc"])
    final_s = coo * hs_b + (1.0 - coo) * hs_a
    fs_n = scale * final_s / jnp.maximum(
        jnp.linalg.norm(final_s, axis=-1, keepdims=True), 1e-12)
    it_n = params["item_emb"] / jnp.maximum(
        jnp.linalg.norm(params["item_emb"], axis=-1, keepdims=True), 1e-12)
    return fs_n, fs_n @ it_n.T


if __name__ == "__main__":
    B, L, H, N = 2, 8, 32, 256      # sessions, max_len, hidden_size, n_node
    SCALE = 16.0                    # opt.scale

    key = jax.random.PRNGKey(0)
    k_par, k_intra, k_inter = jax.random.split(key, 3)
    params = init_params(k_par, H, N, L)

    seq_lens = jnp.array([8, 5], dtype=jnp.int32)
    valid = (jnp.arange(L)[None, :] < seq_lens[:, None]).astype(jnp.float32)[..., None]
    # TODO(synk): stand-ins for SRGNN / GroupGraph per-session outputs (modules not provided)
    intra = jax.random.normal(k_intra, (B, L, H), jnp.float32) * valid
    inter = jax.random.normal(k_inter, (B, L, H), jnp.float32) * valid

    scores, fs_n, l0 = graph_model_forward(params, intra, inter, seq_lens, SCALE)
    scores = jax.block_until_ready(scores)

    ref_fs, ref_scores = reference_forward(params, intra, inter, seq_lens, SCALE)
    # fusion kernel is all-f32: tight check
    if not np.allclose(np.asarray(fs_n), np.asarray(ref_fs), rtol=1e-3, atol=1e-3):
        raise AssertionError("fusion kernel final_s does not match pure-JAX reference")
    # score kernel uses bf16 operands (f32 accumulation): bf16-appropriate tolerance
    if not np.allclose(np.asarray(scores), np.asarray(ref_scores), rtol=2e-2, atol=1e-1):
        raise AssertionError("score kernel output exceeds bf16 tolerance vs f32 reference")

    print("KERNEL_OK")
</pallas_src>

<mosaic_0001>
module attributes {stable_mosaic.version = 11 : i64} {
  func.func @fusion_kernel(%arg0: i32, %arg1: memref<16x8x32xf32, #tpu.memory_space<vmem>>, %arg2: memref<16x8x32xf32, #tpu.memory_space<vmem>>, %arg3: memref<16x1xi32, #tpu.memory_space<vmem>>, %arg4: memref<9x32xf32, #tpu.memory_space<vmem>>, %arg5: memref<9x32xf32, #tpu.memory_space<vmem>>, %arg6: memref<192x32xf32, #tpu.memory_space<vmem>>, %arg7: memref<6x32xf32, #tpu.memory_space<vmem>>, %arg8: memref<16x32xf32, #tpu.memory_space<vmem>>, %arg9: memref<16x32xbf16, #tpu.memory_space<vmem>>) attributes {dimension_semantics = [#tpu.dimension_semantics<parallel>], iteration_bounds = array<i64: 1>, scalar_prefetch = 0 : i64, scratch_operands = 0 : i64, tpu.core_type = #tpu.core_type<tc>, window_params = [{transform_indices = @transform_0, window_bounds = array<i64: 16, 8, 32>}, {transform_indices = @transform_1, window_bounds = array<i64: 16, 8, 32>}, {transform_indices = @transform_2, window_bounds = array<i64: 16, 1>}, {pipeline_mode = #tpu.pipeline_mode<synchronous>, transform_indices = @transform_3, window_bounds = array<i64: 9, 32>}, {pipeline_mode = #tpu.pipeline_mode<synchronous>, transform_indices = @transform_4, window_bounds = array<i64: 9, 32>}, {pipeline_mode = #tpu.pipeline_mode<synchronous>, transform_indices = @transform_5, window_bounds = array<i64: 192, 32>}, {pipeline_mode = #tpu.pipeline_mode<synchronous>, transform_indices = @transform_6, window_bounds = array<i64: 6, 32>}, {transform_indices = @transform_7, window_bounds = array<i64: 16, 32>}, {transform_indices = @transform_8, window_bounds = array<i64: 16, 32>}]} {
    %c0 = arith.constant 0 : index
    %c0_0 = arith.constant 0 : index
    %c0_1 = arith.constant 0 : index
    %0 = vector.load %arg1[%c0, %c0_0, %c0_1] : memref<16x8x32xf32, #tpu.memory_space<vmem>>, vector<16x8x32xf32>
    %c0_2 = arith.constant 0 : index
    %c0_3 = arith.constant 0 : index
    %c0_4 = arith.constant 0 : index
    %1 = vector.load %arg2[%c0_2, %c0_3, %c0_4] : memref<16x8x32xf32, #tpu.memory_space<vmem>>, vector<16x8x32xf32>
    %c0_5 = arith.constant 0 : index
    %c0_6 = arith.constant 0 : index
    %2 = vector.load %arg3[%c0_5, %c0_6] : memref<16x1xi32, #tpu.memory_space<vmem>>, vector<16x1xi32>
    %3 = arith.sitofp %2 : vector<16x1xi32> to vector<16x1xf32>
    %cst = arith.constant 1.000000e+00 : f32
    %4 = vector.broadcast %cst : f32 to vector<16x1xf32>
    %5 = arith.maximumf %3, %4 : vector<16x1xf32>
    %cst_7 = arith.constant 1.000000e+00 : f32
    %6 = vector.broadcast %cst_7 : f32 to vector<16x1xf32>
    %7 = arith.divf %6, %5 : vector<16x1xf32>
    %c0_8 = arith.constant 0 : index
    %c0_9 = arith.constant 0 : index
    %8 = vector.load %arg4[%c0_8, %c0_9] : memref<9x32xf32, #tpu.memory_space<vmem>>, vector<9x32xf32>
    %c0_10 = arith.constant 0 : index
    %c0_11 = arith.constant 0 : index
    %9 = vector.load %arg5[%c0_10, %c0_11] : memref<9x32xf32, #tpu.memory_space<vmem>>, vector<9x32xf32>
    %c0_12 = arith.constant 0 : index
    %c0_13 = arith.constant 0 : index
    %10 = vector.load %arg6[%c0_12, %c0_13] : memref<192x32xf32, #tpu.memory_space<vmem>>, vector<32x32xf32>
    %c32 = arith.constant 32 : index
    %c0_14 = arith.constant 0 : index
    %11 = vector.load %arg6[%c32, %c0_14] : memref<192x32xf32, #tpu.memory_space<vmem>>, vector<32x32xf32>
    %c64 = arith.constant 64 : index
    %c0_15 = arith.constant 0 : index
    %12 = vector.load %arg6[%c64, %c0_15] : memref<192x32xf32, #tpu.memory_space<vmem>>, vector<32x32xf32>
    %c96 = arith.constant 96 : index
    %c0_16 = arith.constant 0 : index
    %13 = vector.load %arg6[%c96, %c0_16] : memref<192x32xf32, #tpu.memory_space<vmem>>, vector<32x32xf32>
    %c128 = arith.constant 128 : index
    %c0_17 = arith.constant 0 : index
    %14 = vector.load %arg6[%c128, %c0_17] : memref<192x32xf32, #tpu.memory_space<vmem>>, vector<32x32xf32>
    %c160 = arith.constant 160 : index
    %c0_18 = arith.constant 0 : index
    %15 = vector.load %arg6[%c160, %c0_18] : memref<192x32xf32, #tpu.memory_space<vmem>>, vector<32x32xf32>
    %c0_19 = arith.constant 0 : index
    %c0_20 = arith.constant 0 : index
    %16 = vector.load %arg7[%c0_19, %c0_20] : memref<6x32xf32, #tpu.memory_space<vmem>>, vector<6x32xf32>
    %17 = vector.extract_strided_slice %16 {offsets = [0, 0], sizes = [1, 32], strides = [1, 1]} : vector<6x32xf32> to vector<1x32xf32>
    %18 = vector.extract_strided_slice %16 {offsets = [1, 0], sizes = [1, 32], strides = [1, 1]} : vector<6x32xf32> to vector<1x32xf32>
    %19 = vector.extract_strided_slice %16 {offsets = [2, 0], sizes = [1, 32], strides = [1, 1]} : vector<6x32xf32> to vector<1x32xf32>
    %20 = vector.extract_strided_slice %16 {offsets = [3, 0], sizes = [1, 32], strides = [1, 1]} : vector<6x32xf32> to vector<1x32xf32>
    %21 = vector.extract_strided_slice %16 {offsets = [4, 0], sizes = [1, 32], strides = [1, 1]} : vector<6x32xf32> to vector<1x32xf32>
    %22 = vector.extract_strided_slice %16 {offsets = [5, 0], sizes = [1, 1], strides = [1, 1]} : vector<6x32xf32> to vector<1x1xf32>
    %23 = vector.shape_cast %2 : vector<16x1xi32> to vector<16x1x1xi32>
    %24 = tpu.iota {dimensions = array<i32: 1>} : vector<16x8x1xi32>
    %25 = vector.broadcast %23 : vector<16x1x1xi32> to vector<16x8x1xi32>
    %26 = arith.cmpi slt, %24, %25 : vector<16x8x1xi32>
    %27 = arith.extui %26 : vector<16x8x1xi1> to vector<16x8x1xi32>
    %28 = arith.sitofp %27 : vector<16x8x1xi32> to vector<16x8x1xf32>
    %c1_i32 = arith.constant 1 : i32
    %29 = vector.broadcast %c1_i32 : i32 to vector<16x1x1xi32>
    %30 = arith.subi %23, %29 : vector<16x1x1xi32>
    %31 = vector.broadcast %30 : vector<16x1x1xi32> to vector<16x8x1xi32>
    %32 = arith.cmpi eq, %24, %31 : vector<16x8x1xi32>
    %33 = arith.extui %32 : vector<16x8x1xi1> to vector<16x8x1xi32>
    %34 = arith.sitofp %33 : vector<16x8x1xi32> to vector<16x8x1xf32>
    %35 = tpu.iota {dimensions = array<i32: 1>} : vector<16x8x9xi32>
    %36 = tpu.iota {dimensions = array<i32: 2>} : vector<16x8x9xi32>
    %c1_i32_21 = arith.constant 1 : i32
    %37 = vector.broadcast %c1_i32_21 : i32 to vector<16x1x1xi32>
    %38 = arith.subi %23, %37 : vector<16x1x1xi32>
    %39 = vector.broadcast %38 : vector<16x1x1xi32> to vector<16x8x9xi32>
    %40 = arith.subi %39, %35 : vector<16x8x9xi32>
    %41 = arith.cmpi eq, %40, %36 : vector<16x8x9xi32>
    %42 = arith.extui %41 : vector<16x8x9xi1> to vector<16x8x9xi32>
    %43 = arith.sitofp %42 : vector<16x8x9xi32> to vector<16x8x9xf32>
    %44 = vector.shape_cast %43 : vector<16x8x9xf32> to vector<128x9xf32>
    %cst_22 = arith.constant dense<0.000000e+00> : vector<128x32xf32>
    %45 = tpu.matmul %44, %8, %cst_22 {dimension_numbers = #tpu.dot_dimension_numbers<[1], [0], [0], [1], [0, 0, 1, 1], [], []>} : vector<128x9xf32>, vector<9x32xf32>, vector<128x32xf32> -> vector<128x32xf32>
    %46 = tpu.iota {dimensions = array<i32: 1>} : vector<16x9xi32>
    %47 = vector.broadcast %2 : vector<16x1xi32> to vector<16x9xi32>
    %48 = arith.cmpi eq, %46, %47 : vector<16x9xi32>
    %49 = arith.extui %48 : vector<16x9xi1> to vector<16x9xi32>
    %50 = arith.sitofp %49 : vector<16x9xi32> to vector<16x9xf32>
    %cst_23 = arith.constant dense<0.000000e+00> : vector<16x32xf32>
    %51 = tpu.matmul %50, %9, %cst_23 {dimension_numbers = #tpu.dot_dimension_numbers<[1], [0], [0], [1], [0, 0, 1, 1], [], []>} : vector<16x9xf32>, vector<9x32xf32>, vector<16x32xf32> -> vector<16x32xf32>
    %cst_24 = arith.constant dense<0.000000e+00> : vector<128x32xf32>
    %52 = tpu.matmul %45, %11, %cst_24 {dimension_numbers = #tpu.dot_dimension_numbers<[1], [0], [0], [1], [0, 0, 1, 1], [], []>} : vector<128x32xf32>, vector<32x32xf32>, vector<128x32xf32> -> vector<128x32xf32>
    %53 = vector.broadcast %17 : vector<1x32xf32> to vector<128x32xf32>
    %54 = arith.addf %52, %53 : vector<128x32xf32>
    %55 = vector.shape_cast %0 : vector<16x8x32xf32> to vector<128x32xf32>
    %56 = vector.shape_cast %1 : vector<16x8x32xf32> to vector<128x32xf32>
    %57 = vector.broadcast %28 : vector<16x8x1xf32> to vector<16x8x32xf32>
    %58 = arith.mulf %0, %57 : vector<16x8x32xf32>
    %cst_25 = arith.constant dense<0.000000e+00> : vector<16x32xf32>
    %59 = vector.multi_reduction <add>, %58, %cst_25 [1] : vector<16x8x32xf32> to vector<16x32xf32>
    %60 = vector.broadcast %7 : vector<16x1xf32> to vector<16x32xf32>
    %61 = arith.mulf %59, %60 : vector<16x32xf32>
    %cst_26 = arith.constant dense<0.000000e+00> : vector<128x32xf32>
    %62 = tpu.matmul %55, %10, %cst_26 {dimension_numbers = #tpu.dot_dimension_numbers<[1], [0], [0], [1], [0, 0, 1, 1], [], []>} : vector<128x32xf32>, vector<32x32xf32>, vector<128x32xf32> -> vector<128x32xf32>
    %63 = arith.addf %62, %54 : vector<128x32xf32>
    %64 = math.tanh %63 : vector<128x32xf32>
    %cst_27 = arith.constant dense<0.000000e+00> : vector<16x32xf32>
    %65 = tpu.matmul %61, %12, %cst_27 {dimension_numbers = #tpu.dot_dimension_numbers<[1], [0], [0], [1], [0, 0, 1, 1], [], []>} : vector<16x32xf32>, vector<32x32xf32>, vector<16x32xf32> -> vector<16x32xf32>
    %66 = vector.broadcast %18 : vector<1x32xf32> to vector<16x32xf32>
    %67 = arith.addf %65, %66 : vector<16x32xf32>
    %cst_28 = arith.constant dense<0.000000e+00> : vector<128x32xf32>
    %68 = tpu.matmul %64, %13, %cst_28 {dimension_numbers = #tpu.dot_dimension_numbers<[1], [0], [0], [1], [0, 0, 1, 1], [], []>} : vector<128x32xf32>, vector<32x32xf32>, vector<128x32xf32> -> vector<128x32xf32>
    %69 = vector.broadcast %19 : vector<1x32xf32> to vector<128x32xf32>
    %70 = arith.addf %68, %69 : vector<128x32xf32>
    %71 = vector.shape_cast %67 : vector<16x32xf32> to vector<16x1x32xf32>
    %72 = vector.shape_cast %70 : vector<128x32xf32> to vector<16x8x32xf32>
    %73 = vector.broadcast %71 : vector<16x1x32xf32> to vector<16x8x32xf32>
    %74 = arith.addf %73, %72 : vector<16x8x32xf32>
    %75 = arith.negf %74 : vector<16x8x32xf32>
    %76 = math.exp %75 : vector<16x8x32xf32>
    %cst_29 = arith.constant 1.000000e+00 : f32
    %77 = vector.broadcast %cst_29 : f32 to vector<16x8x32xf32>
    %78 = arith.addf %77, %76 : vector<16x8x32xf32>
    %79 = arith.divf %77, %78 : vector<16x8x32xf32>
    %80 = vector.shape_cast %21 : vector<1x32xf32> to vector<1x1x32xf32>
    %81 = vector.broadcast %80 : vector<1x1x32xf32> to vector<16x8x32xf32>
    %82 = arith.mulf %79, %81 : vector<16x8x32xf32>
    %cst_30 = arith.constant dense<0.000000e+00> : vector<16x8xf32>
    %83 = vector.multi_reduction <add>, %82, %cst_30 [2] : vector<16x8x32xf32> to vector<16x8xf32>
    %84 = vector.shape_cast %83 : vector<16x8xf32> to vector<16x8x1xf32>
    %85 = vector.shape_cast %22 : vector<1x1xf32> to vector<1x1x1xf32>
    %86 = vector.broadcast %85 : vector<1x1x1xf32> to vector<16x8x1xf32>
    %87 = arith.addf %84, %86 : vector<16x8x1xf32>
    %88 = vector.broadcast %87 : vector<16x8x1xf32> to vector<16x8x32xf32>
    %89 = arith.mulf %88, %0 : vector<16x8x32xf32>
    %90 = vector.broadcast %28 : vector<16x8x1xf32> to vector<16x8x32xf32>
    %91 = arith.mulf %89, %90 : vector<16x8x32xf32>
    %cst_31 = arith.constant dense<0.000000e+00> : vector<16x32xf32>
    %92 = vector.multi_reduction <add>, %91, %cst_31 [1] : vector<16x8x32xf32> to vector<16x32xf32>
    %93 = vector.broadcast %28 : vector<16x8x1xf32> to vector<16x8x32xf32>
    %94 = arith.mulf %1, %93 : vector<16x8x32xf32>
    %cst_32 = arith.constant dense<0.000000e+00> : vector<16x32xf32>
    %95 = vector.multi_reduction <add>, %94, %cst_32 [1] : vector<16x8x32xf32> to vector<16x32xf32>
    %96 = vector.broadcast %7 : vector<16x1xf32> to vector<16x32xf32>
    %97 = arith.mulf %95, %96 : vector<16x32xf32>
    %cst_33 = arith.constant dense<0.000000e+00> : vector<128x32xf32>
    %98 = tpu.matmul %56, %10, %cst_33 {dimension_numbers = #tpu.dot_dimension_numbers<[1], [0], [0], [1], [0, 0, 1, 1], [], []>} : vector<128x32xf32>, vector<32x32xf32>, vector<128x32xf32> -> vector<128x32xf32>
    %99 = arith.addf %98, %54 : vector<128x32xf32>
    %100 = math.tanh %99 : vector<128x32xf32>
    %cst_34 = arith.constant dense<0.000000e+00> : vector<16x32xf32>
    %101 = tpu.matmul %97, %12, %cst_34 {dimension_numbers = #tpu.dot_dimension_numbers<[1], [0], [0], [1], [0, 0, 1, 1], [], []>} : vector<16x32xf32>, vector<32x32xf32>, vector<16x32xf32> -> vector<16x32xf32>
    %102 = vector.broadcast %18 : vector<1x32xf32> to vector<16x32xf32>
    %103 = arith.addf %101, %102 : vector<16x32xf32>
    %cst_35 = arith.constant dense<0.000000e+00> : vector<128x32xf32>
    %104 = tpu.matmul %100, %13, %cst_35 {dimension_numbers = #tpu.dot_dimension_numbers<[1], [0], [0], [1], [0, 0, 1, 1], [], []>} : vector<128x32xf32>, vector<32x32xf32>, vector<128x32xf32> -> vector<128x32xf32>
    %105 = vector.broadcast %19 : vector<1x32xf32> to vector<128x32xf32>
    %106 = arith.addf %104, %105 : vector<128x32xf32>
    %107 = vector.shape_cast %103 : vector<16x32xf32> to vector<16x1x32xf32>
    %108 = vector.shape_cast %106 : vector<128x32xf32> to vector<16x8x32xf32>
    %109 = vector.broadcast %107 : vector<16x1x32xf32> to vector<16x8x32xf32>
    %110 = arith.addf %109, %108 : vector<16x8x32xf32>
    %111 = arith.negf %110 : vector<16x8x32xf32>
    %112 = math.exp %111 : vector<16x8x32xf32>
    %cst_36 = arith.constant 1.000000e+00 : f32
    %113 = vector.broadcast %cst_36 : f32 to vector<16x8x32xf32>
    %114 = arith.addf %113, %112 : vector<16x8x32xf32>
    %115 = arith.divf %113, %114 : vector<16x8x32xf32>
    %116 = vector.shape_cast %21 : vector<1x32xf32> to vector<1x1x32xf32>
    %117 = vector.broadcast %116 : vector<1x1x32xf32> to vector<16x8x32xf32>
    %118 = arith.mulf %115, %117 : vector<16x8x32xf32>
    %cst_37 = arith.constant dense<0.000000e+00> : vector<16x8xf32>
    %119 = vector.multi_reduction <add>, %118, %cst_37 [2] : vector<16x8x32xf32> to vector<16x8xf32>
    %120 = vector.shape_cast %119 : vector<16x8xf32> to vector<16x8x1xf32>
    %121 = vector.shape_cast %22 : vector<1x1xf32> to vector<1x1x1xf32>
    %122 = vector.broadcast %121 : vector<1x1x1xf32> to vector<16x8x1xf32>
    %123 = arith.addf %120, %122 : vector<16x8x1xf32>
    %124 = vector.broadcast %123 : vector<16x8x1xf32> to vector<16x8x32xf32>
    %125 = arith.mulf %124, %1 : vector<16x8x32xf32>
    %126 = vector.broadcast %28 : vector<16x8x1xf32> to vector<16x8x32xf32>
    %127 = arith.mulf %125, %126 : vector<16x8x32xf32>
    %cst_38 = arith.constant dense<0.000000e+00> : vector<16x32xf32>
    %128 = vector.multi_reduction <add>, %127, %cst_38 [1] : vector<16x8x32xf32> to vector<16x32xf32>
    %129 = vector.broadcast %34 : vector<16x8x1xf32> to vector<16x8x32xf32>
    %130 = arith.mulf %0, %129 : vector<16x8x32xf32>
    %cst_39 = arith.constant dense<0.000000e+00> : vector<16x32xf32>
    %131 = vector.multi_reduction <add>, %130, %cst_39 [1] : vector<16x8x32xf32> to vector<16x32xf32>
    %132 = arith.subf %61, %131 : vector<16x32xf32>
    %cst_40 = arith.constant dense<0.000000e+00> : vector<16x32xf32>
    %133 = tpu.matmul %132, %14, %cst_40 {dimension_numbers = #tpu.dot_dimension_numbers<[1], [0], [0], [1], [0, 0, 1, 1], [], []>} : vector<16x32xf32>, vector<32x32xf32>, vector<16x32xf32> -> vector<16x32xf32>
    %cst_41 = arith.constant dense<0.000000e+00> : vector<16x32xf32>
    %134 = tpu.matmul %51, %15, %cst_41 {dimension_numbers = #tpu.dot_dimension_numbers<[1], [0], [0], [1], [0, 0, 1, 1], [], []>} : vector<16x32xf32>, vector<32x32xf32>, vector<16x32xf32> -> vector<16x32xf32>
    %135 = arith.addf %133, %134 : vector<16x32xf32>
    %136 = vector.broadcast %20 : vector<1x32xf32> to vector<16x32xf32>
    %137 = arith.addf %135, %136 : vector<16x32xf32>
    %138 = arith.negf %137 : vector<16x32xf32>
    %139 = math.exp %138 : vector<16x32xf32>
    %cst_42 = arith.constant 1.000000e+00 : f32
    %140 = vector.broadcast %cst_42 : f32 to vector<16x32xf32>
    %141 = arith.addf %140, %139 : vector<16x32xf32>
    %142 = arith.divf %140, %141 : vector<16x32xf32>
    %143 = arith.mulf %142, %128 : vector<16x32xf32>
    %cst_43 = arith.constant 1.000000e+00 : f32
    %144 = vector.broadcast %cst_43 : f32 to vector<16x32xf32>
    %145 = arith.subf %144, %142 : vector<16x32xf32>
    %146 = arith.mulf %145, %92 : vector<16x32xf32>
    %147 = arith.addf %143, %146 : vector<16x32xf32>
    %148 = arith.mulf %147, %147 : vector<16x32xf32>
    %cst_44 = arith.constant dense<0.000000e+00> : vector<16xf32>
    %149 = vector.multi_reduction <add>, %148, %cst_44 [1] : vector<16x32xf32> to vector<16xf32>
    %150 = vector.shape_cast %149 : vector<16xf32> to vector<16x1xf32>
    %cst_45 = arith.constant 1.000000e-24 : f32
    %151 = vector.broadcast %cst_45 : f32 to vector<16x1xf32>
    %152 = arith.maximumf %150, %151 : vector<16x1xf32>
    %153 = math.rsqrt %152 : vector<16x1xf32>
    %cst_46 = arith.constant 1.600000e+01 : f32
    %154 = vector.broadcast %cst_46 : f32 to vector<16x1xf32>
    %155 = arith.mulf %154, %153 : vector<16x1xf32>
    %156 = vector.broadcast %155 : vector<16x1xf32> to vector<16x32xf32>
    %157 = arith.mulf %156, %147 : vector<16x32xf32>
    %c0_47 = arith.constant 0 : index
    %c0_48 = arith.constant 0 : index
    %158 = vector.load %arg8[%c0_47, %c0_48] : memref<16x32xf32, #tpu.memory_space<vmem>>, vector<16x32xf32>
    tpu.vector_store %arg8[%c0_47, %c0_48], %157 {strides = array<i32>} : memref<16x32xf32, #tpu.memory_space<vmem>>, vector<16x32xf32>,
    %159 = arith.truncf %157 : vector<16x32xf32> to vector<16x32xbf16>
    %c0_49 = arith.constant 0 : index
    %c0_50 = arith.constant 0 : index
    %160 = vector.load %arg9[%c0_49, %c0_50] : memref<16x32xbf16, #tpu.memory_space<vmem>>, vector<16x32xbf16>
    tpu.vector_store %arg9[%c0_49, %c0_50], %159 {strides = array<i32>} : memref<16x32xbf16, #tpu.memory_space<vmem>>, vector<16x32xbf16>,
    return
  }
  func.func @transform_0(%arg0: i32) -> (i32, i32, i32) {
    %c0_i32 = arith.constant 0 : i32
    %c0_i32_0 = arith.constant 0 : i32
    %c0_i32_1 = arith.constant 0 : i32
    return %arg0, %c0_i32, %c0_i32_0 : i32, i32, i32
  }
  func.func @transform_1(%arg0: i32) -> (i32, i32, i32) {
    %c0_i32 = arith.constant 0 : i32
    %c0_i32_0 = arith.constant 0 : i32
    %c0_i32_1 = arith.constant 0 : i32
    return %arg0, %c0_i32, %c0_i32_0 : i32, i32, i32
  }
  func.func @transform_2(%arg0: i32) -> (i32, i32) {
    %c0_i32 = arith.constant 0 : i32
    %c0_i32_0 = arith.constant 0 : i32
    return %arg0, %c0_i32 : i32, i32
  }
  func.func @transform_3(%arg0: i32) -> (i32, i32) {
    %c0_i32 = arith.constant 0 : i32
    %c0_i32_0 = arith.constant 0 : i32
    %c0_i32_1 = arith.constant 0 : i32
    return %c0_i32, %c0_i32_0 : i32, i32
  }
  func.func @transform_4(%arg0: i32) -> (i32, i32) {
    %c0_i32 = arith.constant 0 : i32
    %c0_i32_0 = arith.constant 0 : i32
    %c0_i32_1 = arith.constant 0 : i32
    return %c0_i32, %c0_i32_0 : i32, i32
  }
  func.func @transform_5(%arg0: i32) -> (i32, i32) {
    %c0_i32 = arith.constant 0 : i32
    %c0_i32_0 = arith.constant 0 : i32
    %c0_i32_1 = arith.constant 0 : i32
    return %c0_i32, %c0_i32_0 : i32, i32
  }
  func.func @transform_6(%arg0: i32) -> (i32, i32) {
    %c0_i32 = arith.constant 0 : i32
    %c0_i32_0 = arith.constant 0 : i32
    %c0_i32_1 = arith.constant 0 : i32
    return %c0_i32, %c0_i32_0 : i32, i32
  }
  func.func @transform_7(%arg0: i32) -> (i32, i32) {
    %c0_i32 = arith.constant 0 : i32
    %c0_i32_0 = arith.constant 0 : i32
    return %arg0, %c0_i32 : i32, i32
  }
  func.func @transform_8(%arg0: i32) -> (i32, i32) {
    %c0_i32 = arith.constant 0 : i32
    %c0_i32_0 = arith.constant 0 : i32
    return %arg0, %c0_i32 : i32, i32
  }
}

</mosaic_0001>

<bundles_post_ra>
// kernel: tpu_custom_call.1
= control target key start
LH: loop header
LB: loop body
LE: loop exit
PB: predicated region body
PF: predicated region fallthrough
CT: control target
= control target key end

     0   :  { %14 = vsyncpa [#allocation3], 0  ;;  %s6594_s0 = inlined_call_operand.vmem [shape: f32[16,8,32], index: 0, kind: input, shape index: {}]   ;;  %s6595_s1 = inlined_call_operand.vmem [shape: f32[16,8,32], index: 1, kind: input, shape index: {}]   ;;  %s6596_s2 = inlined_call_operand.vmem [shape: s32[16,1], index: 2, kind: input, shape index: {}]   ;;  %s6597_s3 = inlined_call_operand.vmem [shape: f32[9,32], index: 3, kind: input, shape index: {}]   ;;  %s6598_s4 = inlined_call_operand.hbm [shape: f32[9,32], index: 4, kind: input, shape index: {}]   ;;  %s6599_s5 = inlined_call_operand.vmem [shape: f32[192,32], index: 5, kind: input, shape index: {}]   ;;  %s6600_s6 = inlined_call_operand.hbm [shape: f32[6,32], index: 6, kind: input, shape index: {}]   ;;  %s6601_s7 = inlined_call_operand.hbm [shape: f32[16,32], index: 7, kind: output, shape index: {0}]   ;;  %s6602_s8 = inlined_call_operand.hbm [shape: bf16[16,32], index: 8, kind: output, shape index: {1}]  }
   0x1   :  { %15 = vsyncpa [#allocation6], 0 }
   0x2   :  { %16 = vsyncpa [#allocation4], 0 }
   0x3   :  { %17 = vsyncpa [#allocation9], 0  ;;  %s30_s29 = sshll.u32 %s6598_s4, 4  ;;  %s4270_s30 = smov [#allocation2]   ;;  %s31_s29 = int_to_ptr.hbm [resolvable:$true] %s30_s29 }
   0x4   :  { %s32_s9 = sshll.u32 %s4270_s30, 4  ;;  %s46_s12 = sshll.u32 %s6600_s6, 4  ;;  %s33_s9 = int_to_ptr.vmem [resolvable:$true] %s32_s9  ;;  %s47_s12 = int_to_ptr.hbm [resolvable:$true] %s46_s12 }
   0x5   :  { %s4271_s13 = smov 128   ;;  %s4272_s14 = smov 8  }
   0x6   :  { %38 = dma.hbm_to_vmem [thread:$0]  %s31_s29, 256, %s33_s9, [#allocation3], %s4271_s13, %s4271_s13, %s4272_s14  }
   0x7   :  { %s4273_s15 = smov [#allocation5]  }
   0x8   :  { %s48_s16 = sshll.u32 %s4273_s15, 4  ;;  %s49_s16 = int_to_ptr.vmem [resolvable:$true] %s48_s16 }
   0x9   :  { %51 = dma.hbm_to_vmem [thread:$0]  %s47_s12, 128, %s49_s16, [#allocation6]  }
   0xa   :  { %4262 = dma.done.wait [#allocation3], 256  }
   0xb   :  { %4263 = vsyncadd [#allocation3], 4294967040 }
   0xc   :  { %4264 = dma.done.wait [#allocation6], 128  }
   0xd   :  { %4265 = vsyncadd [#allocation6], 4294967168  ;;  %v4274_v0 = vmov 0   ;;  %v4337_v1 = vld [vmem:[%s6596_s2] sm:$0xff]  ;;  %v4382_v21 = vld [vmem:[%s6596_s2 + $0x8] sm:$0xff]  ;;  %v171_v41 = vlaneseq  ;;  %v4275_v60 = vmov 0.0  }
   0xe   :  { %3835 = vset.pattern.permute.xlu0 %v4274_v0  ;;  %3837 = vset.pattern.permute.xlu2 %v4274_v0  ;;  %v4340_v2 = vadd.s32 4294967295, %v4337_v1  ;;  %v160_v3 = vrot.slane %v4337_v1, 4  ;;  %v158_v4 = vrot.slane %v4337_v1, 2  ;;  %v157_v5 = vrot.slane %v4337_v1, 1  ;;  %s3579_s18 = sshll.u32 %s6601_s7, 4  ;;  %s4277_s2 = smov [#allocation8]   ;;  %s3580_s18 = int_to_ptr.hbm [resolvable:$true] %s3579_s18 }
   0xf   :  { %3836 = vset.pattern.permute.xlu1 %v4274_v0  ;;  %v161_v6 = vrot.slane %v4337_v1, 5  ;;  %v159_v10 = vrot.slane %v4337_v1, 3  ;;  %v162_v17 = vrot.slane %v4337_v1, 6  ;;  %v163_v20 = vrot.slane %v4337_v1, 7  ;;  %s3590_s19 = sshll.u32 %s4277_s2, 4  ;;  %s4278_s7 = smov 64   ;;  %s3591_s19 = int_to_ptr.vmem [resolvable:$true] %s3590_s19 }
  0x10   :  { %v253_v7 = vperm.slane %v4340_v2, 0  ;;  %v4349_v8 = vadd.s32 4294967295, %v160_v3  ;;  %v4353_v9 = vadd.s32 4294967295, %v158_v4  ;;  %v4360_v13 = vadd.s32 4294967295, %v157_v5  ;;  %s4279_s22 = smov 4  }
  0x11   :  { %v4368_v14 = vadd.s32 4294967295, %v161_v6  ;;  %v4372_v15 = vadd.s32 4294967295, %v159_v10  ;;  %v4388_v22 = vadd.s32 4294967295, %v162_v17  ;;  %v4395_v23 = vadd.s32 4294967295, %v4382_v21 }
  0x12   :  { %320 = vperm.xlu0 %3835, %v253_v7   ;;  %v257_v11 = vperm.slane %v4349_v8, 0  ;;  %v255_v12 = vperm.slane %v4353_v9, 0  ;;  %v254_v16 = vperm.slane %v4360_v13, 0  ;;  %v4399_v24 = vadd.s32 4294967295, %v163_v20 }
  0x13   :  { %v258_v18 = vperm.slane %v4368_v14, 0  ;;  %v256_v19 = vperm.slane %v4372_v15, 0  ;;  %v259_v25 = vperm.slane %v4388_v22, 0  ;;  %v164_v26 = vrot.slane %v4382_v21, 1 }
  0x14   :  { %332 = vperm.xlu2 %3837, %v257_v11   ;;  %326 = vperm.xlu1 %3836, %v255_v12   ;;  %v261_v27 = vperm.slane %v4395_v23, 0  ;;  %v260_v28 = vperm.slane %v4399_v24, 0  ;;  %v166_v29 = vrot.slane %v4382_v21, 3  ;;  %v165_v30 = vrot.slane %v4382_v21, 2 }
  0x15   :  { %v4411_v31 = vadd.s32 4294967295, %v164_v26  ;;  %v167_v35 = vrot.slane %v4382_v21, 4  ;;  %v169_v38 = vrot.slane %v4382_v21, 6  ;;  %v168_v39 = vrot.slane %v4382_v21, 5 }
  0x16   :  { %v4419_v32 = vadd.s32 4294967295, %v166_v29  ;;  %v4423_v33 = vadd.s32 4294967295, %v165_v30  ;;  %v94_v44 = vcvt.s32.f32 %v4337_v1  ;;  %v170_v46 = vrot.slane %v4382_v21, 7 }
  0x17   :  { %v262_v34 = vperm.slane %v4411_v31, 0  ;;  %v4435_v40 = vadd.s32 4294967295, %v167_v35  ;;  %v4443_v42 = vadd.s32 4294967295, %v169_v38  ;;  %v4447_v43 = vadd.s32 4294967295, %v168_v39 }
  0x18   :  { %v264_v36 = vperm.slane %v4419_v32, 0  ;;  %v263_v37 = vperm.slane %v4423_v33, 0  ;;  %v4453_v47 = vshrl.u32 %v171_v41, 7  ;;  %v173_v50 = vperm.slane %v4337_v1, 0  ;;  %v129_v32 = vld [vmem:[%s6597_s3 + $0x8] sm:$0x1] }
  0x19   :  { %v265_v45 = vperm.slane %v4435_v40, 0  ;;  %v267_v48 = vperm.slane %v4443_v42, 0  ;;  %v266_v49 = vperm.slane %v4447_v43, 0  ;;  %v174_v51 = vperm.slane %v157_v5, 0  ;;  %v128_v40 = vld [vmem:[%s6597_s3] sm:$0xff]  ;;  %s3592_s3 = sshll.u32 %s6602_s8, 4  ;;  %s3593_s3 = int_to_ptr.hbm [resolvable:$true] %s3592_s3 }
  0x1a   :  { %323 = vperm.xlu0 %3835, %v254_v16   ;;  %v4458_v52 = vmax.f32 %v94_v44, 1.0  ;;  %v4464_v53 = vadd.s32 4294967295, %v170_v46  ;;  %v95_v54 = vcvt.s32.f32 %v4382_v21  ;;  %v177_v55 = vperm.slane %v160_v3, 0 }
  0x1b   :  { %vm189_vm0 = vcmp.lt.s32.totalorder %v4453_v47, %v173_v50  ;;  %v178_v56 = vperm.slane %v161_v6, 0  ;;  %v175_v57 = vperm.slane %v158_v4, 0  ;;  %vm190_vm1 = vcmp.lt.s32.totalorder %v4453_v47, %v174_v51 }
  0x1c   :  { %335 = vperm.xlu2 %3837, %v258_v18   ;;  %329 = vperm.xlu1 %3836, %v256_v19   ;;  %v176_v58 = vperm.slane %v159_v10, 0  ;;  %3918 = vrcp.f32 %v4458_v52  ;;  %v268_v59 = vperm.slane %v4464_v53, 0  ;;  %vm273_vm2 = vcmp.eq.s32.totalorder %v4453_v47, %v257_v11 }
  0x1d   :  { %v3611_v61 = vsel %vm189_vm0, 1.0, %v4275_v60  ;;  %v4487_v62 = vmax.f32 %v95_v54, 1.0  ;;  %v3612_v63 = vsel %vm190_vm1, 1.0, %v4275_v60  ;;  %vm193_vm3 = vcmp.lt.s32.totalorder %v4453_v47, %v177_v55 }
  0x1e   :  { %vm194_vm4 = vcmp.lt.s32.totalorder %v4453_v47, %v178_v56  ;;  %v179_v0 = vperm.slane %v162_v17, 0  ;;  %vm191_vm5 = vcmp.lt.s32.totalorder %v4453_v47, %v175_v57  ;;  %vm192_vm6 = vcmp.lt.s32.totalorder %v4453_v47, %v176_v58 }
  0x1f   :  { %v180_v3 = vperm.slane %v163_v20, 0  ;;  %v4499_v4 = vsel %vm273_vm2, 1.0, %v4275_v60  ;;  %v3838_v6 = vpack.i.bf16 %v3612_v63, %v3611_v61  ;;  %v3615_v8 = vsel %vm193_vm3, 1.0, %v4275_v60 }
  0x20   :  { %v3616_v10 = vsel %vm194_vm4, 1.0, %v4275_v60  ;;  %3920 = vrcp.f32 %v4487_v62  ;;  %v3613_v11 = vsel %vm191_vm5, 1.0, %v4275_v60  ;;  %v3614_v17 = vsel %vm192_vm6, 1.0, %v4275_v60 }
  0x21   :  { %vm195_vm7 = vcmp.lt.s32.totalorder %v4453_v47, %v179_v0  ;;  %vm274_vm8 = vcmp.eq.s32.totalorder %v4453_v47, %v258_v18  ;;  %vm196_vm9 = vcmp.lt.s32.totalorder %v4453_v47, %v180_v3  ;;  %v181_v20 = vperm.slane %v4382_v21, 0 }
  0x22   :  { %338 = vperm.xlu0 %3835, %v259_v25   ;;  %v4503_v5 = vpop.eup %3918  ;;  %v184_v44 = vperm.slane %v166_v29, 0  ;;  %v4521_v50 = vsel %vm274_vm8, 1.0, %v4275_v60  ;;  %v183_v51 = vperm.slane %v165_v30, 0  ;;  %v3848_v54 = vpack.i.bf16 %v3616_v10, %v3615_v8 }
  0x23   :  { %v99_v14 = vmul.f32 %v4503_v5, %v4458_v52  ;;  %v3888_v18 = vpack.i.bf16 %v4521_v50, %v4499_v4  ;;  %v3843_v55 = vpack.i.bf16 %v3614_v17, %v3613_v11  ;;  %v3617_v56 = vsel %vm195_vm7, 1.0, %v4275_v60  ;;  %v4863_v4 = vld [vmem:[%s6594_s0 + $0x38] sm:$0xff] }
  0x24   :  { %344 = vperm.xlu2 %3837, %v261_v27   ;;  %341 = vperm.xlu1 %3836, %v260_v28   ;;  %v3618_v57 = vsel %vm196_vm9, 1.0, %v4275_v60  ;;  %vm197_vm10 = vcmp.lt.s32.totalorder %v4453_v47, %v181_v20  ;;  %vm200_vm11 = vcmp.lt.s32.totalorder %v4453_v47, %v184_v44  ;;  %vm199_vm13 = vcmp.lt.s32.totalorder %v4453_v47, %v183_v51 }
  0x25   :  { %v186_v30 = vperm.slane %v168_v39, 0  ;;  %v100_v58 = vsub.f32 1.0, %v99_v14  ;;  %v3619_v61 = vsel %vm197_vm10, 1.0, %v4275_v60  ;;  %v3622_v63 = vsel %vm200_vm11, 1.0, %v4275_v60 }
  0x26   :  { %v4532_v29 = vpop.eup %3920  ;;  %v3853_v3 = vpack.i.bf16 %v3618_v57, %v3617_v56  ;;  %v187_v39 = vperm.slane %v169_v38, 0  ;;  %v188_v8 = vperm.slane %v170_v46, 0  ;;  %v3863_v11 = vpack.i.bf16 %v3622_v63, %v3619_v61 }
  0x27   :  { %v114_v0 = vmul.f32 %v4532_v29, %v4487_v62  ;;  %vm202_vm15 = vcmp.lt.s32.totalorder %v4453_v47, %v186_v30  ;;  %v101_v10 = vmul.f32 %v4503_v5, %v100_v58  ;;  %vm103_vm0 = vweird.f32 %v4458_v52 }
  0x28   :  { %vm104_vm1 = vweird.f32 %v4503_v5  ;;  %v109_v51 = vand.u32 2147483648, %v4458_v52  ;;  %vm203_vm2 = vcmp.lt.s32.totalorder %v4453_v47, %v187_v39  ;;  %vm204_vm3 = vcmp.lt.s32.totalorder %v4453_v47, %v188_v8 }
  0x29   :  { %v115_v20 = vsub.f32 1.0, %v114_v0  ;;  %v107_v38 = vand.u32 2147483647, %v4458_v52  ;;  %vm4565_vm4 = vmor %vm103_vm0, %vm104_vm1  ;;  %v3626_v56 = vsel %vm204_vm3, 1.0, %v4275_v60  ;;  %vm118_vm6 = vweird.f32 %v4487_v62 }
  0x2a   :  { %347 = vperm.xlu0 %3835, %v262_v34   ;;  %v110_v57 = vor.u32 1.1754944e-38, %v109_v51  ;;  %vm119_vm7 = vweird.f32 %v4532_v29  ;;  %v124_v52 = vand.u32 2147483648, %v4487_v62  ;;  %v122_v61 = vand.u32 2147483647, %v4487_v62 }
  0x2b   :  { %v116_v14 = vmul.f32 %v4532_v29, %v115_v20  ;;  %vm108_vm5 = vcmp.eq.f32.partialorder %v107_v38, 8.507059e+37  ;;  %vm4580_vm8 = vmor %vm118_vm6, %vm119_vm7  ;;  %vm269_vm9 = vcmp.eq.s32.totalorder %v4453_v47, %v253_v7  ;;  %vm271_vm10 = vcmp.eq.s32.totalorder %v4453_v47, %v255_v12 }
  0x2c   :  { %353 = vperm.xlu2 %3837, %v264_v36   ;;  %350 = vperm.xlu1 %3836, %v263_v37   ;;  %vm272_vm11 = vcmp.eq.s32.totalorder %v4453_v47, %v256_v19  ;;  %v125_v62 = vor.u32 1.1754944e-38, %v124_v52  ;;  %v3643_v7 = vsel %vm269_vm9, 1.0, %v4275_v60  ;;  %v3645_v9 = vsel %vm271_vm10, 1.0, %v4275_v60 }
  0x2d   :  { %v117_v58 = vadd.f32 %v4532_v29, %v116_v14  ;;  %v3646_v12 = vsel %vm272_vm11, 1.0, %v4275_v60  ;;  %vm275_vm0 = vcmp.eq.s32.totalorder %v4453_v47, %v259_v25  ;;  %vm276_vm1 = vcmp.eq.s32.totalorder %v4453_v47, %v260_v28 }
  0x2e   :  { %v3883_v13 = vpack.i.bf16 %v3646_v12, %v3643_v7  ;;  %v3650_v33 = vsel %vm276_vm1, 1.0, %v4275_v60  ;;  %vm280_vm3 = vcmp.eq.s32.totalorder %v4453_v47, %v264_v36  ;;  %vm281_vm6 = vcmp.eq.s32.totalorder %v4453_v47, %v265_v45 }
  0x2f   :  { %v121_v2 = vsel %vm4580_vm8, %v4532_v29, %v117_v58  ;;  %vm282_vm7 = vcmp.eq.s32.totalorder %v4453_v47, %v266_v49  ;;  %v3654_v23 = vsel %vm280_vm3, 1.0, %v4275_v60  ;;  %vm480_vm8 = vcmask 1040384  }
  0x30   :  { %v3656_v28 = vsel %vm282_vm7, 1.0, %v4275_v60  ;;  %3675 = vmatpush.msk.msra.mxu0 %vm480_vm8, %v129_v32  ;;  %3819 = vmatpush.msk.msra.mxu1 %vm480_vm8, %v129_v32  ;;  %v4655_v53 = vand.u32 127, %v171_v41  ;;  %vm431_vm10 = vcmask 72704  }
  0x32   :  { %356 = vperm.xlu0 %3835, %v265_v45   ;;  %499 = vmatpush.msra.mxu0 %v128_v40 }
  0x33   :  { %3820 = vmatpush.msra.mxu1 %v128_v40 }
  0x34   :  { %362 = vperm.xlu2 %3837, %v267_v48   ;;  %359 = vperm.xlu1 %3836, %v266_v49  }
  0x3a   :  { %365 = vperm.xlu0 %3835, %v268_v59  }
  0x3c   :  { %553 = vperm.xlu2 %3837, %v4382_v21   ;;  %550 = vperm.xlu1 %3836, %v4337_v1   ;;  %v182_v1 = vperm.slane %v164_v26, 0  ;;  %v185_v26 = vperm.slane %v167_v35, 0  ;;  %v102_v21 = vadd.f32 %v4503_v5, %v101_v10 }
  0x3e   :  { %vm198_vm12 = vcmp.lt.s32.totalorder %v4453_v47, %v182_v1  ;;  %vm201_vm14 = vcmp.lt.s32.totalorder %v4453_v47, %v185_v26  ;;  %v3624_v1 = vsel %vm202_vm15, 1.0, %v4275_v60  ;;  %v106_v26 = vsel %vm4565_vm4, %v4503_v5, %v102_v21 }
  0x3f   :  { %v3620_v35 = vsel %vm198_vm12, 1.0, %v4275_v60  ;;  %v3623_v44 = vsel %vm201_vm14, 1.0, %v4275_v60  ;;  %v111_v63 = vsel %vm108_vm5, %v110_v57, %v106_v26  ;;  %vm270_vm12 = vcmp.eq.s32.totalorder %v4453_v47, %v254_v16 }
  0x40   :  { %v3644_v15 = vsel %vm270_vm12, 1.0, %v4275_v60  ;;  %vm278_vm14 = vcmp.eq.s32.totalorder %v4453_v47, %v262_v34  ;;  %vm279_vm15 = vcmp.eq.s32.totalorder %v4453_v47, %v263_v37  ;;  %v3649_v34 = vsel %vm275_vm0, 1.0, %v4275_v60 }
  0x41   :  { %v3878_v5 = vpack.i.bf16 %v3645_v9, %v3644_v15  ;;  %v3652_v16 = vsel %vm278_vm14, 1.0, %v4275_v60  ;;  %v3653_v31 = vsel %vm279_vm15, 1.0, %v4275_v60  ;;  %v3893_v37 = vpack.i.bf16 %v3650_v33, %v3649_v34  ;;  %v131_v9 = vld [vmem:[#allocation2 + $0x8] sm:$0x1] }
  0x42   :  { %3839 = vperm.xlu0 %3835, %v3838_v6   ;;  %v3621_v6 = vsel %vm199_vm13, 1.0, %v4275_v60  ;;  %vm123_vm13 = vcmp.eq.f32.partialorder %v122_v61, 8.507059e+37  ;;  %v3898_v29 = vpack.i.bf16 %v3653_v31, %v3652_v16  ;;  %vm283_vm4 = vcmp.eq.s32.totalorder %v4453_v47, %v267_v48  ;;  %3694 = vmatpush.msk.msrb.mxu1 %vm480_vm8, %v131_v9  ;;  %v130_v16 = vld [vmem:[#allocation2] sm:$0xff] }
  0x43   :  { %v3858_v17 = vpack.i.bf16 %v3621_v6, %v3620_v35  ;;  %v126_v19 = vsel %vm123_vm13, %v125_v62, %v121_v2  ;;  %vm284_vm5 = vcmp.eq.s32.totalorder %v4453_v47, %v268_v59  ;;  %v3657_v24 = vsel %vm283_vm4, 1.0, %v4275_v60  ;;  %v4704_v62 = vld [vmem:[%s6594_s0 + $0x20] sm:$0xff]  ;;  %v4710_v2 = vld [vmem:[%s6594_s0 + $0x28] sm:$0xff] }
  0x44   :  { %3849 = vperm.xlu2 %3837, %v3848_v54   ;;  %3844 = vperm.xlu1 %3836, %v3843_v55   ;;  %v3868_v54 = vpack.i.bf16 %v3624_v1, %v3623_v44  ;;  %v3625_v55 = vsel %vm203_vm2, 1.0, %v4275_v60  ;;  %vm277_vm2 = vcmp.eq.s32.totalorder %v4453_v47, %v261_v27  ;;  %v3658_v25 = vsel %vm284_vm5, 1.0, %v4275_v60 }
  0x45   :  { %v3873_v30 = vpack.i.bf16 %v3626_v56, %v3625_v55  ;;  %v3651_v22 = vsel %vm277_vm2, 1.0, %v4275_v60  ;;  %v3655_v27 = vsel %vm281_vm6, 1.0, %v4275_v60  ;;  %v3913_v42 = vpack.i.bf16 %v3658_v25, %v3657_v24  ;;  %585 = vmatpush.msrb.mxu1 %v130_v16 }
  0x46   :  { %v3903_v36 = vpack.i.bf16 %v3654_v23, %v3651_v22  ;;  %v3908_v43 = vpack.i.bf16 %v3656_v28, %v3655_v27  ;;  %vm594_vm2 = vcmask 261120   ;;  %v4826_v28 = vld [vmem:[%s6594_s0 + $0x30] sm:$0xff] }
  0x4a   :  { %3854 = vperm.xlu0 %3835, %v3853_v3  }
  0x4c   :  { %3864 = vperm.xlu2 %3837, %v3863_v11   ;;  %3859 = vperm.xlu1 %3836, %v3858_v17  }
  0x52   :  { %3869 = vperm.xlu0 %3835, %v3868_v54  }
  0x54   :  { %3874 = vperm.xlu1 %3836, %v3873_v30   ;;  %918 = vperm.xlu2 %3837, %v111_v63  }
  0x5a   :  { %922 = vperm.xlu0 %3835, %v126_v19  }
  0x5c   :  { %3884 = vperm.xlu1 %3836, %v3883_v13   ;;  %3879 = vperm.xlu2 %3837, %v3878_v5  }
  0x62   :  { %3889 = vperm.xlu0 %3835, %v3888_v18  }
  0x64   :  { %3899 = vperm.xlu1 %3836, %v3898_v29   ;;  %3894 = vperm.xlu2 %3837, %v3893_v37  }
  0x6a   :  { %3904 = vperm.xlu0 %3835, %v3903_v36  }
  0x6c   :  { %3914 = vperm.xlu1 %3836, %v3913_v42   ;;  %3909 = vperm.xlu2 %3837, %v3908_v43   ;;  %v61_v43 = vld [vmem:[%s6594_s0 + $0x8] sm:$0xff] }
  0x6e   :  { %v333_v45 = vpop.permute.xlu2 %332 }
  0x6f   :  { %v371_v56 = vsub.s32 %v333_v45, %v4453_v47  ;;  %v4754_v45 = vld [vmem:[%s6599_s5 + $0x18] sm:$0xff] }
  0x70   :  { %2170 = vmatpush.msrb.mxu0 %v4754_v45  ;;  %3821 = vmatpush.msra.mxu3 %v4754_v45 }
  0x71   :  { %vm387_vm0 = vcmp.eq.s32.totalorder %v371_v56, %v4655_v53 }
  0x72   :  { %v3663_v0 = vsel %vm387_vm0, 1.0, %v4275_v60  ;;  %vm1126_vm0 = vcmask 1044484  }
  0x76   :  { %v336_v48 = vpop.permute.xlu2 %335 }
  0x77   :  { %v372_v12 = vsub.s32 %v336_v48, %v4453_v47 }
  0x79   :  { %vm388_vm3 = vcmp.eq.s32.totalorder %v372_v12, %v4655_v53 }
  0x7a   :  { %v3664_v22 = vsel %vm388_vm3, 1.0, %v4275_v60  ;;  %vm1132_vm3 = vcmask 1046534  }
  0x7e   :  { %v345_v49 = vpop.permute.xlu2 %344 }
  0x7f   :  { %v375_v59 = vsub.s32 %v345_v49, %v4453_v47 }
  0x81   :  { %vm4659_vm9 = vcmp.eq.s32.totalorder %v375_v59, %v4655_v53 }
  0x84   :  { %v321_v50 = vpop.permute.xlu0 %320 }
  0x85   :  { %v367_v18 = vsub.s32 %v321_v50, %v4453_v47  ;;  %v62_v50 = vld [vmem:[%s6594_s0 + $0x10] sm:$0xff] }
  0x86   :  { %v354_v3 = vpop.permute.xlu2 %353  ;;  %v327_v35 = vpop.permute.xlu1 %326 }
  0x87   :  { %vm383_vm11 = vcmp.eq.s32.totalorder %v367_v18, %v4655_v53  ;;  %v378_v6 = vsub.s32 %v354_v3, %v4453_v47  ;;  %v369_v20 = vsub.s32 %v327_v35, %v4453_v47 }
  0x88   :  { %v3659_v41 = vsel %vm383_vm11, 1.0, %v4275_v60 }
  0x89   :  { %vm394_vm12 = vcmp.eq.s32.totalorder %v378_v6, %v4655_v53  ;;  %3676 = vmatmul.msk.f32.vlgmr.msra.gmra.mxu0 %vm431_vm10, %v3659_v41  ;;  %vm385_vm14 = vcmp.eq.s32.totalorder %v369_v20, %v4655_v53 }
  0x8a   :  { %v3670_v39 = vsel %vm394_vm12, 1.0, %v4275_v60  ;;  %v3661_v38 = vsel %vm385_vm14, 1.0, %v4275_v60  ;;  %vm1120_vm14 = vcmask 1042434  }
  0x8b   :  { %3687 = vmatmul.msk.f32.vlgmr.msra.gmra.mxu1 %vm431_vm10, %v3670_v39 }
  0x8c   :  { %v324_v8 = vpop.permute.xlu0 %323 }
  0x8d   :  { %v368_v10 = vsub.s32 %v324_v8, %v4453_v47 }
  0x8e   :  { %v363_v11 = vpop.permute.xlu2 %362  ;;  %v330_v17 = vpop.permute.xlu1 %329 }
  0x8f   :  { %vm384_vm13 = vcmp.eq.s32.totalorder %v368_v10, %v4655_v53  ;;  %v370_v46 = vsub.s32 %v330_v17, %v4453_v47  ;;  %v381_v37 = vsub.s32 %v363_v11, %v4453_v47 }
  0x90   :  { %v3660_v44 = vsel %vm384_vm13, 1.0, %v4275_v60 }
  0x91   :  { %3677 = vmatmul.msk.f32.gmra.mxu0 %vm431_vm10, %v3660_v44  ;;  %vm386_vm15 = vcmp.eq.s32.totalorder %v370_v46, %v4655_v53  ;;  %vm4737_vm5 = vcmp.eq.s32.totalorder %v381_v37, %v4655_v53 }
  0x92   :  { %v3662_v57 = vsel %vm386_vm15, 1.0, %v4275_v60  ;;  %v3673_v6 = vsel %vm4737_vm5, 1.0, %v4275_v60  ;;  %vm1123_vm15 = vcmask 1043459  }
  0x94   :  { %v339_v1 = vpop.permute.xlu0 %338 }
  0x95   :  { %v373_v25 = vsub.s32 %v339_v1, %v4453_v47 }
  0x96   :  { %v4677_v51 = vpop.permute.xlu2 %553  ;;  %v4679_v21 = vpop.permute.xlu1 %341 }
  0x97   :  { %vm4742_vm6 = vcmp.eq.s32.totalorder %v373_v25, %v4655_v53  ;;  %v374_v41 = vsub.s32 %v4679_v21, %v4453_v47  ;;  %vm556_vm11 = vcmp.eq.s32.totalorder %v4655_v53, %v4677_v51 }
  0x98   :  { %v3665_v8 = vsel %vm4742_vm6, 1.0, %v4275_v60 }
  0x99   :  { %3678 = vmatmul.msk.f32.gmra.mxu0 %vm431_vm10, %v3661_v38  ;;  %vm390_vm7 = vcmp.eq.s32.totalorder %v374_v41, %v4655_v53 }
  0x9c   :  { %v4684_v14 = vpop.permute.xlu0 %347 }
  0x9d   :  { %v376_v56 = vsub.s32 %v4684_v14, %v4453_v47 }
  0x9e   :  { %v3850_v54 = vpop.permute.xlu2 %3849  ;;  %v4687_v55 = vpop.permute.xlu1 %350 }
  0x9f   :  { %v4693_v52 = vunpack.i.l.bf16 %v3850_v54  ;;  %v4696_v58 = vunpack.i.h.bf16 %v3850_v54  ;;  %vm4805_vm12 = vcmp.eq.s32.totalorder %v376_v56, %v4655_v53 }
  0xa1   :  { %3679 = vmatmul.msk.f32.gmra.mxu0 %vm431_vm10, %v3662_v57  ;;  %6667 = vst [vmem:[#allocation14_spill] sm:$0xff] %v4693_v52  ;;  %v792_v19 = vmul.f32 %v4693_v52, %v4704_v62  ;;  %v793_v13 = vmul.f32 %v4696_v58, %v4710_v2  ;;  %v377_v57 = vsub.s32 %v4687_v55, %v4453_v47  ;;  %v4802_v55 = vld [vmem:[%s6594_s0 + $0x40] sm:$0xff] }
  0xa2   :  { %6668 = vst [vmem:[#allocation15_spill] sm:$0xff] %v4696_v58 }
  0xa3   :  { %v832_v31 = vsel %vm594_vm2, %v792_v19, 0.0  ;;  %v839_v29 = vsel %vm594_vm2, %v793_v13, 0.0  ;;  %vm4810_vm13 = vcmp.eq.s32.totalorder %v377_v57, %v4655_v53 }
  0xa4   :  { %v357_v26 = vpop.permute.xlu0 %356  ;;  %v833_v24 = vrot.slane %v832_v31, 4  ;;  %v840_v27 = vrot.slane %v839_v29, 4 }
  0xa5   :  { %v379_v30 = vsub.s32 %v357_v26, %v4453_v47 }
  0xa6   :  { %v4698_v61 = vpop.permute.xlu2 %3864  ;;  %v360_v63 = vpop.permute.xlu1 %359  ;;  %v834_v36 = vadd.f32 %v833_v24, %v832_v31  ;;  %v841_v48 = vadd.f32 %v840_v27, %v839_v29  ;;  %v4817_v29 = vld [vmem:[%s6594_s0] sm:$0xff] }
  0xa7   :  { %vm395_vm1 = vcmp.eq.s32.totalorder %v379_v30, %v4655_v53  ;;  %v380_v15 = vsub.s32 %v360_v63, %v4453_v47  ;;  %v4789_v9 = vunpack.i.l.bf16 %v4698_v61 }
  0xa8   :  { %v3671_v7 = vsel %vm395_vm1, 1.0, %v4275_v60  ;;  %v835_v10 = vrot.slane %v834_v36, 2  ;;  %v842_v44 = vrot.slane %v841_v48, 2  ;;  %vm1129_vm1 = vcmask 1045509  }
  0xa9   :  { %3680 = vmatmul.msk.f32.gmra.mxu0 %vm431_vm10, %v3663_v0  ;;  %3688 = vmatmul.msk.f32.gmra.mxu1 %vm431_vm10, %v3671_v7  ;;  %vm396_vm4 = vcmp.eq.s32.totalorder %v380_v15, %v4655_v53  ;;  %6675 = vst [vmem:[#allocation18_spill] sm:$0xff] %v4789_v9 }
  0xaa   :  { %v3672_v23 = vsel %vm396_vm4, 1.0, %v4275_v60  ;;  %v836_v0 = vadd.f32 %v835_v10, %v834_v36  ;;  %v843_v7 = vadd.f32 %v842_v44, %v841_v48  ;;  %v4835_v36 = vsel %vm556_vm11, 1.0, %v4275_v60 }
  0xab   :  { %vm1135_vm4 = vcmask 1047559  }
  0xac   :  { %v366_v5 = vpop.permute.xlu0 %365  ;;  %v844_v24 = vrot.slane %v843_v7, 1 }
  0xad   :  { %v382_v1 = vsub.s32 %v366_v5, %v4453_v47  ;;  %v3666_v47 = vsel %vm390_vm7, 1.0, %v4275_v60 }
  0xae   :  { %v4725_v34 = vpop.permute.xlu1 %550  ;;  %v4727_v33 = vpop.permute.xlu2 %918 }
  0xaf   :  { %vm398_vm8 = vcmp.eq.s32.totalorder %v382_v1, %v4655_v53 }
  0xb1   :  { %3681 = vmatmul.msk.f32.gmra.mxu0 %vm431_vm10, %v3664_v22  ;;  %3689 = vmatmul.msk.f32.gmra.mxu1 %vm431_vm10, %v3672_v23  ;;  %v3674_v22 = vsel %vm398_vm8, 1.0, %v4275_v60  ;;  %v837_v23 = vrot.slane %v836_v0, 1 }
  0xb4   :  { %v3840_v32 = vpop.permute.xlu0 %3839 }
  0xb5   :  { %v4746_v42 = vunpack.i.h.bf16 %v3840_v32  ;;  %v4796_v14 = vunpack.i.l.bf16 %v3840_v32  ;;  %v796_v32 = vmul.f32 %v4789_v9, %v4802_v55 }
  0xb6   :  { %v4756_v49 = vpop.permute.xlu1 %3844  ;;  %v3880_v59 = vpop.permute.xlu2 %3879 }
  0xb7   :  { %6673 = vst [vmem:[#allocation16_spill] sm:$0xff] %v4746_v42  ;;  %v4764_v18 = vunpack.i.l.bf16 %v4756_v49  ;;  %v3882_v3 = vunpack.i.h.bf16 %v3880_v59  ;;  %v3881_v35 = vunpack.i.l.bf16 %v3880_v59  ;;  %v789_v39 = vmul.f32 %v4746_v42, %v61_v43 }
  0xb8   :  { %6676 = vst [vmem:[#allocation19_spill] sm:$0xff] %v4796_v14  ;;  %v788_v48 = vmul.f32 %v4796_v14, %v4817_v29  ;;  %v4847_v59 = vsel %vm4805_vm12, 1.0, %v4275_v60  ;;  %v860_v44 = vsel %vm594_vm2, %v796_v32, 0.0  ;;  %v4872_v1 = vunpack.i.h.bf16 %v4756_v49  ;;  %v4890_v49 = vld [vmem:[%s6599_s5 + $0x58] sm:$0xff] }
  0xb9   :  { %6674 = vst [vmem:[#allocation17_spill] sm:$0xff] %v4764_v18  ;;  %v790_v11 = vmul.f32 %v4764_v18, %v62_v50  ;;  %v3176_v17 = vmul.f32 %v3881_v35, %v61_v43  ;;  %v3177_v20 = vmul.f32 %v3882_v3, %v62_v50  ;;  %3682 = vmatmul.msk.f32.gmra.mxu0 %vm431_vm10, %v3665_v8  ;;  %v811_v21 = vsel %vm594_vm2, %v789_v39, 0.0  ;;  %v4933_v32 = vld [vmem:[%s6594_s0 + $0x58] sm:$0xff] }
  0xba   :  { %3690 = vmatmul.msk.f32.gmra.mxu1 %vm431_vm10, %v3673_v6  ;;  %v812_v38 = vrot.slane %v811_v21, 4  ;;  %v3667_v43 = vsel %vm4659_vm9, 1.0, %v4275_v60  ;;  %v4856_v6 = vsel %vm4810_vm13, 1.0, %v4275_v60  ;;  %vm555_vm9 = vcmp.eq.s32.totalorder %v4655_v53, %v4725_v34  ;;  %6684 = vst [vmem:[#allocation23_spill] sm:$0xff] %v4872_v1 }
  0xbb   :  { %v818_v46 = vsel %vm594_vm2, %v790_v11, 0.0  ;;  %v3198_v54 = vsel %vm594_vm2, %v3176_v17, 0.0  ;;  %v3205_v63 = vsel %vm594_vm2, %v3177_v20, 0.0  ;;  %v838_v39 = vadd.f32 %v837_v23, %v836_v0  ;;  %1167 = vmatpush.msra.mxu1 %v4890_v49 }
  0xbc   :  { %v819_v26 = vrot.slane %v818_v46, 4  ;;  %v3855_v30 = vpop.permute.xlu0 %3854  ;;  %v813_v12 = vadd.f32 %v812_v38, %v811_v21  ;;  %v3199_v15 = vrot.slane %v3198_v54, 4  ;;  %v3206_v31 = vrot.slane %v3205_v63, 4 }
  0xbd   :  { %v4819_v37 = vunpack.i.l.bf16 %v3855_v30  ;;  %v4849_v35 = vunpack.i.h.bf16 %v3855_v30  ;;  %v845_v8 = vadd.f32 %v844_v24, %v843_v7  ;;  %v804_v21 = vsel %vm594_vm2, %v788_v48, 0.0  ;;  %v4885_v30 = vld [vmem:[%s6594_s0 + $0x18] sm:$0xff] }
  0xbe   :  { %v4792_v19 = vpop.permute.xlu1 %3859  ;;  %v820_v16 = vadd.f32 %v819_v26, %v818_v46  ;;  %v814_v25 = vrot.slane %v813_v12, 2  ;;  %v3200_v27 = vadd.f32 %v3199_v15, %v3198_v54  ;;  %v4837_v40 = vpop.permute.xlu2 %3894  ;;  %v3207_v3 = vadd.f32 %v3206_v31, %v3205_v63 }
  0xbf   :  { %6681 = vst [vmem:[#allocation20_spill] sm:$0xff] %v4819_v37  ;;  %v794_v41 = vmul.f32 %v4819_v37, %v4826_v28  ;;  %v3896_v17 = vunpack.i.l.bf16 %v4837_v40  ;;  %v6604_v38 = vrot.slane %v4727_v33, 4  ;;  %v6603_v46 = vrot.slane %v4727_v33, 5 }
  0xc0   :  { %6682 = vst [vmem:[#allocation21_spill] sm:$0xff] %v4837_v40  ;;  %v821_v50 = vrot.slane %v820_v16, 2  ;;  %v815_v10 = vadd.f32 %v814_v25, %v813_v12  ;;  %v3201_v11 = vrot.slane %v3200_v27, 2  ;;  %v4878_v54 = vunpack.i.h.bf16 %v4698_v61  ;;  %v4895_v61 = vld [vmem:[%s6599_s5 + $0x50] sm:$0xff] }
  0xc1   :  { %3683 = vmatmul.msk.f32.gmra.mxu0 %vm431_vm10, %v3666_v47  ;;  %6683 = vst [vmem:[#allocation22_spill] sm:$0xff] %v4849_v35  ;;  %v3208_v57 = vrot.slane %v3207_v3, 2  ;;  %v795_v26 = vmul.f32 %v4849_v35, %v4863_v4  ;;  %v3692_v63 = vsel %vm555_vm9, 1.0, %v4275_v60  ;;  %v6605_v0 = vrot.slane %v4727_v33, 1  ;;  %1168 = vmatpush.msra.mxu1 %v4895_v61  ;;  %v4923_v25 = vld [vmem:[%s6599_s5 + $0x10] sm:$0xff] }
  0xc2   :  { %3691 = vmatmul.msk.f32.gmra.mxu1 %vm431_vm10, %v3674_v22  ;;  %6685 = vst [vmem:[#allocation24_spill] sm:$0xff] %v4878_v54  ;;  %v822_v56 = vadd.f32 %v821_v50, %v820_v16  ;;  %v846_v7 = vsel %vm594_vm2, %v794_v41, 0.0  ;;  %v861_v12 = vrot.slane %v860_v44, 4  ;;  %v816_v15 = vrot.slane %v815_v10, 1  ;;  %2171 = vmatpush.msrb.mxu0 %v4923_v25 }
  0xc3   :  { %v3202_v47 = vadd.f32 %v3201_v11, %v3200_v27  ;;  %v3181_v13 = vmul.f32 %v3896_v17, %v4826_v28  ;;  %v805_v5 = vrot.slane %v804_v21, 4  ;;  %v6606_v16 = vrot.slane %v4727_v33, 2  ;;  %v4928_v27 = vld [vmem:[%s6599_s5 + $0x48] sm:$0xff]  ;;  %3822 = vmatpush.msra.mxu3 %v4923_v25 }
  0xc4   :  { %v4851_v51 = vpop.permute.xlu0 %3869  ;;  %v791_v60 = vmul.f32 %v4872_v1, %v4885_v30  ;;  %v4913_v53 = vmul.f32 %v6604_v38, %v838_v39  ;;  %v4917_v34 = vmul.f32 %v6603_v46, %v845_v8  ;;  %v823_v31 = vrot.slane %v822_v56, 1  ;;  %6686 = vst [vmem:[#allocation25_spill] sm:$0xff] %v4928_v27  ;;  %1169 = vmatpush.msra.mxu1 %v4928_v27 }
  0xc5   :  { %v3209_v22 = vadd.f32 %v3208_v57, %v3207_v3  ;;  %v847_v23 = vrot.slane %v846_v7, 4  ;;  %v853_v24 = vsel %vm594_vm2, %v795_v26, 0.0  ;;  %v4942_v41 = vadd.f32 %v861_v12, %v860_v44 }
  0xc6   :  { %v4868_v20 = vpop.permute.xlu1 %3874  ;;  %v817_v39 = vadd.f32 %v816_v15, %v815_v10  ;;  %v3203_v8 = vrot.slane %v3202_v47, 1  ;;  %v3233_v11 = vsel %vm594_vm2, %v3181_v13, 0.0  ;;  %v806_v17 = vadd.f32 %v805_v5, %v804_v21 }
  0xc7   :  { %v854_v57 = vrot.slane %v853_v24, 4  ;;  %v4950_v38 = vmul.f32 %v4878_v54, %v4933_v32  ;;  %v824_v3 = vadd.f32 %v823_v31, %v822_v56  ;;  %v3210_v44 = vrot.slane %v3209_v22, 1 }
  0xc8   :  { %v848_v12 = vadd.f32 %v847_v23, %v846_v7  ;;  %v825_v10 = vsel %vm594_vm2, %v791_v60, 0.0  ;;  %v4954_v15 = vunpack.i.h.bf16 %v4792_v19  ;;  %v3234_v21 = vrot.slane %v3233_v11, 4  ;;  %v4969_v7 = vld [vmem:[%s6594_s0 + $0x60] sm:$0xff] }
  0xc9   :  { %3684 = vmatmul.msk.f32.gmra.mxu0 %vm431_vm10, %v3667_v43  ;;  %v4957_v13 = vunpack.i.l.bf16 %v4851_v51  ;;  %v4964_v46 = vmul.f32 %v6605_v0, %v817_v39  ;;  %v3204_v56 = vadd.f32 %v3203_v8, %v3202_v47  ;;  %6689 = vst [vmem:[#allocation28_spill] sm:$0xff] %v4969_v7  ;;  %v807_v31 = vrot.slane %v806_v17, 2  ;;  %v3910_v43 = vpop.permute.xlu2 %3909 }
  0xca   :  { %3695 = vmatmul.msk.f32.vlgmr.msrb.gmra.mxu1 %vm431_vm10, %v3692_v63  ;;  %6687 = vst [vmem:[#allocation26_spill] sm:$0xff] %v4954_v15  ;;  %v4974_v23 = vunpack.i.l.bf16 %v4792_v19  ;;  %v826_v63 = vrot.slane %v825_v10, 4  ;;  %v4980_v47 = vmul.f32 %v6606_v16, %v824_v3  ;;  %v4982_v39 = vadd.f32 %v3210_v44, %v3209_v22  ;;  %v4990_v19 = vld [vmem:[%s6594_s0 + $0x68] sm:$0xff] }
  0xcb   :  { %6688 = vst [vmem:[#allocation27_spill] sm:$0xff] %v4957_v13  ;;  %v849_v8 = vrot.slane %v848_v12, 2  ;;  %v4985_v0 = vunpack.i.h.bf16 %v4851_v51  ;;  %v3235_v50 = vadd.f32 %v3234_v21, %v3233_v11  ;;  %v5001_v11 = vld [vmem:[%s6599_s5 + $0x40] sm:$0xff]  ;;  %v3912_v21 = vunpack.i.h.bf16 %v3910_v43 }
  0xcc   :  { %v4936_v48 = vpop.permute.xlu0 %922  ;;  %6690 = vst [vmem:[#allocation29_spill] sm:$0xff] %v4974_v23  ;;  %v3911_v16 = vunpack.i.l.bf16 %v3910_v43  ;;  %1170 = vmatpush.msra.mxu1 %v5001_v11 }
  0xcd   :  { %6691 = vst [vmem:[#allocation30_spill] sm:$0xff] %v4985_v0 }
  0xce   :  { %v3885_v26 = vpop.permute.xlu1 %3884  ;;  %6692 = vst [vmem:[#allocation31_spill] sm:$0xff] %v4990_v19 }
  0xcf   :  { %v3887_v60 = vunpack.i.h.bf16 %v3885_v26  ;;  %v3886_v5 = vunpack.i.l.bf16 %v3885_v26  ;;  %v808_v26 = vadd.f32 %v807_v31, %v806_v17  ;;  %6693 = vst [vmem:[#allocation32_spill] sm:$0xff] %v5001_v11  ;;  %v801_v17 = vmul.f32 %v4985_v0, %v4990_v19 }
  0xd0   :  { %v3236_v31 = vrot.slane %v3235_v50, 2  ;;  %v5016_v0 = vunpack.i.h.bf16 %v4868_v20 }
  0xd1   :  { %3685 = vmatmul.msk.f32.gmra.mxu0 %vm431_vm10, %v4847_v59  ;;  %v4976_v59 = vadd.f32 %v854_v57, %v853_v24  ;;  %v827_v24 = vadd.f32 %v826_v63, %v825_v10  ;;  %v3175_v3 = vmul.f32 %v3886_v5, %v4817_v29  ;;  %v3304_v57 = vsub.f32 %v4964_v46, %v3204_v56 }
  0xd2   :  { %3696 = vmatmul.msk.f32.gmra.mxu1 %vm431_vm10, %v4835_v36  ;;  %v800_v36 = vmul.f32 %v4957_v13, %v4969_v7  ;;  %v3178_v51 = vmul.f32 %v3887_v60, %v4885_v30  ;;  %v3305_v56 = vsub.f32 %v4980_v47, %v4982_v39  ;;  %v850_v60 = vadd.f32 %v849_v8, %v848_v12 }
  0xd3   :  { %v3191_v63 = vsel %vm594_vm2, %v3175_v3, 0.0  ;;  %v828_v30 = vrot.slane %v827_v24, 2  ;;  %v809_v43 = vrot.slane %v808_v26, 1  ;;  %v3364_v40 = vrot.slane %v3304_v57, 7  ;;  %6694 = vst [vmem:[#allocation33_spill] sm:$0xff] %v5016_v0  ;;  %v5029_v57 = vld [vmem:[%s6594_s0 + $0x50] sm:$0xff] }
  0xd4   :  { %v3890_v10 = vpop.permute.xlu0 %3889  ;;  %v3192_v5 = vrot.slane %v3191_v63, 4  ;;  %v888_v22 = vsel %vm594_vm2, %v800_v36, 0.0  ;;  %v3212_v44 = vsel %vm594_vm2, %v3178_v51, 0.0  ;;  %v3187_v13 = vmul.f32 %v3911_v16, %v4969_v7 }
  0xd5   :  { %v3891_v29 = vunpack.i.l.bf16 %v3890_v10  ;;  %v3188_v39 = vmul.f32 %v3912_v21, %v4990_v19  ;;  %v889_v12 = vrot.slane %v888_v22, 4  ;;  %v895_v8 = vsel %vm594_vm2, %v801_v17, 0.0 }
  0xd6   :  { %v3193_v3 = vadd.f32 %v3192_v5, %v3191_v63  ;;  %v829_v36 = vadd.f32 %v828_v30, %v827_v24  ;;  %v851_v51 = vrot.slane %v850_v60, 1  ;;  %v5032_v16 = vunpack.i.l.bf16 %v4868_v20 }
  0xd7   :  { %v3213_v21 = vrot.slane %v3212_v44, 4  ;;  %v3892_v63 = vunpack.i.h.bf16 %v3890_v10  ;;  %v5034_v17 = vadd.f32 %v3236_v31, %v3235_v50  ;;  %v810_v24 = vadd.f32 %v809_v43, %v808_v26 }
  0xd8   :  { %v3194_v54 = vrot.slane %v3193_v3, 2  ;;  %6695 = vst [vmem:[#allocation34_spill] sm:$0xff] %v5032_v16  ;;  %v3179_v5 = vmul.f32 %v3891_v29, %v4704_v62  ;;  %v896_v19 = vrot.slane %v895_v8, 4  ;;  %v3275_v7 = vsel %vm594_vm2, %v3187_v13, 0.0 }
  0xd9   :  { %3686 = vmatmul.msk.f32.gmra.mxu0 %vm431_vm10, %v4856_v6  ;;  %v5024_v6 = vld [vmem:[%s6594_s0 + $0x48] sm:$0xff]  ;;  %vm1117_vm10 = vcmask 1041409   ;;  %v798_v20 = vmul.f32 %v4954_v15, %v5029_v57  ;;  %v890_v11 = vadd.f32 %v889_v12, %v888_v22  ;;  %v3282_v35 = vsel %vm594_vm2, %v3188_v39, 0.0  ;;  %v3900_v12 = vpop.permute.xlu1 %3899 }
  0xda   :  { %v3195_v30 = vadd.f32 %v3194_v54, %v3193_v3  ;;  %v797_v9 = vmul.f32 %v4974_v23, %v5024_v6  ;;  %v830_v10 = vrot.slane %v829_v36, 1  ;;  %v3214_v31 = vadd.f32 %v3213_v21, %v3212_v44 }
  0xdb   :  { %v3180_v26 = vmul.f32 %v3892_v63, %v4710_v2  ;;  %v874_v62 = vsel %vm594_vm2, %v798_v20, 0.0  ;;  %v3276_v29 = vrot.slane %v3275_v7, 4  ;;  %v954_v13 = vmul.f32 %v4727_v33, %v810_v24 }
  0xdc   :  { %v3196_v50 = vrot.slane %v3195_v30, 1  ;;  %v867_v54 = vsel %vm594_vm2, %v797_v9, 0.0  ;;  %v3219_v3 = vsel %vm594_vm2, %v3179_v5, 0.0  ;;  %v3366_v23 = vrot.slane %v3305_v56, 6 }
  0xdd   :  { %v852_v15 = vadd.f32 %v851_v51, %v850_v60  ;;  %v3283_v22 = vrot.slane %v3282_v35, 4  ;;  %v868_v39 = vrot.slane %v867_v54, 4  ;;  %v891_v37 = vrot.slane %v890_v11, 2 }
  0xde   :  { %v3197_v43 = vadd.f32 %v3196_v50, %v3195_v30  ;;  %v831_v27 = vadd.f32 %v830_v10, %v829_v36  ;;  %v875_v21 = vrot.slane %v874_v62, 4  ;;  %v3215_v9 = vrot.slane %v3214_v31, 2 }
  0xdf   :  { %v3220_v58 = vrot.slane %v3219_v3, 4  ;;  %v3226_v20 = vsel %vm594_vm2, %v3180_v26, 0.0  ;;  %v5050_v52 = vadd.f32 %v896_v19, %v895_v8  ;;  %v5052_v24 = vadd.f32 %v3276_v29, %v3275_v7 }
  0xe0   :  { %v3303_v44 = vsub.f32 %v954_v13, %v3197_v43  ;;  %v3901_v60 = vunpack.i.l.bf16 %v3900_v12  ;;  %v5055_v51 = vadd.f32 %v3283_v22, %v3282_v35  ;;  %v3902_v36 = vunpack.i.h.bf16 %v3900_v12 }
  0xe1   :  { %v869_v5 = vadd.f32 %v868_v39, %v867_v54  ;;  %v5060_v10 = vadd.f32 %v891_v37, %v890_v11  ;;  %v6696_v50 = vrot.slane %v4727_v33, 3  ;;  %v3227_v19 = vrot.slane %v3226_v20, 4  ;;  %v3915_v22 = vpop.permute.xlu1 %3914 }
  0xe2   :  { %v3365_v56 = vsel %vm1117_vm10, %v3364_v40, %v3303_v44  ;;  %v876_v8 = vadd.f32 %v875_v21, %v874_v62  ;;  %v6697_v7 = vrot.slane %v4727_v33, 6  ;;  %v3216_v40 = vadd.f32 %v3215_v9, %v3214_v31 }
  0xe3   :  { %v5058_v30 = vsel %vm1120_vm14, %v3366_v23, %v3365_v56  ;;  %v5064_v43 = vmul.f32 %v6696_v50, %v831_v27  ;;  %v3221_v35 = vadd.f32 %v3220_v58, %v3219_v3  ;;  %v6698_v23 = vrot.slane %v4976_v59, 2 }
  0xe4   :  { %v5068_v26 = vmul.f32 %v6697_v7, %v852_v15  ;;  %v3184_v11 = vmul.f32 %v3901_v60, %v5024_v6  ;;  %v6699_v27 = vrot.slane %v4964_v46, 7  ;;  %v870_v15 = vrot.slane %v869_v5, 2 }
  0xe5   :  { %v857_v29 = vadd.f32 %v6698_v23, %v4976_v59  ;;  %v3185_v31 = vmul.f32 %v3902_v36, %v5029_v57  ;;  %v1122_v59 = vrot.slane %v5064_v43, 5  ;;  %v3228_v12 = vadd.f32 %v3227_v19, %v3226_v20  ;;  %v139_v19 = vld [vmem:[%s6599_s5 + $0x38] sm:$0xff] }
  0xe6   :  { %v1118_v62 = vsel %vm1117_vm10, %v6699_v27, %v954_v13  ;;  %v877_v39 = vrot.slane %v876_v8, 2  ;;  %v3217_v44 = vrot.slane %v3216_v40, 1  ;;  %v3222_v21 = vrot.slane %v3221_v35, 2  ;;  %v3905_v27 = vpop.permute.xlu0 %3904  ;;  %655 = vmatpush.msra.mxu2 %v139_v19 }
  0xe7   :  { %v858_v58 = vrot.slane %v857_v29, 1  ;;  %v6700_v56 = vrot.slane %v4980_v47, 6  ;;  %v3254_v60 = vsel %vm594_vm2, %v3184_v11, 0.0  ;;  %v871_v36 = vadd.f32 %v870_v15, %v869_v5  ;;  %v5096_v47 = vld [vmem:[%s6599_s5 + $0x8] sm:$0xff]  ;;  %v5104_v5 = vld [vmem:[%s6599_s5] sm:$0xff] }
  0xe8   :  { %v3261_v50 = vsel %vm594_vm2, %v3185_v31, 0.0  ;;  %v6701_v7 = vrot.slane %v4727_v33, 7  ;;  %v878_v23 = vadd.f32 %v877_v39, %v876_v8  ;;  %v1131_v11 = vrot.slane %v5068_v26, 2  ;;  %2172 = vmatpush.msrb.mxu0 %v5096_v47  ;;  %v137_v39 = vld [vmem:[%s6599_s5 + $0x28] sm:$0xff]  ;;  %3823 = vmatpush.msra.mxu3 %v5096_v47 }
  0xe9   :  { %v859_v9 = vadd.f32 %v858_v58, %v857_v29  ;;  %v1121_v46 = vsel %vm1120_vm14, %v6700_v56, %v1118_v62  ;;  %v138_v62 = vld [vmem:[%s6599_s5 + $0x30] sm:$0xff]  ;;  %v5112_v15 = vadd.f32 %v3217_v44, %v3216_v40  ;;  %v5114_v31 = vadd.f32 %v3222_v21, %v3221_v35  ;;  %v5131_v35 = vld [vmem:[%s6595_s1] sm:$0xff] }
  0xea   :  { %v1124_v29 = vsel %vm1123_vm15, %v1122_v59, %v1121_v46  ;;  %v3229_v58 = vrot.slane %v3228_v12, 2  ;;  %v6703_v8 = vrot.slane %v4913_v53, 4  ;;  %v6704_v56 = vrot.slane %v4917_v34, 3  ;;  %2173 = vmatpush.msrb.mxu0 %v5104_v5  ;;  %656 = vmatpush.msra.mxu2 %v138_v62 }
  0xeb   :  { %v5091_v20 = vmul.f32 %v6701_v7, %v859_v9  ;;  %v3255_v9 = vrot.slane %v3254_v60, 4  ;;  %v3262_v21 = vrot.slane %v3261_v50, 4  ;;  %v3907_v19 = vunpack.i.h.bf16 %v3905_v27  ;;  %3763 = vmatmul.msk.f32.vlgmr.msrb.gmra.mxu0 %vm594_vm2, %v5131_v35  ;;  %3824 = vmatpush.msra.mxu3 %v5104_v5 }
  0xec   :  { %v1127_v59 = vsel %vm1126_vm0, %v6703_v8, %v1124_v29  ;;  %v136_v29 = vld [vmem:[%s6599_s5 + $0x20] sm:$0xff]  ;;  %v872_v62 = vrot.slane %v871_v36, 1  ;;  %v879_v8 = vrot.slane %v878_v23, 1  ;;  %657 = vmatpush.msra.mxu2 %v137_v39  ;;  %3718 = vmatmul.msk.f32.vlgmr.msra.gmra.mxu3 %vm594_vm2, %v4710_v2  ;;  %v3224_v63 = vrot.slane %v5114_v31, 1 }
  0xed   :  { %6702 = vst [vmem:[#allocation35_spill] sm:$0xff] %v5091_v20  ;;  %v1130_v46 = vsel %vm1129_vm1, %v6704_v56, %v1127_v59  ;;  %v1134_v40 = vrot.slane %v5091_v20, 1  ;;  %v3906_v56 = vunpack.i.l.bf16 %v3905_v27  ;;  %v881_v27 = vsel %vm594_vm2, %v4950_v38, 0.0 }
  0xee   :  { %v1133_v7 = vsel %vm1132_vm3, %v1131_v11, %v1130_v46  ;;  %v5145_v11 = vld [vmem:[%s6594_s0 + $0x70] sm:$0xff]  ;;  %v5150_v46 = vld [vmem:[%s6594_s0 + $0x78] sm:$0xff]  ;;  %v3256_v3 = vadd.f32 %v3255_v9, %v3254_v60  ;;  %v882_v54 = vrot.slane %v881_v27, 4  ;;  %658 = vmatpush.msra.mxu2 %v136_v29  ;;  %v3916_v44 = vunpack.i.l.bf16 %v3915_v22 }
  0xef   :  { %v1136_v59 = vsel %vm1135_vm4, %v1134_v40, %v1133_v7  ;;  %6705 = vst [vmem:[#allocation36_spill] sm:$0xff] %v5150_v46  ;;  %v5156_v40 = vadd.f32 %v3229_v58, %v3228_v12  ;;  %v3186_v7 = vmul.f32 %v3907_v19, %v4933_v32  ;;  %v3183_v39 = vmul.f32 %v3906_v56, %v4802_v55 }
  0xf0   :  { %3729 = vmatmul.msk.f32.vlgmr.msra.gmra.mxu1 %vm594_vm2, %v1136_v59  ;;  %v802_v12 = vmul.f32 %v5032_v16, %v5145_v11  ;;  %v803_v58 = vmul.f32 %v5016_v0, %v5150_v46  ;;  %1030 = vmatpush.msrb.mxu2 %v4754_v45  ;;  %v873_v38 = vadd.f32 %v872_v62, %v871_v36  ;;  %v6706_v9 = vrot.slane %v4942_v41, 2 }
  0xf1   :  { %v3268_v2 = vsel %vm594_vm2, %v3186_v7, 0.0  ;;  %v880_v19 = vadd.f32 %v879_v8, %v878_v23  ;;  %v5170_v59 = vadd.f32 %v3262_v21, %v3261_v50  ;;  %v883_v60 = vadd.f32 %v882_v54, %v881_v27  ;;  %v5182_v54 = vld [vmem:[%s6595_s1 + $0x8] sm:$0xff] }
  0xf2   :  { %v864_v29 = vadd.f32 %v6706_v9, %v4942_v41  ;;  %v3247_v56 = vsel %vm594_vm2, %v3183_v39, 0.0  ;;  %v902_v7 = vsel %vm594_vm2, %v802_v12, 0.0  ;;  %v909_v37 = vsel %vm594_vm2, %v803_v58, 0.0  ;;  %1031 = vmatpush.msrb.mxu2 %v4923_v25 }
  0xf3   :  { %v884_v13 = vrot.slane %v883_v60, 2  ;;  %v3269_v20 = vrot.slane %v3268_v2, 4  ;;  %v3917_v45 = vunpack.i.h.bf16 %v3915_v22  ;;  %v903_v36 = vrot.slane %v902_v7, 4  ;;  %3764 = vmatmul.msk.f32.gmra.mxu0 %vm594_vm2, %v5182_v54 }
  0xf4   :  { %v3257_v41 = vrot.slane %v3256_v3, 2  ;;  %v910_v23 = vrot.slane %v909_v37, 4  ;;  %v3189_v21 = vmul.f32 %v3916_v44, %v5145_v11  ;;  %1032 = vmatpush.msrb.mxu2 %v5096_v47  ;;  %v6707_v25 = vrot.slane %v4936_v48, 1  ;;  %3719 = vmatmul.msk.f32.gmra.mxu3 %vm594_vm2, %v4826_v28 }
  0xf5   :  { %v885_v62 = vadd.f32 %v884_v13, %v883_v60  ;;  %v3248_v8 = vrot.slane %v3247_v56, 4  ;;  %v904_v27 = vadd.f32 %v903_v36, %v902_v7  ;;  %v5196_v39 = vadd.f32 %v3224_v63, %v5114_v31 }
  0xf6   :  { %v5191_v22 = vmul.f32 %v6707_v25, %v873_v38  ;;  %v6708_v44 = vrot.slane %v4936_v48, 2  ;;  %v865_v58 = vrot.slane %v864_v29, 1  ;;  %v6709_v47 = vrot.slane %v5050_v52, 2  ;;  %1033 = vmatpush.msrb.mxu2 %v5104_v5 }
  0xf7   :  { %v886_v38 = vrot.slane %v885_v62, 1  ;;  %v3270_v60 = vadd.f32 %v3269_v20, %v3268_v2  ;;  %v3190_v28 = vmul.f32 %v3917_v45, %v5150_v46  ;;  %v3289_v63 = vsel %vm594_vm2, %v3189_v21, 0.0 }
  0xf8   :  { %v5200_v12 = vmul.f32 %v6708_v44, %v880_v19  ;;  %v899_v9 = vadd.f32 %v6709_v47, %v5050_v52  ;;  %v905_v7 = vrot.slane %v904_v27, 2  ;;  %v911_v36 = vadd.f32 %v910_v23, %v909_v37  ;;  %v78_v37 = vld [vmem:[%s6595_s1 + $0x10] sm:$0xff] }
  0xf9   :  { %v1137_v19 = vrot.slane %v5191_v22, 7  ;;  %v5210_v25 = vadd.f32 %v3257_v41, %v3256_v3  ;;  %v6638_v44 = vrot.slane %v4936_v48, 3  ;;  %v5213_v52 = vadd.f32 %v3248_v8, %v3247_v56 }
  0xfa   :  { %v900_v31 = vrot.slane %v899_v9, 1  ;;  %v1139_v5 = vrot.slane %v5200_v12, 6  ;;  %v866_v47 = vadd.f32 %v865_v58, %v864_v29  ;;  %v906_v13 = vadd.f32 %v905_v7, %v904_v27 }
  0xfb   :  { %v912_v20 = vrot.slane %v911_v36, 2  ;;  %v887_v2 = vadd.f32 %v886_v38, %v885_v62  ;;  %v3271_v45 = vrot.slane %v3270_v60, 2  ;;  %v3290_v50 = vrot.slane %v3289_v63, 4  ;;  %3765 = vmatmul.msk.f32.gmra.mxu0 %vm594_vm2, %v78_v37 }
  0xfc   :  { %v5217_v21 = vsel %vm594_vm2, %v3190_v28, 0.0  ;;  %v6710_v3 = vrot.slane %v5060_v10, 1  ;;  %v901_v41 = vadd.f32 %v900_v31, %v899_v9  ;;  %v907_v23 = vrot.slane %v906_v13, 1  ;;  %3720 = vmatmul.msk.f32.gmra.mxu3 %vm594_vm2, %v4863_v4 }
  0xfd   :  { %v913_v8 = vadd.f32 %v912_v20, %v911_v36  ;;  %v5227_v29 = vmul.f32 %v4936_v48, %v866_v47  ;;  %v5231_v62 = vmul.f32 %v6638_v44, %v887_v2  ;;  %v6637_v58 = vrot.slane %v4936_v48, 4  ;;  %v6716_v36 = vld [vmem:[#allocation15_spill] sm:$0xff] }
  0xfe   :  { %v894_v56 = vadd.f32 %v6710_v3, %v5060_v10  ;;  %v908_v10 = vadd.f32 %v907_v23, %v906_v13  ;;  %v6636_v38 = vrot.slane %v4936_v48, 5  ;;  %v6635_v28 = vrot.slane %v4936_v48, 6 }
  0xff   :  { %v914_v9 = vrot.slane %v913_v8, 1  ;;  %v5239_v31 = vadd.f32 %v3271_v45, %v3270_v60  ;;  %v5241_v7 = vadd.f32 %v3290_v50, %v3289_v63  ;;  %v6634_v47 = vrot.slane %v4936_v48, 7 }
 0x100   :  { %v5247_v3 = vmul.f32 %v6637_v58, %v894_v56  ;;  %v5251_v4 = vmul.f32 %v6636_v38, %v901_v41  ;;  %v5255_v13 = vmul.f32 %v6635_v28, %v908_v10  ;;  %v1138_v50 = vsel %vm1117_vm10, %v1137_v19, %v5227_v29 }
 0x101   :  { %v915_v2 = vadd.f32 %v914_v9, %v913_v8  ;;  %v1141_v60 = vrot.slane %v5231_v62, 5  ;;  %v1966_v63 = vmul.f32 %v4796_v14, %v5131_v35  ;;  %v1967_v45 = vmul.f32 %v4746_v42, %v5182_v54  ;;  %v79_v8 = vld [vmem:[%s6595_s1 + $0x18] sm:$0xff]  ;;  %v80_v35 = vld [vmem:[%s6595_s1 + $0x20] sm:$0xff]  ;;  %v5286_v9 = vld [vmem:[%s6595_s1 + $0x28] sm:$0xff] }
 0x102   :  { %6711 = vst [vmem:[#allocation37_spill] sm:$0xff] %v5247_v3  ;;  %v1140_v41 = vsel %vm1120_vm14, %v1139_v5, %v1138_v50  ;;  %v1143_v23 = vrot.slane %v5247_v3, 4  ;;  %v1145_v19 = vrot.slane %v5251_v4, 3  ;;  %v1147_v54 = vrot.slane %v5255_v13, 2 }
 0x103   :  { %6712 = vst [vmem:[#allocation38_spill] sm:$0xff] %v5251_v4  ;;  %v5268_v56 = vmul.f32 %v6634_v47, %v915_v2  ;;  %v1982_v10 = vsel %vm594_vm2, %v1966_v63, 0.0  ;;  %v1989_v5 = vsel %vm594_vm2, %v1967_v45, 0.0  ;;  %3766 = vmatmul.msk.f32.gmra.mxu0 %vm594_vm2, %v79_v8  ;;  %v1968_v63 = vmul.f32 %v4764_v18, %v78_v37  ;;  %v5309_v37 = vld [vmem:[%s6595_s1 + $0x38] sm:$0xff] }
 0x104   :  { %6713 = vst [vmem:[#allocation39_spill] sm:$0xff] %v5255_v13  ;;  %v1983_v50 = vrot.slane %v1982_v10, 4  ;;  %v1990_v47 = vrot.slane %v1989_v5, 4  ;;  %v1969_v45 = vmul.f32 %v4872_v1, %v79_v8  ;;  %3721 = vmatmul.msk.f32.gmra.mxu3 %vm594_vm2, %v4802_v55  ;;  %v1971_v28 = vmul.f32 %v6716_v36, %v5286_v9  ;;  %v6717_v8 = vld [vmem:[#allocation25_spill] sm:$0xff] }
 0x105   :  { %6714 = vst [vmem:[#allocation40_spill] sm:$0xff] %v5268_v56  ;;  %v1149_v2 = vrot.slane %v5268_v56, 1 }
 0x106   :  { %v501_v20 = vpop.f32.mrf.mxu0 }
 0x107   :  { %3697 = vmatmul.msk.f32.vlgmr.msra.gmra.mxu2 %vm594_vm2, %v501_v20 }
 0x108   :  { %2299 = vmatpush.msra.mxu2 %v4890_v49  ;;  %v1142_v49 = vsel %vm1123_vm15, %v1141_v60, %v1140_v41  ;;  %v6715_v41 = vld [vmem:[#allocation14_spill] sm:$0xff] }
 0x109   :  { %v1144_v20 = vsel %vm1126_vm0, %v1143_v23, %v1142_v49  ;;  %v1970_v27 = vmul.f32 %v6715_v41, %v80_v35  ;;  %v1984_v23 = vadd.f32 %v1983_v50, %v1982_v10  ;;  %v1991_v49 = vadd.f32 %v1990_v47, %v1989_v5 }
 0x10a   :  { %2300 = vmatpush.msra.mxu2 %v4895_v61  ;;  %v1146_v60 = vsel %vm1129_vm1, %v1145_v19, %v1144_v20  ;;  %v5304_v19 = vld [vmem:[%s6595_s1 + $0x30] sm:$0xff]  ;;  %v1996_v47 = vsel %vm594_vm2, %v1968_v63, 0.0  ;;  %v2003_v10 = vsel %vm594_vm2, %v1969_v45, 0.0  ;;  %v6720_v45 = vld [vmem:[#allocation32_spill] sm:$0xff] }
 0x10b   :  { %v1148_v61 = vsel %vm1132_vm3, %v1147_v54, %v1146_v60  ;;  %v2010_v5 = vsel %vm594_vm2, %v1970_v27, 0.0  ;;  %v1985_v20 = vrot.slane %v1984_v23, 2  ;;  %v1992_v50 = vrot.slane %v1991_v49, 2  ;;  %v6719_v63 = vld [vmem:[#allocation22_spill] sm:$0xff]  ;;  %3767 = vmatmul.msk.f32.gmra.mxu0 %vm594_vm2, %v80_v35  ;;  %v5332_v35 = vld [vmem:[%s6595_s1 + $0x40] sm:$0xff] }
 0x10c   :  { %2301 = vmatpush.msra.mxu2 %v6717_v8  ;;  %v1150_v55 = vsel %vm1135_vm4, %v1149_v2, %v1148_v61  ;;  %v1997_v60 = vrot.slane %v1996_v47, 4  ;;  %v2004_v38 = vrot.slane %v2003_v10, 4  ;;  %v2011_v58 = vrot.slane %v2010_v5, 4  ;;  %v6718_v2 = vld [vmem:[#allocation20_spill] sm:$0xff]  ;;  %3722 = vmatmul.msk.f32.gmra.mxu3 %vm594_vm2, %v5024_v6 }
 0x10d   :  { %3730 = vmatmul.msk.f32.gmra.mxu1 %vm594_vm2, %v1150_v55  ;;  %v2017_v8 = vsel %vm594_vm2, %v1971_v28, 0.0  ;;  %v1972_v61 = vmul.f32 %v6718_v2, %v5304_v19  ;;  %v1973_v44 = vmul.f32 %v6719_v63, %v5309_v37  ;;  %v1986_v27 = vadd.f32 %v1985_v20, %v1984_v23 }
 0x10e   :  { %v504_v54 = vpop.f32.mrf.mxu0  ;;  %2302 = vmatpush.msra.mxu2 %v6720_v45  ;;  %v1993_v36 = vadd.f32 %v1992_v50, %v1991_v49  ;;  %v1998_v55 = vadd.f32 %v1997_v60, %v1996_v47  ;;  %v2005_v1 = vadd.f32 %v2004_v38, %v2003_v10  ;;  %v2018_v41 = vrot.slane %v2017_v8, 4 }
 0x10f   :  { %3698 = vmatmul.msk.f32.gmra.mxu2 %vm594_vm2, %v504_v54  ;;  %v2012_v54 = vadd.f32 %v2011_v58, %v2010_v5  ;;  %v2024_v18 = vsel %vm594_vm2, %v1972_v61, 0.0  ;;  %v2031_v14 = vsel %vm594_vm2, %v1973_v44, 0.0  ;;  %v1987_v42 = vrot.slane %v1986_v27, 1 }
 0x110   :  { %v1994_v28 = vrot.slane %v1993_v36, 1  ;;  %v1999_v56 = vrot.slane %v1998_v55, 2  ;;  %v2006_v13 = vrot.slane %v2005_v1, 2  ;;  %v2019_v63 = vadd.f32 %v2018_v41, %v2017_v8  ;;  %v6722_v8 = vld [vmem:[#allocation18_spill] sm:$0xff] }
 0x111   :  { %v2013_v2 = vrot.slane %v2012_v54, 2  ;;  %v2025_v4 = vrot.slane %v2024_v18, 4  ;;  %v2032_v45 = vrot.slane %v2031_v14, 4  ;;  %v1988_v38 = vadd.f32 %v1987_v42, %v1986_v27 }
 0x112   :  { %v1995_v58 = vadd.f32 %v1994_v28, %v1993_v36  ;;  %v2000_v23 = vadd.f32 %v1999_v56, %v1998_v55  ;;  %v2007_v49 = vadd.f32 %v2006_v13, %v2005_v1  ;;  %v2020_v44 = vrot.slane %v2019_v63, 2  ;;  %v5343_v28 = vld [vmem:[%s6595_s1 + $0x48] sm:$0xff] }
 0x113   :  { %v2014_v10 = vadd.f32 %v2013_v2, %v2012_v54  ;;  %v2026_v5 = vadd.f32 %v2025_v4, %v2024_v18  ;;  %v2033_v20 = vadd.f32 %v2032_v45, %v2031_v14  ;;  %v2094_v41 = vmul.f32 %v1988_v38, %v4727_v33  ;;  %3768 = vmatmul.msk.f32.gmra.mxu0 %vm594_vm2, %v5286_v9  ;;  %v5373_v9 = vld [vmem:[%s6595_s1 + $0x58] sm:$0xff] }
 0x114   :  { %v6721_v6 = vrot.slane %v4727_v33, 1  ;;  %v2001_v36 = vrot.slane %v2000_v23, 1  ;;  %v2008_v56 = vrot.slane %v2007_v49, 1  ;;  %v2021_v13 = vadd.f32 %v2020_v44, %v2019_v63  ;;  %3723 = vmatmul.msk.f32.gmra.mxu3 %vm594_vm2, %v5029_v57  ;;  %6726 = vst [vmem:[#allocation25_spill] sm:$0xff] %v5373_v9  ;;  %v5382_v57 = vld [vmem:[%s6595_s1 + $0x60] sm:$0xff] }
 0x115   :  { %v2015_v1 = vrot.slane %v2014_v10, 1  ;;  %v2027_v50 = vrot.slane %v2026_v5, 2  ;;  %v2034_v60 = vrot.slane %v2033_v20, 2  ;;  %v1974_v2 = vmul.f32 %v6722_v8, %v5332_v35  ;;  %6728 = vst [vmem:[#allocation32_spill] sm:$0xff] %v5382_v57 }
 0x116   :  { %v507_v47 = vpop.f32.mrf.mxu0  ;;  %v2095_v42 = vmul.f32 %v1995_v58, %v6721_v6  ;;  %v2002_v14 = vadd.f32 %v2001_v36, %v2000_v23  ;;  %v2009_v4 = vadd.f32 %v2008_v56, %v2007_v49  ;;  %v2022_v27 = vrot.slane %v2021_v13, 1  ;;  %v6727_v56 = vld [vmem:[#allocation29_spill] sm:$0xff] }
 0x117   :  { %3699 = vmatmul.msk.f32.gmra.mxu2 %vm594_vm2, %v507_v47  ;;  %v2016_v61 = vadd.f32 %v2015_v1, %v2014_v10  ;;  %v2028_v55 = vadd.f32 %v2027_v50, %v2026_v5  ;;  %v2035_v54 = vadd.f32 %v2034_v60, %v2033_v20  ;;  %v6723_v63 = vrot.slane %v4727_v33, 2  ;;  %v6735_v60 = vld [vmem:[#allocation30_spill] sm:$0xff] }
 0x118   :  { %v2255_v18 = vrot.slane %v2095_v42, 7  ;;  %v6724_v58 = vrot.slane %v4727_v33, 3  ;;  %v2038_v49 = vsel %vm594_vm2, %v1974_v2, 0.0  ;;  %v6725_v47 = vrot.slane %v4727_v33, 4 }
 0x119   :  { %v5350_v38 = vmul.f32 %v2002_v14, %v6723_v63  ;;  %v2023_v44 = vadd.f32 %v2022_v27, %v2021_v13  ;;  %v2029_v5 = vrot.slane %v2028_v55, 1  ;;  %v2036_v20 = vrot.slane %v2035_v54, 1  ;;  %v5387_v13 = vld [vmem:[%s6595_s1 + $0x68] sm:$0xff] }
 0x11a   :  { %v5346_v45 = vsel %vm1117_vm10, %v2255_v18, %v2094_v41  ;;  %v5354_v23 = vmul.f32 %v2009_v4, %v6724_v58  ;;  %v5361_v10 = vmul.f32 %v2016_v61, %v6725_v47  ;;  %v5368_v41 = vld [vmem:[%s6595_s1 + $0x50] sm:$0xff]  ;;  %v2039_v36 = vrot.slane %v2038_v49, 4  ;;  %6729 = vst [vmem:[#allocation41_spill] sm:$0xff] %v5387_v13 }
 0x11b   :  { %v1975_v1 = vmul.f32 %v6727_v56, %v5343_v28  ;;  %v6730_v18 = vrot.slane %v4727_v33, 5  ;;  %v5394_v4 = vadd.f32 %v2029_v5, %v2028_v55  ;;  %v5396_v2 = vadd.f32 %v2036_v20, %v2035_v54  ;;  %v5401_v61 = vld [vmem:[%s6595_s1 + $0x70] sm:$0xff]  ;;  %v6734_v5 = vld [vmem:[#allocation27_spill] sm:$0xff]  ;;  %3769 = vmatmul.msk.f32.gmra.mxu0 %vm594_vm2, %v5304_v19 }
 0x11c   :  { %6731 = vst [vmem:[#allocation42_spill] sm:$0xff] %v5401_v61  ;;  %v2040_v27 = vadd.f32 %v2039_v36, %v2038_v49  ;;  %v6732_v58 = vld [vmem:[#allocation26_spill] sm:$0xff]  ;;  %v1978_v20 = vmul.f32 %v6734_v5, %v5382_v57  ;;  %v1979_v42 = vmul.f32 %v6735_v60, %v5387_v13  ;;  %v5422_v5 = vld [vmem:[%s6595_s1 + $0x78] sm:$0xff]  ;;  %3724 = vmatmul.msk.f32.gmra.mxu3 %vm594_vm2, %v4933_v32 }
 0x11d   :  { %v5392_v14 = vmul.f32 %v2023_v44, %v6730_v18  ;;  %v2045_v63 = vsel %vm594_vm2, %v1975_v1, 0.0  ;;  %v1976_v47 = vmul.f32 %v6732_v58, %v5368_v41  ;;  %v6733_v44 = vld [vmem:[#allocation24_spill] sm:$0xff]  ;;  %v1980_v1 = vmul.f32 %v5032_v16, %v5401_v61  ;;  %6736 = vst [vmem:[#allocation43_spill] sm:$0xff] %v5422_v5 }
 0x11e   :  { %v510_v50 = vpop.f32.mrf.mxu0  ;;  %v1977_v18 = vmul.f32 %v6733_v44, %v5373_v9  ;;  %v2046_v54 = vrot.slane %v2045_v63, 4  ;;  %v2041_v6 = vrot.slane %v2040_v27, 2  ;;  %v2066_v55 = vsel %vm594_vm2, %v1978_v20, 0.0 }
 0x11f   :  { %3700 = vmatmul.msk.f32.gmra.mxu2 %vm594_vm2, %v510_v50  ;;  %v2052_v49 = vsel %vm594_vm2, %v1976_v47, 0.0  ;;  %v2067_v47 = vrot.slane %v2066_v55, 4  ;;  %v2080_v58 = vsel %vm594_vm2, %v1980_v1, 0.0  ;;  %v1981_v57 = vmul.f32 %v5016_v0, %v5422_v5 }
 0x120   :  { %v2059_v36 = vsel %vm594_vm2, %v1977_v18, 0.0  ;;  %v2047_v50 = vadd.f32 %v2046_v54, %v2045_v63  ;;  %v2053_v8 = vrot.slane %v2052_v49, 4  ;;  %v2042_v60 = vadd.f32 %v2041_v6, %v2040_v27 }
 0x121   :  { %v2060_v44 = vrot.slane %v2059_v36, 4  ;;  %v2073_v18 = vsel %vm594_vm2, %v1979_v42, 0.0  ;;  %v2068_v61 = vadd.f32 %v2067_v47, %v2066_v55  ;;  %v2081_v13 = vrot.slane %v2080_v58, 4 }
 0x122   :  { %v2048_v16 = vrot.slane %v2047_v50, 2  ;;  %v2054_v63 = vadd.f32 %v2053_v8, %v2052_v49  ;;  %v2074_v20 = vrot.slane %v2073_v18, 4  ;;  %v2043_v56 = vrot.slane %v2042_v60, 1  ;;  %v147_v8 = vld [vmem:[%s6599_s5 + $0x78] sm:$0xff] }
 0x123   :  { %v2061_v54 = vadd.f32 %v2060_v44, %v2059_v36  ;;  %v2069_v44 = vrot.slane %v2068_v61, 2  ;;  %v2082_v49 = vadd.f32 %v2081_v13, %v2080_v58  ;;  %v2087_v55 = vsel %vm594_vm2, %v1981_v57, 0.0  ;;  %2370 = vmatpush.msrb.mxu3 %v147_v8  ;;  %1239 = vmatpush.msrb.mxu1 %v147_v8 }
 0x124   :  { %v2049_v6 = vadd.f32 %v2048_v16, %v2047_v50  ;;  %v2055_v27 = vrot.slane %v2054_v63, 2  ;;  %v2075_v42 = vadd.f32 %v2074_v20, %v2073_v18  ;;  %v2044_v32 = vadd.f32 %v2043_v56, %v2042_v60  ;;  %3770 = vmatmul.msk.f32.gmra.mxu0 %vm594_vm2, %v5309_v37 }
 0x125   :  { %v2062_v9 = vrot.slane %v2061_v54, 2  ;;  %v2070_v50 = vadd.f32 %v2069_v44, %v2068_v61  ;;  %v2083_v18 = vrot.slane %v2082_v49, 2  ;;  %v2088_v20 = vrot.slane %v2087_v55, 4 }
 0x126   :  { %v513_v19 = vpop.f32.mrf.mxu0  ;;  %v2050_v36 = vrot.slane %v2049_v6, 1  ;;  %v2056_v1 = vadd.f32 %v2055_v27, %v2054_v63  ;;  %v2076_v0 = vrot.slane %v2075_v42, 2  ;;  %v2102_v16 = vmul.f32 %v2044_v32, %v4936_v48  ;;  %v6739_v27 = vld [vmem:[#allocation28_spill] sm:$0xff] }
 0x127   :  { %3701 = vmatmul.msk.f32.gmra.mxu2 %vm594_vm2, %v513_v19  ;;  %v2063_v47 = vadd.f32 %v2062_v9, %v2061_v54  ;;  %v2071_v56 = vrot.slane %v2070_v50, 1  ;;  %v2084_v57 = vadd.f32 %v2083_v18, %v2082_v49  ;;  %v2089_v13 = vadd.f32 %v2088_v20, %v2087_v55  ;;  %3725 = vmatmul.msk.f32.gmra.mxu3 %vm594_vm2, %v6739_v27 }
 0x128   :  { %v2051_v19 = vadd.f32 %v2050_v36, %v2049_v6  ;;  %v2057_v5 = vrot.slane %v2056_v1, 1  ;;  %v2077_v3 = vadd.f32 %v2076_v0, %v2075_v42  ;;  %v6737_v60 = vrot.slane %v4727_v33, 6 }
 0x129   :  { %v2064_v46 = vrot.slane %v2063_v47, 1  ;;  %v6738_v58 = vrot.slane %v4936_v48, 1  ;;  %v2072_v0 = vadd.f32 %v2071_v56, %v2070_v50  ;;  %v2085_v42 = vrot.slane %v2084_v57, 1 }
 0x12a   :  { %v2100_v9 = vmul.f32 %v5394_v4, %v6737_v60  ;;  %v2058_v61 = vadd.f32 %v2057_v5, %v2056_v1  ;;  %v2078_v6 = vrot.slane %v2077_v3, 1  ;;  %v2090_v8 = vrot.slane %v2089_v13, 2 }
 0x12b   :  { %v2103_v63 = vmul.f32 %v2051_v19, %v6738_v58  ;;  %v2065_v54 = vadd.f32 %v2064_v46, %v2063_v47  ;;  %v6740_v37 = vrot.slane %v4727_v33, 7  ;;  %v6741_v4 = vrot.slane %v4936_v48, 2 }
 0x12c   :  { %v6742_v36 = vrot.slane %v4936_v48, 3  ;;  %v2079_v46 = vadd.f32 %v2078_v6, %v2077_v3  ;;  %v6743_v1 = vrot.slane %v4936_v48, 4  ;;  %v6744_v50 = vrot.slane %v5350_v38, 6  ;;  %3771 = vmatmul.msk.f32.gmra.mxu0 %vm594_vm2, %v5332_v35 }
 0x12d   :  { %v2101_v32 = vmul.f32 %v5396_v2, %v6740_v37  ;;  %v2269_v49 = vrot.slane %v2103_v63, 7  ;;  %v2104_v55 = vmul.f32 %v2058_v61, %v6741_v4  ;;  %v2265_v2 = vrot.slane %v2100_v9, 2  ;;  %v6751_v37 = vld [vmem:[#allocation31_spill] sm:$0xff] }
 0x12e   :  { %v516_v44 = vpop.f32.mrf.mxu0  ;;  %v2105_v5 = vmul.f32 %v2065_v54, %v6742_v36  ;;  %v2106_v47 = vmul.f32 %v2072_v0, %v6743_v1  ;;  %v2258_v33 = vsel %vm1120_vm14, %v6744_v50, %v5346_v45  ;;  %v6745_v56 = vrot.slane %v5354_v23, 5 }
 0x12f   :  { %3702 = vmatmul.msk.f32.gmra.mxu2 %vm594_vm2, %v516_v44  ;;  %v2267_v18 = vrot.slane %v2101_v32, 1  ;;  %v2271_v20 = vrot.slane %v2104_v55, 6  ;;  %v2086_v58 = vadd.f32 %v2085_v42, %v2084_v57  ;;  %v6746_v3 = vrot.slane %v5361_v10, 4  ;;  %3726 = vmatmul.msk.f32.gmra.mxu3 %vm594_vm2, %v6751_v37 }
 0x130   :  { %v2273_v19 = vrot.slane %v2105_v5, 5  ;;  %v2260_v60 = vsel %vm1123_vm15, %v6745_v56, %v2258_v33  ;;  %v2091_v61 = vadd.f32 %v2090_v8, %v2089_v13  ;;  %v6747_v54 = vrot.slane %v4936_v48, 5 }
 0x131   :  { %v2262_v63 = vsel %vm1126_vm0, %v6746_v3, %v2260_v60  ;;  %v2270_v38 = vsel %vm1117_vm10, %v2269_v49, %v2102_v16  ;;  %v6748_v45 = vrot.slane %v5392_v14, 3  ;;  %v6749_v6 = vrot.slane %v4936_v48, 6 }
 0x132   :  { %v2107_v27 = vmul.f32 %v2079_v46, %v6747_v54  ;;  %v2272_v0 = vsel %vm1120_vm14, %v2271_v20, %v2270_v38  ;;  %v2275_v57 = vrot.slane %v2106_v47, 4  ;;  %v2092_v13 = vrot.slane %v2091_v61, 1 }
 0x133   :  { %v2264_v9 = vsel %vm1129_vm1, %v6748_v45, %v2262_v63  ;;  %v2108_v23 = vmul.f32 %v2086_v58, %v6749_v6  ;;  %v2274_v42 = vsel %vm1123_vm15, %v2273_v19, %v2272_v0  ;;  %v6750_v14 = vrot.slane %v5217_v21, 4 }
 0x134   :  { %v2266_v10 = vsel %vm1132_vm3, %v2265_v2, %v2264_v9  ;;  %v2277_v8 = vrot.slane %v2107_v27, 3  ;;  %v2276_v44 = vsel %vm1126_vm0, %v2275_v57, %v2274_v42  ;;  %v6752_v35 = vrot.slane %v5156_v40, 1  ;;  %3772 = vmatmul.msk.f32.gmra.mxu0 %vm594_vm2, %v5343_v28 }
 0x135   :  { %v3298_v16 = vadd.f32 %v6750_v14, %v5217_v21  ;;  %v5486_v32 = vsel %vm1135_vm4, %v2267_v18, %v2266_v10  ;;  %v2279_v49 = vrot.slane %v2108_v23, 2  ;;  %v6753_v55 = vrot.slane %v5170_v59, 2 }
 0x136   :  { %v3232_v4 = vadd.f32 %v6752_v35, %v5156_v40  ;;  %v2093_v5 = vadd.f32 %v2092_v13, %v2091_v61  ;;  %v2278_v21 = vsel %vm1129_vm1, %v2277_v8, %v2276_v44  ;;  %v6754_v46 = vsub.f32 %v5064_v43, %v5112_v15  ;;  %v519_v2 = vpop.f32.mrf.mxu0  ;;  %v6760_v44 = vld [vmem:[#allocation37_spill] sm:$0xff]  ;;  %v6761_v35 = vld [vmem:[#allocation36_spill] sm:$0xff] }
 0x137   :  { %v3265_v36 = vadd.f32 %v6753_v55, %v5170_v59  ;;  %v6755_v47 = vrot.slane %v5213_v52, 2  ;;  %v3292_v33 = vrot.slane %v5241_v7, 2  ;;  %v2280_v40 = vsel %vm1132_vm3, %v2279_v49, %v2278_v21  ;;  %3703 = vmatmul.msk.f32.gmra.mxu2 %vm594_vm2, %v519_v2  ;;  %3727 = vmatmul.msk.f32.gmra.mxu3 %vm594_vm2, %v5145_v11 }
 0x138   :  { %v3368_v1 = vrot.slane %v6754_v46, 5  ;;  %v6756_v18 = vrot.slane %v5034_v17, 1  ;;  %v6757_v20 = vrot.slane %v5052_v24, 2  ;;  %v6758_v43 = vrot.slane %v5055_v51, 2  ;;  %v6764_v46 = vld [vmem:[#allocation40_spill] sm:$0xff] }
 0x139   :  { %v3251_v50 = vadd.f32 %v6755_v47, %v5213_v52  ;;  %v6759_v52 = vrot.slane %v4936_v48, 7  ;;  %v3307_v60 = vsub.f32 %v4913_v53, %v5196_v39  ;;  %v3259_v58 = vrot.slane %v5210_v25, 1 }
 0x13a   :  { %v3239_v59 = vadd.f32 %v6756_v18, %v5034_v17  ;;  %v3279_v19 = vadd.f32 %v6757_v20, %v5052_v24  ;;  %v3286_v15 = vadd.f32 %v6758_v43, %v5055_v51  ;;  %v3273_v17 = vrot.slane %v5239_v31, 1 }
 0x13b   :  { %v2109_v56 = vmul.f32 %v2093_v5, %v6759_v52  ;;  %v3299_v3 = vrot.slane %v3298_v16, 2  ;;  %v3308_v63 = vsub.f32 %v4917_v34, %v3232_v4  ;;  %v3266_v24 = vrot.slane %v3265_v36, 1 }
 0x13c   :  { %v3252_v54 = vrot.slane %v3251_v50, 1  ;;  %v3293_v51 = vadd.f32 %v3292_v33, %v5241_v7  ;;  %v3369_v27 = vsel %vm1123_vm15, %v3368_v1, %v5058_v30  ;;  %v3309_v48 = vsub.f32 %v5068_v26, %v3239_v59  ;;  %3773 = vmatmul.msk.f32.gmra.mxu0 %vm594_vm2, %v5368_v41 }
 0x13d   :  { %v2281_v61 = vrot.slane %v2109_v56, 1  ;;  %v3280_v38 = vrot.slane %v3279_v19, 1  ;;  %v3287_v45 = vrot.slane %v3286_v15, 1  ;;  %v3370_v39 = vrot.slane %v3307_v60, 4  ;;  %v146_v56 = vld [vmem:[%s6599_s5 + $0x70] sm:$0xff]  ;;  %v6766_v60 = vld [vmem:[#allocation32_spill] sm:$0xff] }
 0x13e   :  { %v3260_v34 = vadd.f32 %v3259_v58, %v5210_v25  ;;  %v3274_v9 = vadd.f32 %v3273_v17, %v5239_v31  ;;  %v3300_v6 = vadd.f32 %v3299_v3, %v3298_v16  ;;  %v3372_v30 = vrot.slane %v3308_v63, 3  ;;  %v522_v0 = vpop.f32.mrf.mxu0  ;;  %2371 = vmatpush.msrb.mxu3 %v146_v56  ;;  %1240 = vmatpush.msrb.mxu1 %v146_v56  ;;  %v534_v58 = vpop.f32.mrf.mxu1  ;;  %v6767_v3 = vld [vmem:[#allocation41_spill] sm:$0xff] }
 0x13f   :  { %v5528_v53 = vsel %vm1135_vm4, %v2281_v61, %v2280_v40  ;;  %v3267_v7 = vadd.f32 %v3266_v24, %v3265_v36  ;;  %v3253_v26 = vadd.f32 %v3252_v54, %v3251_v50  ;;  %v3294_v23 = vrot.slane %v3293_v51, 1  ;;  %3704 = vmatmul.msk.f32.gmra.mxu2 %vm594_vm2, %v522_v0  ;;  %3728 = vmatmul.msk.f32.gmra.mxu3 %vm594_vm2, %v6761_v35  ;;  %v6768_v24 = vld [vmem:[#allocation42_spill] sm:$0xff]  ;;  %v6769_v54 = vld [vmem:[#allocation43_spill] sm:$0xff] }
 0x140   :  { %v3374_v57 = vrot.slane %v3309_v48, 2  ;;  %v3281_v10 = vadd.f32 %v3280_v38, %v3279_v19  ;;  %v3288_v28 = vadd.f32 %v3287_v45, %v3286_v15  ;;  %v3312_v13 = vsub.f32 %v5191_v22, %v3260_v34  ;;  %v6765_v19 = vld [vmem:[#allocation25_spill] sm:$0xff]  ;;  %v4129_v35 = vld [vmem:[%s6594_s0 + $0x18] sm:$0xff] }
 0x141   :  { %v3314_v25 = vsub.f32 %v5231_v62, %v3274_v9  ;;  %v3301_v42 = vrot.slane %v3300_v6, 1  ;;  %v3371_v31 = vsel %vm1126_vm0, %v3370_v39, %v3369_v27  ;;  %v3313_v8 = vsub.f32 %v5200_v12, %v3267_v7  ;;  %v6762_v12 = vld [vmem:[#allocation38_spill] sm:$0xff]  ;;  %v144_v27 = vld [vmem:[%s6599_s5 + $0x60] sm:$0xff] }
 0x142   :  { %v3373_v11 = vsel %vm1129_vm1, %v3372_v30, %v3371_v31  ;;  %v3311_v14 = vsub.f32 %v5227_v29, %v3253_v26  ;;  %v3295_v16 = vadd.f32 %v3294_v23, %v3293_v51  ;;  %v3315_v22 = vsub.f32 %v6760_v44, %v3281_v10  ;;  %v6763_v29 = vld [vmem:[#allocation39_spill] sm:$0xff]  ;;  %v145_v51 = vld [vmem:[%s6599_s5 + $0x68] sm:$0xff]  ;;  %v5588_v9 = vld [vmem:[#allocation5] sm:$0x3f] }
 0x143   :  { %v5542_v37 = vsel %vm1132_vm3, %v3374_v57, %v3373_v11  ;;  %v3378_v49 = vrot.slane %v3312_v13, 7  ;;  %v3382_v62 = vrot.slane %v3314_v25, 5  ;;  %v3302_v4 = vadd.f32 %v3301_v42, %v3300_v6  ;;  %2372 = vmatpush.msrb.mxu3 %v145_v51  ;;  %1241 = vmatpush.msrb.mxu1 %v145_v51  ;;  %v4126_v30 = vld [vmem:[%s6594_s0] sm:$0xff]  ;;  %v4127_v57 = vld [vmem:[%s6594_s0 + $0x8] sm:$0xff]  ;;  %v4128_v31 = vld [vmem:[%s6594_s0 + $0x10] sm:$0xff] }
 0x144   :  { %v3316_v55 = vsub.f32 %v6762_v12, %v3288_v28  ;;  %v3380_v36 = vrot.slane %v3313_v8, 6  ;;  %v3317_v21 = vsub.f32 %v6763_v29, %v3295_v16  ;;  %v3384_v50 = vrot.slane %v3315_v22, 4  ;;  %3774 = vmatmul.msk.f32.gmra.mxu0 %vm594_vm2, %v6765_v19  ;;  %v155_v8 = vld [vmem:[%s6599_s5 + $0xb8] sm:$0xff]  ;;  %v154_v16 = vld [vmem:[%s6599_s5 + $0xb0] sm:$0xff]  ;;  %v152_v12 = vld [vmem:[%s6599_s5 + $0xa0] sm:$0xff] }
 0x145   :  { %v3318_v1 = vsub.f32 %v6764_v46, %v3302_v4  ;;  %v3379_v47 = vsel %vm1117_vm10, %v3378_v49, %v3311_v14  ;;  %2373 = vmatpush.msrb.mxu3 %v144_v27  ;;  %1242 = vmatpush.msrb.mxu1 %v144_v27  ;;  %v5591_v6 = vperm.slane %v5588_v9, 0  ;;  %v153_v4 = vld [vmem:[%s6599_s5 + $0xa8] sm:$0xff] }
 0x146   :  { %v525_v5 = vpop.f32.mrf.mxu0  ;;  %v3381_v41 = vsel %vm1120_vm14, %v3380_v36, %v3379_v47  ;;  %v3386_v2 = vrot.slane %v3316_v55, 3  ;;  %v3388_v40 = vrot.slane %v3317_v21, 2  ;;  %v537_v63 = vpop.f32.mrf.mxu1  ;;  %v4130_v21 = vld [vmem:[%s6594_s0 + $0x20] sm:$0xff] }
 0x147   :  { %3705 = vmatmul.msk.f32.gmra.mxu2 %vm594_vm2, %v525_v5  ;;  %v3383_v33 = vsel %vm1123_vm15, %v3382_v62, %v3381_v41  ;;  %v3390_v20 = vrot.slane %v3318_v1, 1 }
 0x148   :  { %v3385_v18 = vsel %vm1126_vm0, %v3384_v50, %v3383_v33 }
 0x149   :  { %v3387_v59 = vsel %vm1129_vm1, %v3386_v2, %v3385_v18 }
 0x14a   :  { %v3389_v43 = vsel %vm1132_vm3, %v3388_v40, %v3387_v59 }
 0x14b   :  { %v5562_v15 = vsel %vm1135_vm4, %v3390_v20, %v3389_v43 }
 0x14c   :  { %3775 = vmatmul.msk.f32.gmra.mxu0 %vm594_vm2, %v6766_v60 }
 0x14e   :  { %v528_v52 = vpop.f32.mrf.mxu0  ;;  %v540_v61 = vpop.f32.mrf.mxu1 }
 0x14f   :  { %3706 = vmatmul.msk.f32.gmra.mxu2 %vm594_vm2, %v528_v52 }
 0x154   :  { %3776 = vmatmul.msk.f32.gmra.mxu0 %vm594_vm2, %v6767_v3 }
 0x156   :  { %v531_v17 = vpop.f32.mrf.mxu0  ;;  %v543_v38 = vpop.f32.mrf.mxu1 }
 0x157   :  { %3707 = vmatmul.msk.f32.gmra.mxu2 %vm594_vm2, %v531_v17 }
 0x15c   :  { %3777 = vmatmul.msk.f32.gmra.mxu0 %vm594_vm2, %v6768_v24 }
 0x15e   :  { %v546_v39 = vpop.f32.mrf.mxu1 }
 0x15f   :  { %3708 = vmatmul.msk.f32.gmra.mxu2 %vm594_vm2, %v534_v58 }
 0x164   :  { %3778 = vmatmul.msk.f32.gmra.mxu0 %vm594_vm2, %v6769_v54 }
 0x166   :  { %v587_v56 = vpop.f32.mrf.mxu1 }
 0x167   :  { %3709 = vmatmul.msk.f32.gmra.mxu2 %vm594_vm2, %v537_v63 }
 0x168   :  { %v2175_v48 = vpop.f32.mrf.mxu0 }
 0x16e   :  { %v590_v54 = vpop.f32.mrf.mxu1 }
 0x16f   :  { %3710 = vmatmul.msk.f32.gmra.mxu2 %vm594_vm2, %v540_v61  ;;  %v5624_v49 = vpop.f32.mrf.mxu3 }
 0x170   :  { %v2178_v45 = vpop.f32.mrf.mxu0 }
 0x177   :  { %3711 = vmatmul.msk.f32.gmra.mxu2 %vm594_vm2, %v543_v38  ;;  %v5646_v46 = vpop.f32.mrf.mxu3 }
 0x178   :  { %v2181_v34 = vpop.f32.mrf.mxu0 }
 0x17f   :  { %3712 = vmatmul.msk.f32.gmra.mxu2 %vm594_vm2, %v546_v39  ;;  %v5655_v2 = vpop.f32.mrf.mxu3 }
 0x180   :  { %v2184_v26 = vpop.f32.mrf.mxu0 }
 0x187   :  { %3713 = vmatmul.msk.f32.vlgmr.msrb.gmra.mxu2 %vm594_vm2, %v4126_v30 }
 0x188   :  { %v2187_v13 = vpop.f32.mrf.mxu0  ;;  %3337 = vmatpush.msrb.mxu2 %v155_v8 }
 0x18a   :  { %v660_v7 = vpop.f32.mrf.mxu2  ;;  %3338 = vmatpush.msrb.mxu2 %v154_v16 }
 0x18b   :  { %v5598_v23 = vadd.f32 %v660_v7, %v5591_v6 }
 0x18c   :  { %3339 = vmatpush.msrb.mxu2 %v153_v4 }
 0x18d   :  { %v2176_v0 = vadd.f32 %v2175_v48, %v5598_v23 }
 0x18e   :  { %3340 = vmatpush.msrb.mxu2 %v152_v12 }
 0x18f   :  { %3922 = vtanh.f32 %v2176_v0  ;;  %3714 = vmatmul.msk.f32.gmra.mxu2 %vm594_vm2, %v4127_v57 }
 0x190   :  { %v2190_v62 = vpop.f32.mrf.mxu0 }
 0x192   :  { %v663_v10 = vpop.f32.mrf.mxu2 }
 0x193   :  { %v5606_v28 = vadd.f32 %v663_v10, %v5591_v6 }
 0x195   :  { %v3923_v25 = vpop.eup %3922  ;;  %v2179_v42 = vadd.f32 %v2178_v45, %v5606_v28 }
 0x196   :  { %3781 = vmatmul.msk.f32.vlgmr.msrb.gmra.mxu3 %vm594_vm2, %v3923_v25 }
 0x197   :  { %3924 = vtanh.f32 %v2179_v42  ;;  %3715 = vmatmul.msk.f32.gmra.mxu2 %vm594_vm2, %v4128_v31 }
 0x198   :  { %v2193_v1 = vpop.f32.mrf.mxu0 }
 0x19a   :  { %v666_v11 = vpop.f32.mrf.mxu2 }
 0x19b   :  { %v5618_v14 = vadd.f32 %v666_v11, %v5591_v6 }
 0x19d   :  { %v3925_v44 = vpop.eup %3924  ;;  %v2182_v22 = vadd.f32 %v2181_v34, %v5618_v14 }
 0x19e   :  { %3782 = vmatmul.msk.f32.gmra.mxu3 %vm594_vm2, %v3925_v44 }
 0x19f   :  { %3926 = vtanh.f32 %v2182_v22  ;;  %3716 = vmatmul.msk.f32.gmra.mxu2 %vm594_vm2, %v4129_v35 }
 0x1a1   :  { %v2196_v18 = vpop.f32.mrf.mxu0 }
 0x1a2   :  { %v669_v55 = vpop.f32.mrf.mxu2 }
 0x1a3   :  { %v5638_v36 = vadd.f32 %v669_v55, %v5591_v6 }
 0x1a5   :  { %v3927_v5 = vpop.eup %3926  ;;  %v2185_v29 = vadd.f32 %v2184_v26, %v5638_v36 }
 0x1a6   :  { %3783 = vmatmul.msk.f32.gmra.mxu3 %vm594_vm2, %v3927_v5 }
 0x1a7   :  { %3928 = vtanh.f32 %v2185_v29  ;;  %3717 = vmatmul.msk.f32.gmra.mxu2 %vm594_vm2, %v4130_v21 }
 0x1a9   :  { %v2199_v60 = vpop.f32.mrf.mxu0 }
 0x1aa   :  { %v672_v47 = vpop.f32.mrf.mxu2 }
 0x1ab   :  { %v5649_v41 = vadd.f32 %v672_v47, %v5591_v6 }
 0x1ad   :  { %v3929_v50 = vpop.eup %3928  ;;  %v2188_v33 = vadd.f32 %v2187_v13, %v5649_v41 }
 0x1ae   :  { %3784 = vmatmul.msk.f32.gmra.mxu3 %vm594_vm2, %v3929_v50 }
 0x1af   :  { %3930 = vtanh.f32 %v2188_v33  ;;  %3779 = vmatmul.msk.f32.vlgmr.msra.gmra.mxu2 %vm594_vm2, %v5486_v32  ;;  %v1059_v32 = vpop.f32.mrf.mxu3 }
 0x1b1   :  { %v2202_v51 = vpop.f32.mrf.mxu0 }
 0x1b2   :  { %v675_v40 = vpop.f32.mrf.mxu2 }
 0x1b3   :  { %v5658_v59 = vadd.f32 %v675_v40, %v5591_v6 }
 0x1b5   :  { %v3931_v20 = vpop.eup %3930  ;;  %v2191_v19 = vadd.f32 %v2190_v62, %v5658_v59 }
 0x1b6   :  { %3785 = vmatmul.msk.f32.gmra.mxu3 %vm594_vm2, %v3931_v20 }
 0x1b7   :  { %3780 = vmatmul.msk.f32.gmra.mxu2 %vm594_vm2, %v5528_v53  ;;  %3932 = vtanh.f32 %v2191_v19  ;;  %v1062_v24 = vpop.f32.mrf.mxu3 }
 0x1b9   :  { %v2205_v30 = vpop.f32.mrf.mxu0 }
 0x1ba   :  { %v678_v43 = vpop.f32.mrf.mxu2 }
 0x1bb   :  { %v5665_v52 = vadd.f32 %v678_v43, %v5591_v6 }
 0x1bd   :  { %v2194_v58 = vadd.f32 %v2193_v1, %v5665_v52  ;;  %v3933_v17 = vpop.eup %3932 }
 0x1be   :  { %3786 = vmatmul.msk.f32.gmra.mxu3 %vm594_vm2, %v3933_v17 }
 0x1bf   :  { %3813 = vmatmul.msk.f32.vlgmr.msrb.gmra.mxu2 %vm594_vm2, %v587_v56  ;;  %3934 = vtanh.f32 %v2194_v58  ;;  %v1065_v34 = vpop.f32.mrf.mxu3 }
 0x1c1   :  { %v2208_v42 = vpop.f32.mrf.mxu0 }
 0x1c2   :  { %v681_v3 = vpop.f32.mrf.mxu2 }
 0x1c3   :  { %v5671_v63 = vadd.f32 %v681_v3, %v5591_v6 }
 0x1c5   :  { %v2197_v53 = vadd.f32 %v2196_v18, %v5671_v63  ;;  %v3935_v61 = vpop.eup %3934 }
 0x1c6   :  { %3787 = vmatmul.msk.f32.gmra.mxu3 %vm594_vm2, %v3935_v61 }
 0x1c7   :  { %3814 = vmatmul.msk.f32.gmra.mxu2 %vm594_vm2, %v590_v54  ;;  %3936 = vtanh.f32 %v2197_v53  ;;  %v1068_v13 = vpop.f32.mrf.mxu3 }
 0x1c9   :  { %v2211_v35 = vpop.f32.mrf.mxu0 }
 0x1ca   :  { %v684_v27 = vpop.f32.mrf.mxu2 }
 0x1cb   :  { %v685_v48 = vadd.f32 %v684_v27, %v5591_v6 }
 0x1cd   :  { %v5677_v38 = vadd.f32 %v1059_v32, %v685_v48  ;;  %v2200_v45 = vadd.f32 %v2199_v60, %v685_v48  ;;  %v3937_v39 = vpop.eup %3936 }
 0x1ce   :  { %3788 = vmatmul.msk.f32.gmra.mxu3 %vm594_vm2, %v3937_v39 }
 0x1cf   :  { %3938 = vtanh.f32 %v2200_v45  ;;  %v1071_v62 = vpop.f32.mrf.mxu3 }
 0x1d1   :  { %v2214_v33 = vpop.f32.mrf.mxu0 }
 0x1d2   :  { %v687_v7 = vpop.f32.mrf.mxu2 }
 0x1d3   :  { %v688_v26 = vadd.f32 %v687_v7, %v5591_v6 }
 0x1d5   :  { %v5681_v0 = vadd.f32 %v1062_v24, %v688_v26  ;;  %v2203_v57 = vadd.f32 %v2202_v51, %v688_v26  ;;  %v3939_v10 = vpop.eup %3938 }
 0x1d6   :  { %3789 = vmatmul.msk.f32.gmra.mxu3 %vm594_vm2, %v3939_v10 }
 0x1d7   :  { %3940 = vtanh.f32 %v2203_v57  ;;  %v1074_v47 = vpop.f32.mrf.mxu3 }
 0x1d9   :  { %v2217_v56 = vpop.f32.mrf.mxu0 }
 0x1da   :  { %v690_v25 = vpop.f32.mrf.mxu2 }
 0x1db   :  { %v691_v31 = vadd.f32 %v690_v25, %v5591_v6 }
 0x1dd   :  { %v5685_v8 = vadd.f32 %v1065_v34, %v691_v31  ;;  %v2206_v11 = vadd.f32 %v2205_v30, %v691_v31  ;;  %v3941_v16 = vpop.eup %3940 }
 0x1de   :  { %3790 = vmatmul.msk.f32.gmra.mxu3 %vm594_vm2, %v3941_v16 }
 0x1df   :  { %3942 = vtanh.f32 %v2206_v11  ;;  %v1077_v32 = vpop.f32.mrf.mxu3 }
 0x1e1   :  { %v2220_v54 = vpop.f32.mrf.mxu0 }
 0x1e2   :  { %v693_v44 = vpop.f32.mrf.mxu2 }
 0x1e3   :  { %v694_v22 = vadd.f32 %v693_v44, %v5591_v6 }
 0x1e5   :  { %v5689_v4 = vadd.f32 %v1068_v13, %v694_v22  ;;  %v2209_v12 = vadd.f32 %v2208_v42, %v694_v22  ;;  %v3943_v55 = vpop.eup %3942 }
 0x1e6   :  { %3791 = vmatmul.msk.f32.gmra.mxu3 %vm594_vm2, %v3943_v55  ;;  %v6770_v55 = vld [vmem:[#allocation21_spill] sm:$0xff] }
 0x1e7   :  { %3944 = vtanh.f32 %v2209_v12  ;;  %v1080_v24 = vpop.f32.mrf.mxu3 }
 0x1ea   :  { %v696_v5 = vpop.f32.mrf.mxu2 }
 0x1eb   :  { %v697_v29 = vadd.f32 %v696_v5, %v5591_v6  ;;  %v3897_v5 = vunpack.i.h.bf16 %v6770_v55 }
 0x1ed   :  { %v5693_v21 = vadd.f32 %v1071_v62, %v697_v29  ;;  %v2212_v1 = vadd.f32 %v2211_v35, %v697_v29  ;;  %v3945_v50 = vpop.eup %3944  ;;  %v1051_v62 = vadd.f32 %v5624_v49, %v5658_v59  ;;  %v5739_v49 = vperm.slane %v5588_v9, 2 }
 0x1ee   :  { %3792 = vmatmul.msk.f32.gmra.mxu3 %vm594_vm2, %v3945_v50  ;;  %v1054_v59 = vadd.f32 %v5646_v46, %v5665_v52 }
 0x1ef   :  { %3946 = vtanh.f32 %v2212_v1  ;;  %v4131_v1 = vld [vmem:[%s6594_s0 + $0x38] sm:$0xff] }
 0x1f2   :  { %v699_v40 = vpop.f32.mrf.mxu2 }
 0x1f3   :  { %v700_v18 = vadd.f32 %v699_v40, %v5591_v6 }
 0x1f5   :  { %v5697_v20 = vadd.f32 %v1074_v47, %v700_v18  ;;  %v2215_v19 = vadd.f32 %v2214_v33, %v700_v18  ;;  %v3947_v43 = vpop.eup %3946  ;;  %v3182_v47 = vmul.f32 %v4131_v1, %v3897_v5 }
 0x1f6   :  { %3793 = vmatmul.msk.f32.gmra.mxu3 %vm594_vm2, %v3947_v43 }
 0x1f7   :  { %3948 = vtanh.f32 %v2215_v19  ;;  %v3240_v19 = vsel %vm594_vm2, %v3182_v47, 0.0 }
 0x1fa   :  { %v702_v60 = vpop.f32.mrf.mxu2 }
 0x1fb   :  { %v703_v58 = vadd.f32 %v702_v60, %v5591_v6 }
 0x1fd   :  { %v5701_v17 = vadd.f32 %v1077_v32, %v703_v58  ;;  %v2218_v3 = vadd.f32 %v2217_v56, %v703_v58  ;;  %v3949_v53 = vpop.eup %3948  ;;  %v3241_v32 = vrot.slane %v3240_v19, 4  ;;  %v1057_v58 = vadd.f32 %v5655_v2, %v5671_v63 }
 0x1fe   :  { %3794 = vmatmul.msk.f32.gmra.mxu3 %vm594_vm2, %v3949_v53 }
 0x1ff   :  { %3950 = vtanh.f32 %v2218_v3  ;;  %v3242_v46 = vadd.f32 %v3241_v32, %v3240_v19 }
 0x202   :  { %v705_v61 = vpop.f32.mrf.mxu2 }
 0x203   :  { %v706_v51 = vadd.f32 %v705_v61, %v5591_v6 }
 0x205   :  { %v5705_v27 = vadd.f32 %v1080_v24, %v706_v51  ;;  %v2221_v48 = vadd.f32 %v2220_v54, %v706_v51  ;;  %v3951_v45 = vpop.eup %3950 }
 0x206   :  { %3795 = vmatmul.msk.f32.gmra.mxu3 %vm594_vm2, %v3951_v45 }
 0x207   :  { %3952 = vtanh.f32 %v2221_v48 }
 0x20a   :  { %v1035_v39 = vpop.f32.mrf.mxu2 }
 0x20b   :  { %v1036_v34 = vadd.f32 %v1035_v39, %v5598_v23  ;;  %v3243_v39 = vrot.slane %v3242_v46, 2 }
 0x20d   :  { %3954 = vtanh.f32 %v1036_v34  ;;  %v3953_v30 = vpop.eup %3952 }
 0x20e   :  { %3796 = vmatmul.msk.f32.gmra.mxu3 %vm594_vm2, %v3953_v30 }
 0x212   :  { %v1038_v7 = vpop.f32.mrf.mxu2 }
 0x213   :  { %v3955_v26 = vpop.eup %3954  ;;  %v1039_v57 = vadd.f32 %v1038_v7, %v5606_v28  ;;  %v3244_v7 = vadd.f32 %v3243_v39, %v3242_v46 }
 0x214   :  { %3731 = vmatmul.msk.f32.vlgmr.msrb.gmra.mxu1 %vm594_vm2, %v3955_v26 }
 0x215   :  { %3956 = vtanh.f32 %v1039_v57 }
 0x219   :  { %v2375_v6 = vpop.f32.mrf.mxu3 }
 0x21a   :  { %v1041_v10 = vpop.f32.mrf.mxu2  ;;  %v2376_v52 = vadd.f32 %v2375_v6, %v5739_v49 }
 0x21b   :  { %v3957_v13 = vpop.eup %3956  ;;  %v1042_v25 = vadd.f32 %v1041_v10, %v5618_v14  ;;  %v5723_v14 = vperm.slane %v5588_v9, 1 }
 0x21c   :  { %3732 = vmatmul.msk.f32.gmra.mxu1 %vm594_vm2, %v3957_v13 }
 0x21d   :  { %3958 = vtanh.f32 %v1042_v25 }
 0x221   :  { %v5714_v23 = vpop.f32.mrf.mxu3 }
 0x222   :  { %v1044_v42 = vpop.f32.mrf.mxu2  ;;  %v2379_v25 = vadd.f32 %v5714_v23, %v5739_v49 }
 0x223   :  { %v3959_v31 = vpop.eup %3958  ;;  %v1045_v11 = vadd.f32 %v1044_v42, %v5638_v36 }
 0x224   :  { %3733 = vmatmul.msk.f32.gmra.mxu1 %vm594_vm2, %v3959_v31 }
 0x225   :  { %3960 = vtanh.f32 %v1045_v11 }
 0x229   :  { %v5718_v28 = vpop.f32.mrf.mxu3 }
 0x22a   :  { %v1047_v16 = vpop.f32.mrf.mxu2 }
 0x22b   :  { %v3961_v44 = vpop.eup %3960  ;;  %v1048_v22 = vadd.f32 %v1047_v16, %v5649_v41  ;;  %v3245_v16 = vrot.slane %v3244_v7, 1 }
 0x22c   :  { %3734 = vmatmul.msk.f32.gmra.mxu1 %vm594_vm2, %v3961_v44 }
 0x22d   :  { %3962 = vtanh.f32 %v1048_v22 }
 0x22e   :  { %3964 = vtanh.f32 %v1051_v62 }
 0x22f   :  { %3966 = vtanh.f32 %v1054_v59 }
 0x231   :  { %v5727_v35 = vpop.f32.mrf.mxu3 }
 0x232   :  { %v2304_v36 = vpop.f32.mrf.mxu2 }
 0x233   :  { %v3963_v12 = vpop.eup %3962  ;;  %v5731_v29 = vadd.f32 %v2304_v36, %v5723_v14 }
 0x234   :  { %3735 = vmatmul.msk.f32.gmra.mxu1 %vm594_vm2, %v3963_v12  ;;  %v3965_v18 = vpop.eup %3964 }
 0x235   :  { %v2428_v41 = vrot.slane %v5731_v29, 4  ;;  %v2429_v60 = vrot.slane %v5731_v29, 5  ;;  %v2439_v53 = vperm.slane %v5731_v29, 0  ;;  %v3967_v24 = vpop.eup %3966  ;;  %v2430_v2 = vrot.slane %v5731_v29, 6 }
 0x236   :  { %v2425_v57 = vrot.slane %v5731_v29, 1  ;;  %v2431_v62 = vrot.slane %v5731_v29, 7 }
 0x237   :  { %v2443_v40 = vperm.slane %v2428_v41, 0  ;;  %v2444_v54 = vperm.slane %v2429_v60, 0  ;;  %v2471_v51 = vadd.f32 %v2439_v53, %v2376_v52  ;;  %v2445_v13 = vperm.slane %v2430_v2, 0 }
 0x238   :  { %v2440_v42 = vperm.slane %v2425_v57, 0  ;;  %v2446_v47 = vperm.slane %v2431_v62, 0 }
 0x239   :  { %v2387_v50 = vpop.f32.mrf.mxu3  ;;  %v3797_v34 = vmul.f32 -1.442695, %v2471_v51 }
 0x23a   :  { %v2388_v33 = vadd.f32 %v2387_v50, %v5739_v49  ;;  %v2472_v44 = vadd.f32 %v2440_v42, %v2379_v25 }
 0x23c   :  { %v2475_v43 = vadd.f32 %v2443_v40, %v2388_v33  ;;  %3736 = vmatmul.msk.f32.gmra.mxu1 %vm594_vm2, %v3965_v18  ;;  %v3798_v23 = vmul.f32 -1.442695, %v2472_v44 }
 0x23e   :  { %v3801_v56 = vmul.f32 -1.442695, %v2475_v43  ;;  %v2427_v43 = vrot.slane %v5731_v29, 3 }
 0x240   :  { %3968 = vpow2.f32 %v3801_v56  ;;  %v2442_v52 = vperm.slane %v2427_v43, 0 }
 0x241   :  { %v2390_v3 = vpop.f32.mrf.mxu3  ;;  %3970 = vtanh.f32 %v1057_v58  ;;  %v2385_v58 = vadd.f32 %v5727_v35, %v5739_v49 }
 0x242   :  { %v2391_v61 = vadd.f32 %v2390_v3, %v5739_v49  ;;  %3972 = vpow2.f32 %v3797_v34 }
 0x243   :  { %v2474_v51 = vadd.f32 %v2442_v52, %v2385_v58 }
 0x244   :  { %3737 = vmatmul.msk.f32.gmra.mxu1 %vm594_vm2, %v3967_v24  ;;  %v2476_v48 = vadd.f32 %v2444_v54, %v2391_v61 }
 0x246   :  { %v3969_v45 = vpop.eup %3968  ;;  %v3802_v63 = vmul.f32 -1.442695, %v2476_v48 }
 0x247   :  { %v5753_v30 = vadd.f32 1.0, %v3969_v45  ;;  %v3971_v6 = vpop.eup %3970 }
 0x248   :  { %v3973_v11 = vpop.eup %3972 }
 0x249   :  { %3974 = vrcp.f32 %v5753_v30  ;;  %v2393_v26 = vpop.f32.mrf.mxu3  ;;  %v5767_v36 = vadd.f32 1.0, %v3973_v11  ;;  %v2622_v19 = vand.u32 2147483648, %v5753_v30  ;;  %v2620_v56 = vand.u32 2147483647, %v5753_v30 }
 0x24a   :  { %3976 = vtanh.f32 %v5677_v38  ;;  %v2394_v10 = vadd.f32 %v2393_v26, %v5739_v49  ;;  %vm2616_vm6 = vweird.f32 %v5753_v30 }
 0x24b   :  { %3978 = vpow2.f32 %v3802_v63  ;;  %v2560_v53 = vand.u32 2147483647, %v5767_v36  ;;  %v2562_v48 = vand.u32 2147483648, %v5767_v36  ;;  %vm2621_vm8 = vcmp.eq.f32.partialorder %v2620_v56, 8.507059e+37 }
 0x24c   :  { %3738 = vmatmul.msk.f32.gmra.mxu1 %vm594_vm2, %v3971_v6  ;;  %3980 = vtanh.f32 %v5681_v0  ;;  %v2477_v31 = vadd.f32 %v2445_v13, %v2394_v10  ;;  %v2307_v0 = vpop.f32.mrf.mxu2  ;;  %v3800_v6 = vmul.f32 -1.442695, %v2474_v51  ;;  %v2426_v10 = vrot.slane %v5731_v29, 2 }
 0x24d   :  { %3982 = vtanh.f32 %v5685_v8  ;;  %vm2556_vm12 = vweird.f32 %v5767_v36  ;;  %vm2561_vm9 = vcmp.eq.f32.partialorder %v2560_v53, 8.507059e+37 }
 0x24e   :  { %3984 = vtanh.f32 %v5689_v4  ;;  %v3803_v38 = vmul.f32 -1.442695, %v2477_v31  ;;  %v5773_v4 = vadd.f32 %v3245_v16, %v3244_v7  ;;  %v2382_v31 = vadd.f32 %v5718_v28, %v5739_v49  ;;  %v6771_v28 = vld [vmem:[#allocation35_spill] sm:$0xff] }
 0x24f   :  { %v3975_v22 = vpop.eup %3974  ;;  %3986 = vtanh.f32 %v5693_v21  ;;  %v5779_v21 = vperm.slane %v5588_v9, 4 }
 0x250   :  { %v3977_v12 = vpop.eup %3976  ;;  %3988 = vtanh.f32 %v5697_v20  ;;  %v2612_v8 = vmul.f32 %v3975_v22, %v5753_v30  ;;  %v5782_v20 = vadd.f32 %v2307_v0, %v5723_v14  ;;  %vm2617_vm5 = vweird.f32 %v3975_v22 }
 0x251   :  { %v3979_v55 = vpop.eup %3978  ;;  %v2396_v5 = vpop.f32.mrf.mxu3  ;;  %3990 = vrcp.f32 %v5767_v36  ;;  %vm2618_vm7 = vmor %vm2616_vm6, %vm2617_vm5 }
 0x252   :  { %v3981_v41 = vpop.eup %3980  ;;  %3992 = vpow2.f32 %v3803_v38  ;;  %v2397_v1 = vadd.f32 %v2396_v5, %v5739_v49  ;;  %v2613_v50 = vsub.f32 1.0, %v2612_v8  ;;  %v5787_v40 = vadd.f32 1.0, %v3979_v55 }
 0x253   :  { %v5776_v59 = vpop.eup %3982  ;;  %3994 = vpow2.f32 %v3798_v23  ;;  %v2447_v24 = vperm.slane %v5782_v20, 0  ;;  %v2432_v29 = vrot.slane %v5782_v20, 1  ;;  %v2441_v38 = vperm.slane %v2426_v10, 0 }
 0x254   :  { %3739 = vmatmul.msk.f32.gmra.mxu1 %vm594_vm2, %v3977_v12  ;;  %v5785_v33 = vpop.eup %3984  ;;  %v2478_v18 = vadd.f32 %v2446_v47, %v2397_v1  ;;  %3996 = vtanh.f32 %v5701_v17  ;;  %v2614_v9 = vmul.f32 %v3975_v22, %v2613_v50  ;;  %v2563_v23 = vor.u32 1.1754944e-38, %v2562_v48 }
 0x255   :  { %v5791_v32 = vpop.eup %3986  ;;  %3998 = vtanh.f32 %v5705_v27  ;;  %v2623_v27 = vor.u32 1.1754944e-38, %v2622_v19  ;;  %v2473_v0 = vadd.f32 %v2441_v38, %v2382_v31  ;;  %v2448_v19 = vperm.slane %v2432_v29, 0 }
 0x256   :  { %v5795_v60 = vpop.eup %3988  ;;  %v3804_v46 = vmul.f32 -1.442695, %v2478_v18  ;;  %v2615_v61 = vadd.f32 %v3975_v22, %v2614_v9  ;;  %4000 = vrcp.f32 %v5787_v40 }
 0x257   :  { %v3991_v3 = vpop.eup %3990  ;;  %v3799_v43 = vmul.f32 -1.442695, %v2473_v0 }
 0x258   :  { %v3993_v17 = vpop.eup %3992  ;;  %v2552_v54 = vmul.f32 %v3991_v3, %v5767_v36  ;;  %4002 = vpow2.f32 %v3804_v46  ;;  %v2619_v39 = vsel %vm2618_vm7, %v3975_v22, %v2615_v61  ;;  %vm2557_vm11 = vweird.f32 %v3991_v3 }
 0x259   :  { %v3995_v35 = vpop.eup %3994  ;;  %v2399_v45 = vpop.f32.mrf.mxu3  ;;  %v2624_v63 = vsel %vm2621_vm8, %v2623_v27, %v2619_v39  ;;  %v5812_v26 = vadd.f32 1.0, %v3993_v17  ;;  %vm2558_vm13 = vmor %vm2556_vm12, %vm2557_vm11  ;;  %v3310_v36 = vsub.f32 %v6771_v28, %v5773_v4  ;;  %vm2631_vm11 = vweird.f32 %v5787_v40 }
 0x25a   :  { %v2553_v34 = vsub.f32 1.0, %v2552_v54  ;;  %v2400_v2 = vadd.f32 %v2399_v45, %v5739_v49  ;;  %v5808_v30 = vadd.f32 1.0, %v3995_v35  ;;  %v5810_v7 = vpop.eup %3996  ;;  %v2795_v57 = vmul.f32 %v2624_v63, %v5779_v21 }
 0x25b   :  { %v5817_v13 = vpop.eup %3998  ;;  %v2433_v35 = vrot.slane %v5782_v20, 2 }
 0x25c   :  { %3740 = vmatmul.msk.f32.gmra.mxu1 %vm594_vm2, %v3981_v41  ;;  %v2554_v25 = vmul.f32 %v3991_v3, %v2553_v34  ;;  %v2479_v42 = vadd.f32 %v2447_v24, %v2400_v2  ;;  %4004 = vrcp.f32 %v5808_v30  ;;  %v2819_v11 = vsel %vm594_vm2, %v2795_v57, 0.0  ;;  %v5824_v16 = vpop.eup %4000 }
 0x25d   :  { %4006 = vpow2.f32 %v3800_v6  ;;  %2820 = vadd.xlane.f32.xlu2 %v2819_v11  ;;  %v2575_v5 = vand.u32 2147483647, %v5808_v30  ;;  %v2577_v8 = vand.u32 2147483648, %v5808_v30  ;;  %v2627_v1 = vmul.f32 %v5824_v16, %v5787_v40 }
 0x25e   :  { %v2555_v44 = vadd.f32 %v3991_v3, %v2554_v25  ;;  %v3805_v22 = vmul.f32 -1.442695, %v2479_v42  ;;  %v4003_v62 = vpop.eup %4002  ;;  %4008 = vrcp.f32 %v5812_v26  ;;  %vm2571_vm5 = vweird.f32 %v5808_v30 }
 0x25f   :  { %v5837_v56 = vadd.f32 1.0, %v4003_v62  ;;  %v2628_v46 = vsub.f32 1.0, %v2627_v1  ;;  %vm5848_vm6 = vcmp.eq.f32.partialorder %v2575_v5, 8.507059e+37  ;;  %v2578_v54 = vor.u32 1.1754944e-38, %v2577_v8 }
 0x260   :  { %v2559_v12 = vsel %vm2558_vm13, %v3991_v3, %v2555_v44  ;;  %4010 = vpow2.f32 %v3805_v22  ;;  %vm2632_vm8 = vweird.f32 %v5824_v16  ;;  %v2637_v2 = vand.u32 2147483648, %v5787_v40 }
 0x261   :  { %v2564_v55 = vsel %vm2561_vm9, %v2563_v23, %v2559_v12  ;;  %v2402_v41 = vpop.f32.mrf.mxu3  ;;  %4012 = vpow2.f32 %v3799_v43  ;;  %v2629_v27 = vmul.f32 %v5824_v16, %v2628_v46  ;;  %v2635_v25 = vand.u32 2147483647, %v5787_v40  ;;  %vm5878_vm13 = vmor %vm2631_vm11, %vm2632_vm8 }
 0x262   :  { %v4005_v47 = vpop.eup %4004  ;;  %v2791_v50 = vmul.f32 %v2564_v55, %v5779_v21  ;;  %v2403_v18 = vadd.f32 %v2402_v41, %v5739_v49  ;;  %v2449_v22 = vperm.slane %v2433_v35, 0  ;;  %v2638_v55 = vor.u32 1.1754944e-38, %v2637_v2  ;;  %v150_v41 = vld [vmem:[%s6599_s5 + $0x90] sm:$0xff] }
 0x263   :  { %v4007_v9 = vpop.eup %4006  ;;  %v2567_v58 = vmul.f32 %v4005_v47, %v5808_v30  ;;  %vm2572_vm7 = vweird.f32 %v4005_v47  ;;  %v2630_v39 = vadd.f32 %v5824_v16, %v2629_v27  ;;  %vm2646_vm11 = vweird.f32 %v5812_v26  ;;  %v1172_v27 = vpop.f32.mrf.mxu1 }
 0x264   :  { %3741 = vmatmul.msk.f32.gmra.mxu1 %vm594_vm2, %v5776_v59  ;;  %v2807_v52 = vsel %vm594_vm2, %v2791_v50, 0.0  ;;  %v5844_v3 = vadd.f32 1.0, %v4007_v9  ;;  %v2480_v53 = vadd.f32 %v2448_v19, %v2403_v18  ;;  %v5846_v24 = vpop.eup %4008  ;;  %vm5865_vm12 = vmor %vm2571_vm5, %vm2572_vm7  ;;  %vm2636_vm7 = vcmp.eq.f32.partialorder %v2635_v25, 8.507059e+37 }
 0x265   :  { %2808 = vadd.xlane.f32.xlu1 %v2807_v52  ;;  %v2568_v61 = vsub.f32 1.0, %v2567_v58  ;;  %v2642_v42 = vmul.f32 %v5846_v24, %v5812_v26  ;;  %v2634_v38 = vsel %vm5878_vm13, %v5824_v16, %v2630_v39  ;;  %vm2647_vm8 = vweird.f32 %v5846_v24 }
 0x266   :  { %v4011_v51 = vpop.eup %4010  ;;  %4014 = vrcp.f32 %v5844_v3  ;;  %v2607_v59 = vand.u32 2147483648, %v5844_v3  ;;  %v3806_v45 = vmul.f32 -1.442695, %v2480_v53  ;;  %v2605_v6 = vand.u32 2147483647, %v5844_v3  ;;  %vm5922_vm13 = vmor %vm2646_vm11, %vm2647_vm8 }
 0x267   :  { %v2569_v48 = vmul.f32 %v4005_v47, %v2568_v61  ;;  %4016 = vrcp.f32 %v5837_v56  ;;  %v5859_v34 = vadd.f32 1.0, %v4011_v51  ;;  %v4013_v31 = vpop.eup %4012  ;;  %vm2601_vm9 = vweird.f32 %v5844_v3 }
 0x268   :  { %v5873_v11 = vor.u32 1.1754944e-38, %v2607_v59  ;;  %4018 = vpow2.f32 %v3806_v45  ;;  %v5885_v40 = vadd.f32 1.0, %v4013_v31  ;;  %v2643_v62 = vsub.f32 1.0, %v2642_v42 }
 0x269   :  { %v2570_v63 = vadd.f32 %v4005_v47, %v2569_v48  ;;  %v2405_v10 = vpop.f32.mrf.mxu3  ;;  %4020 = vrcp.f32 %v5859_v34  ;;  %vm5897_vm5 = vcmp.eq.f32.partialorder %v2605_v6, 8.507059e+37  ;;  %v2639_v1 = vsel %vm2636_vm7, %v2638_v55, %v2634_v38 }
 0x26a   :  { %v2406_v44 = vadd.f32 %v2405_v10, %v5739_v49  ;;  %4022 = vrcp.f32 %v5885_v40  ;;  %v2592_v19 = vand.u32 2147483648, %v5885_v40  ;;  %v2644_v43 = vmul.f32 %v5846_v24, %v2643_v62 }
 0x26b   :  { %v2574_v29 = vsel %vm5865_vm12, %v4005_v47, %v2570_v63  ;;  %v2650_v47 = vand.u32 2147483647, %v5812_v26  ;;  %v2590_v58 = vand.u32 2147483647, %v5885_v40  ;;  %v5914_v53 = vmul.f32 %v2639_v1, %v5779_v21 }
 0x26c   :  { %3742 = vmatmul.msk.f32.gmra.mxu1 %vm594_vm2, %v5785_v33  ;;  %v4015_v23 = vpop.eup %4014  ;;  %v2579_v12 = vsel %vm5848_vm6, %v2578_v54, %v2574_v29  ;;  %v2481_v0 = vadd.f32 %v2449_v22, %v2406_v44  ;;  %v2645_v61 = vadd.f32 %v5846_v24, %v2644_v43  ;;  %vm2586_vm12 = vweird.f32 %v5885_v40 }
 0x26d   :  { %v2792_v5 = vmul.f32 %v2579_v12, %v5779_v21  ;;  %v2597_v8 = vmul.f32 %v4015_v23, %v5844_v3  ;;  %v5902_v33 = vpop.eup %4016  ;;  %vm2602_vm6 = vweird.f32 %v4015_v23  ;;  %v2652_v51 = vand.u32 2147483648, %v5812_v26 }
 0x26e   :  { %v3807_v16 = vmul.f32 -1.442695, %v2481_v0  ;;  %v4019_v9 = vpop.eup %4018  ;;  %v2434_v35 = vrot.slane %v5782_v20, 3  ;;  %v2657_v48 = vmul.f32 %v5902_v33, %v5837_v56  ;;  %v2593_v2 = vor.u32 1.1754944e-38, %v2592_v19  ;;  %vm2603_vm8 = vmor %vm2601_vm9, %vm2602_vm6 }
 0x26f   :  { %v2810_v50 = vsel %vm594_vm2, %v2792_v5, 0.0  ;;  %v2598_v18 = vsub.f32 1.0, %v2597_v8  ;;  %v5911_v52 = vadd.f32 1.0, %v4019_v9  ;;  %v5917_v54 = vpop.eup %4020  ;;  %v2649_v63 = vsel %vm5922_vm13, %v5846_v24, %v2645_v61  ;;  %v151_v8 = vld [vmem:[%s6599_s5 + $0x98] sm:$0xff] }
 0x270   :  { %2811 = vadd.xlane.f32.xlu0 %v2810_v50  ;;  %4024 = vpow2.f32 %v3807_v16  ;;  %v4023_v45 = vpop.eup %4022  ;;  %vm2651_vm7 = vcmp.eq.f32.partialorder %v2650_v47, 8.507059e+37  ;;  %vm5941_vm11 = vcmp.eq.f32.partialorder %v2590_v58, 8.507059e+37  ;;  %v2653_v6 = vor.u32 1.1754944e-38, %v2652_v51  ;;  %3408 = vmatpush.msra.mxu1 %v151_v8 }
 0x271   :  { %v2599_v46 = vmul.f32 %v4015_v23, %v2598_v18  ;;  %v2408_v17 = vpop.f32.mrf.mxu3  ;;  %4026 = vrcp.f32 %v5911_v52  ;;  %v2582_v26 = vmul.f32 %v4023_v45, %v5885_v40  ;;  %v2450_v10 = vperm.slane %v2434_v35, 0 }
 0x272   :  { %v2409_v59 = vadd.f32 %v2408_v17, %v5739_v49  ;;  %vm2587_vm13 = vweird.f32 %v4023_v45  ;;  %v2658_v24 = vsub.f32 1.0, %v2657_v48  ;;  %v2665_v42 = vand.u32 2147483647, %v5837_v56  ;;  %3409 = vmatpush.msra.mxu1 %v150_v41 }
 0x273   :  { %v2600_v39 = vadd.f32 %v4015_v23, %v2599_v46  ;;  %v2583_v31 = vsub.f32 1.0, %v2582_v26  ;;  %v2654_v44 = vsel %vm2651_vm7, %v2653_v6, %v2649_v63  ;;  %vm2662_vm9 = vweird.f32 %v5902_v33 }
 0x274   :  { %3743 = vmatmul.msk.f32.gmra.mxu1 %vm594_vm2, %v5791_v32  ;;  %v2482_v22 = vadd.f32 %v2450_v10, %v2409_v59  ;;  %v2659_v38 = vmul.f32 %v5902_v33, %v2658_v24  ;;  %v2667_v0 = vand.u32 2147483648, %v5837_v56  ;;  %vm2666_vm7 = vcmp.eq.f32.partialorder %v2665_v42, 8.507059e+37 }
 0x275   :  { %v2604_v25 = vsel %vm2603_vm8, %v4015_v23, %v2600_v39  ;;  %v2584_v62 = vmul.f32 %v4023_v45, %v2583_v31  ;;  %v2797_v23 = vmul.f32 %v2654_v44, %v5779_v21  ;;  %vm2588_vm8 = vmor %vm2586_vm12, %vm2587_vm13  ;;  %v2435_v18 = vrot.slane %v5782_v20, 4 }
 0x276   :  { %v4025_v32 = vpop.eup %4024  ;;  %v2609_v3 = vsel %vm5897_vm5, %v5873_v11, %v2604_v25  ;;  %v3808_v12 = vmul.f32 -1.442695, %v2482_v22  ;;  %v2660_v11 = vadd.f32 %v5902_v33, %v2659_v38  ;;  %vm2661_vm5 = vweird.f32 %v5837_v56 }
 0x277   :  { %v2794_v30 = vmul.f32 %v2609_v3, %v5779_v21  ;;  %v5950_v29 = vadd.f32 1.0, %v4025_v32  ;;  %v5966_v16 = vpop.eup %4026  ;;  %v2585_v1 = vadd.f32 %v4023_v45, %v2584_v62  ;;  %vm2663_vm6 = vmor %vm2661_vm5, %vm2662_vm9  ;;  %v2668_v47 = vor.u32 1.1754944e-38, %v2667_v0  ;;  %v149_v3 = vld [vmem:[%s6599_s5 + $0x88] sm:$0xff] }
 0x278   :  { %v2664_v56 = vsel %vm2663_vm6, %v5902_v33, %v2660_v11  ;;  %v2672_v19 = vmul.f32 %v5917_v54, %v5859_v34  ;;  %v2825_v9 = vsel %vm594_vm2, %v2797_v23, 0.0  ;;  %v2680_v46 = vand.u32 2147483647, %v5859_v34  ;;  %3410 = vmatpush.msra.mxu1 %v149_v3 }
 0x279   :  { %v2816_v55 = vsel %vm594_vm2, %v2794_v30, 0.0  ;;  %4028 = vrcp.f32 %v5950_v29  ;;  %v2411_v5 = vpop.f32.mrf.mxu3  ;;  %v2589_v43 = vsel %vm2588_vm8, %v4023_v45, %v2585_v1  ;;  %v2669_v58 = vsel %vm2666_vm7, %v2668_v47, %v2664_v56  ;;  %v6038_v47 = vpop.f32.mrf.mxu1 }
 0x27a   :  { %2817 = vadd.xlane.f32.xlu1 %v2816_v55  ;;  %4030 = vpow2.f32 %v3808_v12  ;;  %v2412_v50 = vadd.f32 %v2411_v5, %v5739_v49  ;;  %v2594_v40 = vsel %vm5941_vm11, %v2593_v2, %v2589_v43  ;;  %v2798_v33 = vmul.f32 %v2669_v58, %v5779_v21 }
 0x27b   :  { %v2451_v61 = vperm.slane %v2435_v18, 0  ;;  %v2673_v17 = vsub.f32 1.0, %v2672_v19  ;;  %vm2677_vm12 = vweird.f32 %v5917_v54  ;;  %v2682_v51 = vand.u32 2147483648, %v5859_v34 }
 0x27c   :  { %3744 = vmatmul.msk.f32.gmra.mxu1 %vm594_vm2, %v5795_v60  ;;  %v2793_v60 = vmul.f32 %v2594_v40, %v5779_v21  ;;  %v2436_v59 = vrot.slane %v5782_v20, 5  ;;  %v2828_v48 = vsel %vm594_vm2, %v2798_v33, 0.0  ;;  %v2687_v2 = vmul.f32 %v5966_v16, %v5911_v52 }
 0x27d   :  { %v2483_v45 = vadd.f32 %v2451_v61, %v2412_v50  ;;  %v2674_v39 = vmul.f32 %v5917_v54, %v2673_v17  ;;  %2829 = vadd.xlane.f32.xlu2 %v2828_v48  ;;  %vm2676_vm11 = vweird.f32 %v5859_v34  ;;  %vm5997_vm13 = vcmp.eq.f32.partialorder %v2680_v46, 8.507059e+37  ;;  %v148_v34 = vld [vmem:[%s6599_s5 + $0x80] sm:$0xff] }
 0x27e   :  { %v2813_v26 = vsel %vm594_vm2, %v2793_v60, 0.0  ;;  %v2683_v6 = vor.u32 1.1754944e-38, %v2682_v51  ;;  %v2688_v32 = vsub.f32 1.0, %v2687_v2  ;;  %vm2678_vm9 = vmor %vm2676_vm11, %vm2677_vm12  ;;  %v2452_v44 = vperm.slane %v2436_v59, 0  ;;  %3411 = vmatpush.msra.mxu1 %v148_v34 }
 0x27f   :  { %v5989_v35 = vpop.eup %4028  ;;  %2814 = vadd.xlane.f32.xlu0 %v2813_v26  ;;  %v3809_v25 = vmul.f32 -1.442695, %v2483_v45  ;;  %v2675_v24 = vadd.f32 %v5917_v54, %v2674_v39  ;;  %vm2692_vm5 = vweird.f32 %v5966_v16  ;;  %v2697_v22 = vand.u32 2147483648, %v5911_v52 }
 0x280   :  { %v4031_v63 = vpop.eup %4030  ;;  %v2689_v38 = vmul.f32 %v5966_v16, %v2688_v32  ;;  %v2695_v62 = vand.u32 2147483647, %v5911_v52  ;;  %vm2691_vm6 = vweird.f32 %v5911_v52  ;;  %v2702_v5 = vmul.f32 %v5989_v35, %v5950_v29 }
 0x281   :  { %v6001_v10 = vadd.f32 1.0, %v4031_v63  ;;  %v2414_v42 = vpop.f32.mrf.mxu3  ;;  %v2679_v30 = vsel %vm2678_vm9, %v5917_v54, %v2675_v24  ;;  %v2437_v54 = vrot.slane %v5782_v20, 6  ;;  %vm2693_vm7 = vmor %vm2691_vm6, %vm2692_vm5  ;;  %v3376_v8 = vrot.slane %v3310_v36, 1 }
 0x282   :  { %2826 = vadd.xlane.f32.xlu1 %v2825_v9  ;;  %v2415_v31 = vadd.f32 %v2414_v42, %v5739_v49  ;;  %v2684_v23 = vsel %vm5997_vm13, %v2683_v6, %v2679_v30  ;;  %v2690_v55 = vadd.f32 %v5966_v16, %v2689_v38  ;;  %v2822_v41 = vsel %vm594_vm2, %v5914_v53, 0.0 }
 0x283   :  { %4032 = vrcp.f32 %v6001_v10  ;;  %v2799_v0 = vmul.f32 %v2684_v23, %v5779_v21  ;;  %vm2696_vm8 = vcmp.eq.f32.partialorder %v2695_v62, 8.507059e+37  ;;  %v2703_v50 = vsub.f32 1.0, %v2702_v5 }
 0x284   :  { %3745 = vmatmul.msk.f32.gmra.mxu1 %vm594_vm2, %v5810_v7  ;;  %4034 = vpow2.f32 %v3809_v25  ;;  %v2484_v12 = vadd.f32 %v2452_v44, %v2415_v31  ;;  %v2698_v7 = vor.u32 1.1754944e-38, %v2697_v22  ;;  %v2694_v52 = vsel %vm2693_vm7, %v5966_v16, %v2690_v55 }
 0x285   :  { %v2831_v1 = vsel %vm594_vm2, %v2799_v0, 0.0  ;;  %v2710_v18 = vand.u32 2147483647, %v5950_v29  ;;  %v6042_v4 = vadd.f32 %v1172_v27, %v5723_v14  ;;  %v2453_v53 = vperm.slane %v2437_v54, 0 }
 0x286   :  { %v3810_v11 = vmul.f32 -1.442695, %v2484_v12  ;;  %2832 = vadd.xlane.f32.xlu2 %v2831_v1  ;;  %v2699_v56 = vsel %vm2696_vm8, %v2698_v7, %v2694_v52  ;;  %v2712_v16 = vand.u32 2147483648, %v5950_v29  ;;  %v2704_v58 = vmul.f32 %v5989_v35, %v2703_v50 }
 0x287   :  { %2823 = vadd.xlane.f32.xlu0 %v2822_v41  ;;  %v2800_v28 = vmul.f32 %v2699_v56, %v5779_v21  ;;  %vm2707_vm12 = vweird.f32 %v5989_v35  ;;  %vm2706_vm11 = vweird.f32 %v5950_v29  ;;  %v2438_v61 = vrot.slane %v5782_v20, 7 }
 0x288   :  { %4036 = vpow2.f32 %v3810_v11  ;;  %v2705_v27 = vadd.f32 %v5989_v35, %v2704_v58  ;;  %vm2711_vm13 = vcmp.eq.f32.partialorder %v2710_v18, 8.507059e+37  ;;  %vm2708_vm9 = vmor %vm2706_vm11, %vm2707_vm12  ;;  %v2713_v51 = vor.u32 1.1754944e-38, %v2712_v16 }
 0x289   :  { %v4033_v19 = vpop.eup %4032  ;;  %v2417_v36 = vpop.f32.mrf.mxu3  ;;  %v2834_v33 = vsel %vm594_vm2, %v2800_v28, 0.0  ;;  %v2727_v59 = vand.u32 2147483648, %v6001_v10  ;;  %v2725_v20 = vand.u32 2147483647, %v6001_v10  ;;  %v1308_v63 = vperm.slane %v6042_v4, 0 }
 0x28a   :  { %v4035_v43 = vpop.eup %4034  ;;  %v2418_v9 = vadd.f32 %v2417_v36, %v5739_v49  ;;  %v2717_v46 = vmul.f32 %v4033_v19, %v6001_v10  ;;  %2835 = vadd.xlane.f32.xlu1 %v2834_v33  ;;  %vm2722_vm5 = vweird.f32 %v4033_v19  ;;  %v3377_v26 = vsel %vm1135_vm4, %v3376_v8, %v5542_v37 }
 0x28b   :  { %v6050_v40 = vadd.f32 1.0, %v4035_v43  ;;  %vm2721_vm6 = vweird.f32 %v6001_v10  ;;  %v2454_v42 = vperm.slane %v2438_v61, 0  ;;  %v2728_v32 = vor.u32 1.1754944e-38, %v2727_v59 }
 0x28c   :  { %3746 = vmatmul.msk.f32.gmra.mxu1 %vm594_vm2, %v5817_v13  ;;  %v2485_v17 = vadd.f32 %v2453_v53, %v2418_v9  ;;  %v2718_v60 = vsub.f32 1.0, %v2717_v46  ;;  %v2709_v13 = vsel %vm2708_vm9, %v5989_v35, %v2705_v27  ;;  %vm2723_vm7 = vmor %vm2721_vm6, %vm2722_vm5  ;;  %vm2726_vm8 = vcmp.eq.f32.partialorder %v2725_v20, 8.507059e+37 }
 0x28d   :  { %4038 = vrcp.f32 %v6050_v40  ;;  %v2714_v2 = vsel %vm2711_vm13, %v2713_v51, %v2709_v13  ;;  %v1294_v23 = vrot.slane %v6042_v4, 1  ;;  %v2740_v5 = vand.u32 2147483647, %v6050_v40 }
 0x28e   :  { %v4037_v48 = vpop.eup %4036  ;;  %v3811_v45 = vmul.f32 -1.442695, %v2485_v17  ;;  %v2719_v29 = vmul.f32 %v4033_v19, %v2718_v60  ;;  %v2801_v57 = vmul.f32 %v2714_v2, %v5779_v21  ;;  %v2742_v8 = vand.u32 2147483648, %v6050_v40 }
 0x28f   :  { %v6062_v39 = vadd.f32 1.0, %v4037_v48  ;;  %v1309_v50 = vperm.slane %v1294_v23, 0  ;;  %vm2736_vm11 = vweird.f32 %v6050_v40  ;;  %vm2741_vm9 = vcmp.eq.f32.partialorder %v2740_v5, 8.507059e+37 }
 0x290   :  { %4040 = vpow2.f32 %v3811_v45  ;;  %v2720_v25 = vadd.f32 %v4033_v19, %v2719_v29  ;;  %v2837_v3 = vsel %vm594_vm2, %v2801_v57, 0.0  ;;  %v2743_v36 = vor.u32 1.1754944e-38, %v2742_v8 }
 0x291   :  { %v1244_v6 = vpop.f32.mrf.mxu1  ;;  %4042 = vrcp.f32 %v6062_v39  ;;  %v2420_v24 = vpop.f32.mrf.mxu3  ;;  %2838 = vadd.xlane.f32.xlu2 %v2837_v3  ;;  %v2755_v53 = vand.u32 2147483647, %v6062_v39  ;;  %v2757_v16 = vand.u32 2147483648, %v6062_v39  ;;  %vm2751_vm6 = vweird.f32 %v6062_v39 }
 0x292   :  { %v1245_v35 = vadd.f32 %v1244_v6, %v5739_v49  ;;  %v2421_v37 = vadd.f32 %v2420_v24, %v5739_v49  ;;  %v2724_v34 = vsel %vm2723_vm7, %v4033_v19, %v2720_v25  ;;  %v1296_v6 = vrot.slane %v6042_v4, 3 }
 0x293   :  { %v4039_v31 = vpop.eup %4038  ;;  %v2729_v10 = vsel %vm2726_vm8, %v2728_v32, %v2724_v34  ;;  %vm2756_vm8 = vcmp.eq.f32.partialorder %v2755_v53, 8.507059e+37  ;;  %v2758_v59 = vor.u32 1.1754944e-38, %v2757_v16 }
 0x294   :  { %v1340_v44 = vadd.f32 %v1308_v63, %v1245_v35  ;;  %3815 = vmatmul.msk.f32.vlgmr.msra.gmra.mxu1 %vm594_vm2, %v3377_v26  ;;  %v2486_v22 = vadd.f32 %v2454_v42, %v2421_v37  ;;  %v2802_v30 = vmul.f32 %v2729_v10, %v5779_v21  ;;  %v2732_v38 = vmul.f32 %v4039_v31, %v6050_v40 }
 0x295   :  { %vm2737_vm12 = vweird.f32 %v4039_v31  ;;  %v1295_v40 = vrot.slane %v6042_v4, 2  ;;  %v1311_v10 = vperm.slane %v1296_v6, 0 }
 0x296   :  { %v3747_v62 = vmul.f32 -1.442695, %v1340_v44  ;;  %v4041_v12 = vpop.eup %4040  ;;  %v3812_v0 = vmul.f32 -1.442695, %v2486_v22  ;;  %v2840_v55 = vsel %vm594_vm2, %v2802_v30, 0.0  ;;  %v2733_v54 = vsub.f32 1.0, %v2732_v38  ;;  %vm2738_vm13 = vmor %vm2736_vm11, %vm2737_vm12 }
 0x297   :  { %v4043_v11 = vpop.eup %4042  ;;  %v6079_v7 = vadd.f32 1.0, %v4041_v12  ;;  %2841 = vadd.xlane.f32.xlu0 %v2840_v55 }
 0x298   :  { %4044 = vpow2.f32 %v3747_v62  ;;  %v2734_v1 = vmul.f32 %v4039_v31, %v2733_v54  ;;  %v2747_v52 = vmul.f32 %v4043_v11, %v6062_v39  ;;  %vm2752_vm5 = vweird.f32 %v4043_v11 }
 0x299   :  { %4046 = vpow2.f32 %v3812_v0  ;;  %v1247_v41 = vpop.f32.mrf.mxu1  ;;  %vm2753_vm7 = vmor %vm2751_vm6, %vm2752_vm5  ;;  %v1310_v39 = vperm.slane %v1295_v40, 0  ;;  %v2772_v25 = vand.u32 2147483648, %v6079_v7  ;;  %v2770_v42 = vand.u32 2147483647, %v6079_v7 }
 0x29a   :  { %4048 = vrcp.f32 %v6079_v7  ;;  %v1248_v56 = vadd.f32 %v1247_v41, %v5739_v49  ;;  %v2735_v18 = vadd.f32 %v4039_v31, %v2734_v1  ;;  %v2748_v19 = vsub.f32 1.0, %v2747_v52 }
 0x29b   :  { %vm2766_vm11 = vweird.f32 %v6079_v7  ;;  %v2773_v22 = vor.u32 1.1754944e-38, %v2772_v25 }
 0x29c   :  { %v1341_v28 = vadd.f32 %v1309_v50, %v1248_v56  ;;  %3816 = vmatmul.msk.f32.gmra.mxu1 %vm594_vm2, %v5562_v15  ;;  %v2739_v43 = vsel %vm2738_vm13, %v4039_v31, %v2735_v18  ;;  %v2749_v9 = vmul.f32 %v4043_v11, %v2748_v19 }
 0x29d   :  { %v2744_v33 = vsel %vm2741_vm9, %v2743_v36, %v2739_v43  ;;  %vm2771_vm9 = vcmp.eq.f32.partialorder %v2770_v42, 8.507059e+37 }
 0x29e   :  { %v4045_v58 = vpop.eup %4044  ;;  %v3748_v46 = vmul.f32 -1.442695, %v1341_v28  ;;  %v2803_v15 = vmul.f32 %v2744_v33, %v5779_v21  ;;  %v2750_v27 = vadd.f32 %v4043_v11, %v2749_v9 }
 0x29f   :  { %v4047_v61 = vpop.eup %4046  ;;  %v6092_v17 = vadd.f32 1.0, %v4045_v58 }
 0x2a0   :  { %v4049_v60 = vpop.eup %4048  ;;  %v6096_v51 = vadd.f32 1.0, %v4047_v61  ;;  %4050 = vpow2.f32 %v3748_v46  ;;  %v2843_v48 = vsel %vm594_vm2, %v2803_v15, 0.0  ;;  %v2754_v13 = vsel %vm2753_vm7, %v4043_v11, %v2750_v27 }
 0x2a1   :  { %4052 = vrcp.f32 %v6092_v17  ;;  %v1250_v45 = vpop.f32.mrf.mxu1  ;;  %v2762_v29 = vmul.f32 %v4049_v60, %v6079_v7  ;;  %2844 = vadd.xlane.f32.xlu1 %v2843_v48  ;;  %v2759_v2 = vsel %vm2756_vm8, %v2758_v59, %v2754_v13  ;;  %vm2767_vm12 = vweird.f32 %v4049_v60 }
 0x2a2   :  { %4054 = vrcp.f32 %v6096_v51  ;;  %v1251_v20 = vadd.f32 %v1250_v45, %v5739_v49  ;;  %v2804_v63 = vmul.f32 %v2759_v2, %v5779_v21  ;;  %vm2768_vm13 = vmor %vm2766_vm11, %vm2767_vm12  ;;  %v1431_v54 = vand.u32 2147483648, %v6092_v17 }
 0x2a3   :  { %v2763_v26 = vsub.f32 1.0, %v2762_v29  ;;  %v1429_v41 = vand.u32 2147483647, %v6092_v17  ;;  %vm1425_vm6 = vweird.f32 %v6092_v17  ;;  %v2787_v28 = vand.u32 2147483648, %v6096_v51 }
 0x2a4   :  { %v1342_v57 = vadd.f32 %v1310_v39, %v1251_v20  ;;  %v2846_v35 = vsel %vm594_vm2, %v2804_v63, 0.0  ;;  %v1432_v19 = vor.u32 1.1754944e-38, %v1431_v54  ;;  %vm2781_vm12 = vweird.f32 %v6096_v51 }
 0x2a5   :  { %v2764_v24 = vmul.f32 %v4049_v60, %v2763_v26  ;;  %2847 = vadd.xlane.f32.xlu2 %v2846_v35  ;;  %v2785_v43 = vand.u32 2147483647, %v6096_v51  ;;  %vm1430_vm11 = vcmp.eq.f32.partialorder %v1429_v41, 8.507059e+37 }
 0x2a6   :  { %v4051_v32 = vpop.eup %4050  ;;  %v3749_v3 = vmul.f32 -1.442695, %v1342_v57 }
 0x2a7   :  { %v4053_v37 = vpop.eup %4052  ;;  %v6108_v34 = vadd.f32 1.0, %v4051_v32  ;;  %v2765_v31 = vadd.f32 %v4049_v60, %v2764_v24 }
 0x2a8   :  { %v4055_v44 = vpop.eup %4054  ;;  %4056 = vpow2.f32 %v3749_v3  ;;  %v1421_v30 = vmul.f32 %v4053_v37, %v6092_v17  ;;  %vm1426_vm5 = vweird.f32 %v4053_v37  ;;  %v2788_v17 = vor.u32 1.1754944e-38, %v2787_v28 }
 0x2a9   :  { %4058 = vrcp.f32 %v6108_v34  ;;  %v1253_v38 = vpop.f32.mrf.mxu1  ;;  %v2769_v62 = vsel %vm2768_vm13, %v4049_v60, %v2765_v31  ;;  %v2777_v23 = vmul.f32 %v4055_v44, %v6096_v51  ;;  %vm2782_vm7 = vweird.f32 %v4055_v44  ;;  %vm1427_vm8 = vmor %vm1425_vm6, %vm1426_vm5 }
 0x2aa   :  { %v1254_v12 = vadd.f32 %v1253_v38, %v5739_v49  ;;  %v2774_v0 = vsel %vm2771_vm9, %v2773_v22, %v2769_v62  ;;  %v1422_v55 = vsub.f32 1.0, %v1421_v30  ;;  %vm2783_vm13 = vmor %vm2781_vm12, %vm2782_vm7  ;;  %vm2786_vm9 = vcmp.eq.f32.partialorder %v2785_v43, 8.507059e+37 }
 0x2ab   :  { %v2805_v11 = vmul.f32 %v2774_v0, %v5779_v21  ;;  %v2778_v7 = vsub.f32 1.0, %v2777_v23  ;;  %v1444_v27 = vand.u32 2147483647, %v6108_v34  ;;  %v1446_v60 = vand.u32 2147483648, %v6108_v34 }
 0x2ac   :  { %v1343_v5 = vadd.f32 %v1311_v10, %v1254_v12  ;;  %v1423_v8 = vmul.f32 %v4053_v37, %v1422_v55  ;;  %vm1440_vm6 = vweird.f32 %v6108_v34 }
 0x2ad   :  { %v2849_v1 = vsel %vm594_vm2, %v2805_v11, 0.0  ;;  %v2779_v52 = vmul.f32 %v4055_v44, %v2778_v7  ;;  %v1447_v39 = vor.u32 1.1754944e-38, %v1446_v60 }
 0x2ae   :  { %v4057_v56 = vpop.eup %4056  ;;  %v3750_v50 = vmul.f32 -1.442695, %v1343_v5  ;;  %2850 = vadd.xlane.f32.xlu0 %v2849_v1  ;;  %v1424_v18 = vadd.f32 %v4053_v37, %v1423_v8 }
 0x2af   :  { %v4059_v36 = vpop.eup %4058  ;;  %v1406_v53 = vadd.f32 1.0, %v4057_v56  ;;  %v2780_v16 = vadd.f32 %v4055_v44, %v2779_v52 }
 0x2b0   :  { %4060 = vpow2.f32 %v3750_v50  ;;  %v1428_v9 = vsel %vm1427_vm8, %v4053_v37, %v1424_v18  ;;  %v1436_v58 = vmul.f32 %v4059_v36, %v6108_v34  ;;  %vm1441_vm5 = vweird.f32 %v4059_v36  ;;  %v4132_v50 = vld [vmem:[#allocation5] sm:$0x3f] }
 0x2b1   :  { %4062 = vrcp.f32 %v1406_v53  ;;  %v6125_v46 = vpop.f32.mrf.mxu1  ;;  %v1433_v33 = vsel %vm1430_vm11, %v1432_v19, %v1428_v9  ;;  %v2784_v40 = vsel %vm2783_vm13, %v4055_v44, %v2780_v16  ;;  %vm1442_vm7 = vmor %vm1440_vm6, %vm1441_vm5  ;;  %vm1445_vm8 = vcmp.eq.f32.partialorder %v1444_v27, 8.507059e+37 }
 0x2b2   :  { %v1661_v61 = vmul.f32 %v5779_v21, %v1433_v33  ;;  %v1437_v15 = vsub.f32 1.0, %v1436_v58  ;;  %v2789_v59 = vsel %vm2786_vm9, %v2788_v17, %v2784_v40  ;;  %v1459_v42 = vand.u32 2147483647, %v1406_v53 }
 0x2b3   :  { %v2806_v20 = vmul.f32 %v2789_v59, %v5779_v21  ;;  %v1461_v32 = vand.u32 2147483648, %v1406_v53  ;;  %vm1455_vm11 = vweird.f32 %v1406_v53  ;;  %v6144_v18 = vperm.slane %v4132_v50, 5 }
 0x2b4   :  { %v1677_v51 = vsel %vm594_vm2, %v1661_v61, 0.0  ;;  %v1438_v48 = vmul.f32 %v4059_v36, %v1437_v15  ;;  %vm1460_vm9 = vcmp.eq.f32.partialorder %v1459_v42, 8.507059e+37  ;;  %v1299_v19 = vrot.slane %v6042_v4, 6 }
 0x2b5   :  { %1678 = vadd.xlane.f32.xlu1 %v1677_v51  ;;  %v2852_v24 = vsel %vm594_vm2, %v2806_v20, 0.0  ;;  %v1462_v31 = vor.u32 1.1754944e-38, %v1461_v32  ;;  %v6152_v16 = vadd.f32 %v6038_v47, %v5723_v14  ;;  %v1297_v58 = vrot.slane %v6042_v4, 4 }
 0x2b6   :  { %v4061_v45 = vpop.eup %4060  ;;  %v1439_v13 = vadd.f32 %v4059_v36, %v1438_v48  ;;  %v1314_v9 = vperm.slane %v1299_v19, 0  ;;  %v1257_v40 = vadd.f32 %v6125_v46, %v5739_v49 }
 0x2b7   :  { %v4063_v29 = vpop.eup %4062  ;;  %v1407_v2 = vadd.f32 1.0, %v4061_v45  ;;  %v1302_v61 = vrot.slane %v6152_v16, 2  ;;  %v1312_v15 = vperm.slane %v1297_v58, 0 }
 0x2b8   :  { %v1443_v63 = vsel %vm1442_vm7, %v4059_v36, %v1439_v13  ;;  %v1451_v26 = vmul.f32 %v4063_v29, %v1406_v53  ;;  %vm1456_vm12 = vweird.f32 %v4063_v29 }
 0x2b9   :  { %v6133_v57 = vpop.f32.mrf.mxu1  ;;  %v1448_v6 = vsel %vm1445_vm8, %v1447_v39, %v1443_v63  ;;  %4064 = vrcp.f32 %v1407_v2  ;;  %vm1457_vm13 = vmor %vm1455_vm11, %vm1456_vm12  ;;  %v1476_v0 = vand.u32 2147483648, %v1407_v2  ;;  %v1474_v11 = vand.u32 2147483647, %v1407_v2 }
 0x2ba   :  { %v1662_v25 = vmul.f32 %v5779_v21, %v1448_v6  ;;  %v1452_v35 = vsub.f32 1.0, %v1451_v26  ;;  %vm1470_vm6 = vweird.f32 %v1407_v2  ;;  %v1344_v51 = vadd.f32 %v1312_v15, %v1257_v40 }
 0x2bb   :  { %v1477_v5 = vor.u32 1.1754944e-38, %v1476_v0  ;;  %vm1475_vm8 = vcmp.eq.f32.partialorder %v1474_v11, 8.507059e+37  ;;  %v1318_v59 = vperm.slane %v1302_v61, 0  ;;  %v1298_v6 = vrot.slane %v6042_v4, 5 }
 0x2bc   :  { %v1680_v3 = vsel %vm594_vm2, %v1662_v25, 0.0  ;;  %v1453_v37 = vmul.f32 %v4063_v29, %v1452_v35  ;;  %v3751_v13 = vmul.f32 -1.442695, %v1344_v51  ;;  %v1260_v35 = vadd.f32 %v6133_v57, %v5739_v49 }
 0x2bd   :  { %2853 = vadd.xlane.f32.xlu1 %v2852_v24  ;;  %1681 = vadd.xlane.f32.xlu2 %v1680_v3  ;;  %v1313_v42 = vperm.slane %v1298_v6, 0 }
 0x2be   :  { %v1454_v34 = vadd.f32 %v4063_v29, %v1453_v37 }
 0x2bf   :  { %v4065_v30 = vpop.eup %4064  ;;  %v1345_v37 = vadd.f32 %v1313_v42, %v1260_v35 }
 0x2c0   :  { %v1458_v44 = vsel %vm1457_vm13, %v4063_v29, %v1454_v34  ;;  %v1466_v23 = vmul.f32 %v4065_v30, %v1407_v2  ;;  %vm1471_vm5 = vweird.f32 %v4065_v30  ;;  %v1316_v34 = vperm.slane %v6152_v16, 0 }
 0x2c1   :  { %v1262_v10 = vpop.f32.mrf.mxu1  ;;  %v1463_v22 = vsel %vm1460_vm9, %v1462_v31, %v1458_v44  ;;  %vm1472_vm7 = vmor %vm1470_vm6, %vm1471_vm5  ;;  %v1305_v44 = vrot.slane %v6152_v16, 5 }
 0x2c2   :  { %v1663_v38 = vmul.f32 %v5779_v21, %v1463_v22  ;;  %v1467_v12 = vsub.f32 1.0, %v1466_v23  ;;  %v1263_v28 = vadd.f32 %v1262_v10, %v5739_v49 }
 0x2c4   :  { %v1683_v62 = vsel %vm594_vm2, %v1663_v38, 0.0  ;;  %v1468_v54 = vmul.f32 %v4065_v30, %v1467_v12  ;;  %v1346_v33 = vadd.f32 %v1314_v9, %v1263_v28  ;;  %v3752_v38 = vmul.f32 -1.442695, %v1345_v37 }
 0x2c5   :  { %1684 = vadd.xlane.f32.xlu0 %v1683_v62  ;;  %v1321_v62 = vperm.slane %v1305_v44, 0 }
 0x2c6   :  { %v1469_v7 = vadd.f32 %v4065_v30, %v1468_v54  ;;  %v3753_v27 = vmul.f32 -1.442695, %v1346_v33 }
 0x2c8   :  { %v1473_v8 = vsel %vm1472_vm7, %v4065_v30, %v1469_v7  ;;  %4066 = vpow2.f32 %v3753_v27 }
 0x2c9   :  { %v6140_v55 = vpop.f32.mrf.mxu1  ;;  %v1478_v41 = vsel %vm1475_vm8, %v1477_v5, %v1473_v8  ;;  %4068 = vpow2.f32 %v3751_v13 }
 0x2ca   :  { %v1664_v1 = vmul.f32 %v5779_v21, %v1478_v41 }
 0x2cc   :  { %v1686_v52 = vsel %vm594_vm2, %v1664_v1, 0.0 }
 0x2cd   :  { %1687 = vadd.xlane.f32.xlu2 %v1686_v52 }
 0x2ce   :  { %v4067_v20 = vpop.eup %4066 }
 0x2cf   :  { %v1410_v39 = vadd.f32 1.0, %v4067_v20  ;;  %v4069_v26 = vpop.eup %4068 }
 0x2d0   :  { %v2821_v17 = vpop.xlane.xlu2 %2820  ;;  %v1408_v24 = vadd.f32 1.0, %v4069_v26 }
 0x2d1   :  { %v1268_v56 = vpop.f32.mrf.mxu1  ;;  %v2859_v14 = vadd.f32 %v2821_v17, %v6144_v18  ;;  %4070 = vrcp.f32 %v1410_v39  ;;  %v1521_v1 = vand.u32 2147483648, %v1410_v39  ;;  %vm1515_vm11 = vweird.f32 %v1410_v39 }
 0x2d2   :  { %v1269_v32 = vadd.f32 %v1268_v56, %v5739_v49  ;;  %4072 = vrcp.f32 %v1408_v24  ;;  %v1519_v56 = vand.u32 2147483647, %v1410_v39  ;;  %v1491_v15 = vand.u32 2147483648, %v1408_v24 }
 0x2d3   :  { %4074 = vpow2.f32 %v3752_v38  ;;  %vm1485_vm6 = vweird.f32 %v1408_v24  ;;  %v1301_v38 = vrot.slane %v6152_v16, 1 }
 0x2d4   :  { %v1348_v22 = vadd.f32 %v1316_v34, %v1269_v32  ;;  %vm1520_vm9 = vcmp.eq.f32.partialorder %v1519_v56, 8.507059e+37  ;;  %v1300_v34 = vrot.slane %v6042_v4, 7 }
 0x2d6   :  { %v3755_v12 = vmul.f32 -1.442695, %v1348_v22  ;;  %v1266_v22 = vadd.f32 %v6140_v55, %v5739_v49 }
 0x2d7   :  { %v4071_v10 = vpop.eup %4070 }
 0x2d8   :  { %v2809_v36 = vpop.xlane.xlu1 %2808  ;;  %v1511_v23 = vmul.f32 %v4071_v10, %v1410_v39  ;;  %v4073_v54 = vpop.eup %4072  ;;  %vm1516_vm12 = vweird.f32 %v4071_v10  ;;  %4076 = vpow2.f32 %v3755_v12 }
 0x2d9   :  { %v6148_v53 = vpop.f32.mrf.mxu1  ;;  %v2855_v43 = vadd.f32 %v2809_v36, %v6144_v18  ;;  %v1481_v41 = vmul.f32 %v4073_v54, %v1408_v24  ;;  %vm1517_vm13 = vmor %vm1515_vm11, %vm1516_vm12  ;;  %v4075_v19 = vpop.eup %4074  ;;  %v1522_v36 = vor.u32 1.1754944e-38, %v1521_v1  ;;  %vm1486_vm5 = vweird.f32 %v4073_v54 }
 0x2da   :  { %v1512_v7 = vsub.f32 1.0, %v1511_v23  ;;  %v1409_v58 = vadd.f32 1.0, %v4075_v19  ;;  %vm1487_vm7 = vmor %vm1485_vm6, %vm1486_vm5  ;;  %v1272_v4 = vadd.f32 %v6148_v53, %v5739_v49 }
 0x2db   :  { %2873 = vperm.xlu0 %3835, %v2855_v43   ;;  %v1482_v28 = vsub.f32 1.0, %v1481_v41 }
 0x2dc   :  { %v1513_v8 = vmul.f32 %v4071_v10, %v1512_v7  ;;  %4078 = vrcp.f32 %v1409_v58  ;;  %vm1500_vm11 = vweird.f32 %v1409_v58  ;;  %v1504_v42 = vand.u32 2147483647, %v1409_v58 }
 0x2dd   :  { %v1483_v33 = vmul.f32 %v4073_v54, %v1482_v28  ;;  %v1317_v7 = vperm.slane %v1301_v38, 0 }
 0x2de   :  { %v1514_v52 = vadd.f32 %v4071_v10, %v1513_v8  ;;  %v4077_v43 = vpop.eup %4076 }
 0x2df   :  { %v1412_v40 = vadd.f32 1.0, %v4077_v43  ;;  %v1484_v17 = vadd.f32 %v4073_v54, %v1483_v33  ;;  %v1349_v8 = vadd.f32 %v1317_v7, %v1272_v4  ;;  %v1303_v43 = vrot.slane %v6152_v16, 3 }
 0x2e0   :  { %v1518_v50 = vsel %vm1517_vm13, %v4071_v10, %v1514_v52 }
 0x2e1   :  { %v1274_v60 = vpop.f32.mrf.mxu1  ;;  %v1523_v9 = vsel %vm1520_vm9, %v1522_v36, %v1518_v50  ;;  %4080 = vrcp.f32 %v1412_v40  ;;  %v1488_v51 = vsel %vm1487_vm7, %v4073_v54, %v1484_v17  ;;  %vm1505_vm9 = vcmp.eq.f32.partialorder %v1504_v42, 8.507059e+37 }
 0x2e2   :  { %v1275_v47 = vadd.f32 %v1274_v60, %v5739_v49  ;;  %v1667_v61 = vmul.f32 %v5779_v21, %v1523_v9  ;;  %v1489_v60 = vand.u32 2147483647, %v1408_v24  ;;  %v1506_v24 = vand.u32 2147483648, %v1409_v58 }
 0x2e3   :  { %2893 = vperm.xlu0 %3835, %v2859_v14   ;;  %v2812_v45 = vpop.xlane.xlu0 %2811  ;;  %v4079_v14 = vpop.eup %4078  ;;  %v1551_v23 = vand.u32 2147483648, %v1412_v40  ;;  %vm1545_vm6 = vweird.f32 %v1412_v40  ;;  %v1549_v54 = vand.u32 2147483647, %v1412_v40  ;;  %v3756_v50 = vmul.f32 -1.442695, %v1349_v8 }
 0x2e4   :  { %v6161_v48 = vadd.f32 %v1318_v59, %v1275_v47  ;;  %v2856_v46 = vadd.f32 %v2812_v45, %v6144_v18  ;;  %v1695_v27 = vsel %vm594_vm2, %v1667_v61, 0.0  ;;  %v1492_v47 = vor.u32 1.1754944e-38, %v1491_v15 }
 0x2e5   :  { %vm1490_vm8 = vcmp.eq.f32.partialorder %v1489_v60, 8.507059e+37  ;;  %v1496_v13 = vmul.f32 %v4079_v14, %v1409_v58  ;;  %vm1501_vm12 = vweird.f32 %v4079_v14  ;;  %v1507_v44 = vor.u32 1.1754944e-38, %v1506_v24 }
 0x2e6   :  { %2878 = vperm.xlu2 %3837, %v2856_v46   ;;  %v1493_v45 = vsel %vm1490_vm8, %v1492_v47, %v1488_v51  ;;  %vm1502_vm13 = vmor %vm1500_vm11, %vm1501_vm12  ;;  %v1552_v55 = vor.u32 1.1754944e-38, %v1551_v23  ;;  %vm1550_vm8 = vcmp.eq.f32.partialorder %v1549_v54, 8.507059e+37  ;;  %v1319_v61 = vperm.slane %v1303_v43, 0 }
 0x2e7   :  { %v4081_v59 = vpop.eup %4080  ;;  %v1665_v20 = vmul.f32 %v5779_v21, %v1493_v45  ;;  %v1497_v39 = vsub.f32 1.0, %v1496_v13  ;;  %v1306_v51 = vrot.slane %v6152_v16, 6 }
 0x2e8   :  { %vm1546_vm5 = vweird.f32 %v4081_v59 }
 0x2e9   :  { %v6164_v29 = vpop.f32.mrf.mxu1  ;;  %v1689_v26 = vsel %vm594_vm2, %v1665_v20, 0.0  ;;  %vm1547_vm7 = vmor %vm1545_vm6, %vm1546_vm5 }
 0x2ea   :  { %v1278_v58 = vadd.f32 %v6164_v29, %v5739_v49  ;;  %v1322_v29 = vperm.slane %v1306_v51, 0 }
 0x2ec   :  { %v1351_v17 = vadd.f32 %v1319_v61, %v1278_v58 }
 0x2ed   :  { %v2818_v2 = vpop.xlane.xlu1 %2817 }
 0x2ee   :  { %v2858_v63 = vadd.f32 %v2818_v2, %v6144_v18  ;;  %v1541_v2 = vmul.f32 %v4081_v59, %v1412_v40  ;;  %v3758_v47 = vmul.f32 -1.442695, %v1351_v17  ;;  %v6788_v17 = vld [vmem:[#allocation16_spill] sm:$0xff] }
 0x2f0   :  { %2888 = vperm.xlu1 %3836, %v2858_v63   ;;  %v1498_v63 = vmul.f32 %v4079_v14, %v1497_v39  ;;  %v1542_v35 = vsub.f32 1.0, %v1541_v2 }
 0x2f1   :  { %v6168_v25 = vpop.f32.mrf.mxu1 }
 0x2f2   :  { %v2815_v3 = vpop.xlane.xlu0 %2814  ;;  %v1499_v6 = vadd.f32 %v4079_v14, %v1498_v63  ;;  %v1543_v37 = vmul.f32 %v4081_v59, %v1542_v35 }
 0x2f3   :  { %v2857_v31 = vadd.f32 %v2815_v3, %v6144_v18 }
 0x2f4   :  { %v1503_v3 = vsel %vm1502_vm13, %v4079_v14, %v1499_v6 }
 0x2f5   :  { %2883 = vperm.xlu2 %3837, %v2857_v31   ;;  %v2827_v46 = vpop.xlane.xlu1 %2826  ;;  %v6185_v31 = vpop.xlane.xlu2 %2829 }
 0x2f6   :  { %v2861_v36 = vadd.f32 %v2827_v46, %v6144_v18 }
 0x2f9   :  { %v1283_v30 = vpop.f32.mrf.mxu1 }
 0x2fa   :  { %v1284_v57 = vadd.f32 %v1283_v30, %v5739_v49  ;;  %v2824_v11 = vpop.xlane.xlu0 %2823  ;;  %v1508_v30 = vsel %vm1505_vm9, %v1507_v44, %v1503_v3 }
 0x2fb   :  { %v2860_v5 = vadd.f32 %v2824_v11, %v6144_v18  ;;  %v1666_v12 = vmul.f32 %v5779_v21, %v1508_v30 }
 0x2fc   :  { %v6177_v0 = vadd.f32 %v1321_v62, %v1284_v57  ;;  %v1544_v57 = vadd.f32 %v4081_v59, %v1543_v37  ;;  %v1315_v62 = vperm.slane %v1300_v34, 0 }
 0x2fd   :  { %2898 = vperm.xlu2 %3837, %v2860_v5   ;;  %v2836_v32 = vpop.xlane.xlu1 %2835  ;;  %v1692_v41 = vsel %vm594_vm2, %v1666_v12, 0.0  ;;  %v6195_v52 = vpop.xlane.xlu2 %2832 }
 0x2fe   :  { %v2864_v10 = vadd.f32 %v2836_v32, %v6144_v18  ;;  %v1347_v11 = vadd.f32 %v1315_v62, %v1266_v22  ;;  %v1548_v5 = vsel %vm1547_vm7, %v4081_v59, %v1544_v57 }
 0x2ff   :  { %v1553_v56 = vsel %vm1550_vm8, %v1552_v55, %v1548_v5  ;;  %v1304_v5 = vrot.slane %v6152_v16, 4 }
 0x300   :  { %v3754_v1 = vmul.f32 -1.442695, %v1347_v11  ;;  %v1669_v53 = vmul.f32 %v5779_v21, %v1553_v56 }
 0x301   :  { %v1320_v61 = vperm.slane %v1304_v5, 0 }
 0x302   :  { %4082 = vpow2.f32 %v3754_v1  ;;  %v1701_v19 = vsel %vm594_vm2, %v1669_v53, 0.0 }
 0x303   :  { %4084 = vpow2.f32 %v3756_v50  ;;  %v1281_v50 = vadd.f32 %v6168_v25, %v5739_v49 }
 0x305   :  { %v6199_v28 = vpop.xlane.xlu2 %2838 }
 0x308   :  { %v4083_v9 = vpop.eup %4082 }
 0x309   :  { %v4085_v33 = vpop.eup %4084  ;;  %v6205_v40 = vadd.f32 1.0, %v4083_v9  ;;  %v4133_v9 = vld [vmem:[%s6595_s1 + $0x8] sm:$0xff] }
 0x30a   :  { %v1413_v15 = vadd.f32 1.0, %v4085_v33  ;;  %v2842_v14 = vpop.xlane.xlu0 %2841  ;;  %v4134_v33 = vld [vmem:[%s6595_s1] sm:$0xff] }
 0x30b   :  { %4086 = vrcp.f32 %v6205_v40  ;;  %v2866_v35 = vadd.f32 %v2842_v14, %v6144_v18  ;;  %v1536_v11 = vand.u32 2147483648, %v6205_v40  ;;  %vm1530_vm6 = vweird.f32 %v6205_v40 }
 0x30c   :  { %4088 = vrcp.f32 %v1413_v15  ;;  %v1566_v34 = vand.u32 2147483648, %v1413_v15  ;;  %vm1560_vm11 = vweird.f32 %v1413_v15  ;;  %v1534_v8 = vand.u32 2147483647, %v6205_v40 }
 0x30d   :  { %1696 = vadd.xlane.f32.xlu0 %v1695_v27  ;;  %v1286_v27 = vpop.f32.mrf.mxu1  ;;  %4090 = vpow2.f32 %v3758_v47  ;;  %v1537_v43 = vor.u32 1.1754944e-38, %v1536_v11  ;;  %v1352_v47 = vadd.f32 %v1320_v61, %v1281_v50  ;;  %v6791_v11 = vld [vmem:[#allocation14_spill] sm:$0xff] }
 0x30e   :  { %v1287_v59 = vadd.f32 %v1286_v27, %v5739_v49  ;;  %v1567_v57 = vor.u32 1.1754944e-38, %v1566_v34  ;;  %vm1535_vm8 = vcmp.eq.f32.partialorder %v1534_v8, 8.507059e+37  ;;  %v6789_v27 = vld [vmem:[#allocation19_spill] sm:$0xff] }
 0x310   :  { %v1354_v13 = vadd.f32 %v1322_v29, %v1287_v59 }
 0x311   :  { %v4087_v45 = vpop.eup %4086 }
 0x312   :  { %v4089_v20 = vpop.eup %4088  ;;  %v1526_v2 = vmul.f32 %v4087_v45, %v6205_v40  ;;  %v3761_v63 = vmul.f32 -1.442695, %v1354_v13  ;;  %vm1531_vm5 = vweird.f32 %v4087_v45 }
 0x313   :  { %v1556_v6 = vmul.f32 %v4089_v20, %v1413_v15  ;;  %vm1561_vm12 = vweird.f32 %v4089_v20  ;;  %vm6236_vm7 = vmor %vm1530_vm6, %vm1531_vm5 }
 0x314   :  { %v1527_v24 = vsub.f32 1.0, %v1526_v2  ;;  %4092 = vpow2.f32 %v3761_v63  ;;  %v6218_v42 = vpop.xlane.xlu1 %2844  ;;  %vm1562_vm13 = vmor %vm1560_vm11, %vm1561_vm12 }
 0x315   :  { %v1557_v32 = vsub.f32 1.0, %v1556_v6  ;;  %v3759_v6 = vmul.f32 -1.442695, %v1352_v47  ;;  %v4137_v47 = vld [vmem:[%s6595_s1 + $0x18] sm:$0xff] }
 0x316   :  { %v1528_v30 = vmul.f32 %v4087_v45, %v1527_v24 }
 0x317   :  { %v1558_v44 = vmul.f32 %v4089_v20, %v1557_v32 }
 0x318   :  { %v6207_v60 = vpop.xlane.xlu2 %2847  ;;  %v1529_v4 = vadd.f32 %v4087_v45, %v1528_v30  ;;  %v4136_v30 = vld [vmem:[%s6595_s1 + $0x20] sm:$0xff] }
 0x319   :  { %v1559_v38 = vadd.f32 %v4089_v20, %v1558_v44  ;;  %v4135_v44 = vld [vmem:[%s6595_s1 + $0x10] sm:$0xff] }
 0x31a   :  { %1690 = vadd.xlane.f32.xlu1 %v1689_v26  ;;  %v4091_v26 = vpop.eup %4090  ;;  %v1533_v53 = vsel %vm6236_vm7, %v4087_v45, %v1529_v4  ;;  %v6790_v4 = vld [vmem:[#allocation17_spill] sm:$0xff] }
 0x31b   :  { %v6220_v3 = vadd.f32 1.0, %v4091_v26  ;;  %v4093_v62 = vpop.eup %4092  ;;  %v1563_v23 = vsel %vm1562_vm13, %v4089_v20, %v1559_v38  ;;  %v1538_v25 = vsel %vm1535_vm8, %v1537_v43, %v1533_v53 }
 0x31c   :  { %v6232_v55 = vadd.f32 1.0, %v4093_v62  ;;  %v1668_v45 = vmul.f32 %v5779_v21, %v1538_v25 }
 0x31d   :  { %4094 = vrcp.f32 %v6220_v3  ;;  %vm1590_vm11 = vweird.f32 %v6220_v3 }
 0x31e   :  { %4096 = vrcp.f32 %v6232_v55  ;;  %vm1635_vm6 = vweird.f32 %v6232_v55 }
 0x31f   :  { %4098 = vpow2.f32 %v3759_v6  ;;  %v6792_v6 = vld [vmem:[#allocation23_spill] sm:$0xff] }
 0x321   :  { %2918 = vperm.xlu0 %3835, %v2864_v10   ;;  %v6214_v39 = vpop.xlane.xlu0 %2850  ;;  %v1564_v10 = vand.u32 2147483647, %v1413_v15 }
 0x323   :  { %vm1565_vm9 = vcmp.eq.f32.partialorder %v1564_v10, 8.507059e+37  ;;  %v6241_v56 = vpop.eup %4094 }
 0x324   :  { %v1568_v12 = vsel %vm1565_vm9, %v1567_v57, %v1563_v23  ;;  %v1586_v14 = vmul.f32 %v6241_v56, %v6220_v3  ;;  %v6263_v26 = vpop.eup %4096  ;;  %v1698_v57 = vsel %vm594_vm2, %v1668_v45, 0.0  ;;  %vm1591_vm12 = vweird.f32 %v6241_v56 }
 0x325   :  { %v1670_v7 = vmul.f32 %v5779_v21, %v1568_v12  ;;  %v1631_v8 = vmul.f32 %v6263_v26, %v6232_v55  ;;  %v4099_v45 = vpop.eup %4098  ;;  %vm1592_vm13 = vmor %vm1590_vm11, %vm1591_vm12  ;;  %vm1636_vm5 = vweird.f32 %v6263_v26 }
 0x326   :  { %1693 = vadd.xlane.f32.xlu2 %v1692_v41  ;;  %v1587_v63 = vsub.f32 1.0, %v1586_v14  ;;  %v2865_v14 = vadd.f32 %v6199_v28, %v6144_v18  ;;  %vm1637_vm7 = vmor %vm1635_vm6, %vm1636_vm5 }
 0x327   :  { %v1704_v1 = vsel %vm594_vm2, %v1670_v7, 0.0 }
 0x328   :  { %v6227_v54 = vpop.xlane.xlu1 %1678  ;;  %v1588_v5 = vmul.f32 %v6241_v56, %v1587_v63  ;;  %v1594_v63 = vand.u32 2147483647, %v6220_v3 }
 0x32a   :  { %vm1595_vm9 = vcmp.eq.f32.partialorder %v1594_v63, 8.507059e+37 }
 0x32e   :  { %1702 = vadd.xlane.f32.xlu2 %v1701_v19 }
 0x330   :  { %v6212_v46 = vpop.xlane.xlu2 %1681  ;;  %v6261_v2 = vpop.xlane.xlu1 %2853 }
 0x333   :  { %2903 = vperm.xlu1 %3836, %v2861_v36  }
 0x338   :  { %v6224_v22 = vpop.xlane.xlu0 %1684 }
 0x340   :  { %v6222_v37 = vpop.xlane.xlu2 %1687 }
 0x346   :  { %2928 = vperm.xlu2 %3837, %v2866_v35  }
 0x348   :  { %v2879_v19 = vpop.permute.xlu2 %2878 }
 0x349   :  { %v2952_v58 = vmul.f32 %v4133_v9, %v2879_v19 }
 0x34b   :  { %1705 = vadd.xlane.f32.xlu0 %v1704_v1  ;;  %v2968_v15 = vmul.f32 %v6788_v17, %v2952_v58  ;;  %v1589_v58 = vadd.f32 %v6241_v56, %v1588_v5  ;;  %v3757_v5 = vmul.f32 -1.442695, %v6161_v48 }
 0x34d   :  { %v2874_v36 = vpop.permute.xlu0 %2873  ;;  %v2990_v59 = vsel %vm594_vm2, %v2968_v15, 0.0 }
 0x34e   :  { %v2951_v40 = vmul.f32 %v4134_v33, %v2874_v36  ;;  %v2991_v13 = vrot.slane %v2990_v59, 4  ;;  %v1632_v33 = vsub.f32 1.0, %v1631_v8 }
 0x350   :  { %v2967_v51 = vmul.f32 %v6789_v27, %v2951_v40  ;;  %v2992_v35 = vadd.f32 %v2991_v13, %v2990_v59  ;;  %v2884_v32 = vpop.permute.xlu2 %2883 }
 0x351   :  { %v2953_v10 = vmul.f32 %v4135_v44, %v2884_v32  ;;  %v1593_v32 = vsel %vm1592_vm13, %v6241_v56, %v1589_v58  ;;  %v1416_v44 = vadd.f32 1.0, %v4099_v45  ;;  %v1641_v56 = vand.u32 2147483648, %v6232_v55 }
 0x352   :  { %v2983_v29 = vsel %vm594_vm2, %v2967_v51, 0.0  ;;  %v2993_v62 = vrot.slane %v2992_v35, 2 }
 0x353   :  { %v2984_v20 = vrot.slane %v2983_v29, 4  ;;  %v2969_v12 = vmul.f32 %v6790_v4, %v2953_v10  ;;  %4100 = vrcp.f32 %v1416_v44  ;;  %vm1605_vm11 = vweird.f32 %v1416_v44 }
 0x354   :  { %v2994_v41 = vadd.f32 %v2993_v62, %v2992_v35  ;;  %4102 = vpow2.f32 %v3757_v5  ;;  %v1609_v63 = vand.u32 2147483647, %v1416_v44 }
 0x355   :  { %v2985_v24 = vadd.f32 %v2984_v20, %v2983_v29  ;;  %v2894_v34 = vpop.permute.xlu0 %2893  ;;  %v2997_v50 = vsel %vm594_vm2, %v2969_v12, 0.0  ;;  %v1596_v29 = vand.u32 2147483648, %v6220_v3 }
 0x356   :  { %v2955_v38 = vmul.f32 %v4136_v30, %v2894_v34  ;;  %v2995_v19 = vrot.slane %v2994_v41, 1  ;;  %v2998_v43 = vrot.slane %v2997_v50, 4  ;;  %v1633_v34 = vmul.f32 %v6263_v26, %v1632_v33 }
 0x357   :  { %v2986_v23 = vrot.slane %v2985_v24, 2  ;;  %v1597_v30 = vor.u32 1.1754944e-38, %v1596_v29 }
 0x358   :  { %v2971_v7 = vmul.f32 %v6791_v11, %v2955_v38  ;;  %v2996_v61 = vadd.f32 %v2995_v19, %v2994_v41  ;;  %v2999_v15 = vadd.f32 %v2998_v43, %v2997_v50  ;;  %v1639_v50 = vand.u32 2147483647, %v6232_v55  ;;  %v2899_v5 = vpop.permute.xlu2 %2898 }
 0x359   :  { %v2987_v1 = vadd.f32 %v2986_v23, %v2985_v24  ;;  %v1598_v62 = vsel %vm1595_vm9, %v1597_v30, %v1593_v32  ;;  %v1642_v43 = vor.u32 1.1754944e-38, %v1641_v56  ;;  %v4101_v58 = vpop.eup %4100  ;;  %vm1610_vm9 = vcmp.eq.f32.partialorder %v1609_v63, 8.507059e+37 }
 0x35a   :  { %v3011_v53 = vsel %vm594_vm2, %v2971_v7, 0.0  ;;  %v3000_v20 = vrot.slane %v2999_v15, 2  ;;  %v1634_v7 = vadd.f32 %v6263_v26, %v1633_v34  ;;  %vm1640_vm8 = vcmp.eq.f32.partialorder %v1639_v50, 8.507059e+37 }
 0x35b   :  { %v2988_v36 = vrot.slane %v2987_v1, 1  ;;  %v3012_v9 = vrot.slane %v3011_v53, 4  ;;  %vm1606_vm12 = vweird.f32 %v4101_v58 }
 0x35c   :  { %v3001_v28 = vadd.f32 %v3000_v20, %v2999_v15  ;;  %v1611_v20 = vand.u32 2147483648, %v1416_v44  ;;  %vm1607_vm13 = vmor %vm1605_vm11, %vm1606_vm12 }
 0x35d   :  { %1699 = vadd.xlane.f32.xlu1 %v1698_v57  ;;  %v2989_v25 = vadd.f32 %v2988_v36, %v2987_v1  ;;  %v3013_v51 = vadd.f32 %v3012_v9, %v3011_v53  ;;  %v1672_v1 = vmul.f32 %v5779_v21, %v1598_v62  ;;  %v1638_v36 = vsel %vm1637_vm7, %v6263_v26, %v1634_v7 }
 0x35e   :  { %v3002_v57 = vrot.slane %v3001_v28, 1 }
 0x35f   :  { %v3476_v13 = vsel %vm1117_vm10, %v2996_v61, %v2989_v25  ;;  %v3014_v24 = vrot.slane %v3013_v51, 2  ;;  %2923 = vperm.xlu0 %3835, %v2865_v14   ;;  %v1710_v9 = vsel %vm594_vm2, %v1672_v1, 0.0  ;;  %v2863_v25 = vadd.f32 %v6195_v52, %v6144_v18 }
 0x360   :  { %v3003_v12 = vadd.f32 %v3002_v57, %v3001_v28  ;;  %v1601_v14 = vmul.f32 %v4101_v58, %v1416_v44  ;;  %v1612_v28 = vor.u32 1.1754944e-38, %v1611_v20  ;;  %v1307_v57 = vrot.slane %v6152_v16, 7 }
 0x361   :  { %v3015_v3 = vadd.f32 %v3014_v24, %v3013_v51  ;;  %v4103_v51 = vpop.eup %4102 }
 0x362   :  { %v2889_v40 = vpop.permute.xlu1 %2888  ;;  %v3477_v41 = vsel %vm1120_vm14, %v3003_v12, %v3476_v13  ;;  %v1602_v29 = vsub.f32 1.0, %v1601_v14  ;;  %v1323_v7 = vperm.slane %v1307_v57, 0  ;;  %v3760_v14 = vmul.f32 -1.442695, %v6177_v0 }
 0x363   :  { %v2954_v59 = vmul.f32 %v4137_v47, %v2889_v40  ;;  %v3016_v53 = vrot.slane %v3015_v3, 1  ;;  %v1643_v40 = vsel %vm1640_vm8, %v1642_v43, %v1638_v36  ;;  %v1414_v47 = vadd.f32 1.0, %v4103_v51 }
 0x364   :  { %v1675_v15 = vmul.f32 %v5779_v21, %v1643_v40  ;;  %v1603_v45 = vmul.f32 %v4101_v58, %v1602_v29 }
 0x365   :  { %v2970_v35 = vmul.f32 %v6792_v6, %v2954_v59  ;;  %v3017_v33 = vadd.f32 %v3016_v53, %v3015_v3  ;;  %4104 = vrcp.f32 %v1414_v47  ;;  %v1727_v3 = vadd.f32 %v6144_v18, %v6212_v46 }
 0x366   :  { %v1719_v59 = vsel %vm594_vm2, %v1675_v15, 0.0  ;;  %v1604_v13 = vadd.f32 %v4101_v58, %v1603_v45  ;;  %v1581_v12 = vand.u32 2147483648, %v1414_v47  ;;  %vm1575_vm6 = vweird.f32 %v1414_v47 }
 0x367   :  { %v3004_v10 = vsel %vm594_vm2, %v2970_v35, 0.0  ;;  %v1579_v56 = vand.u32 2147483647, %v1414_v47 }
 0x368   :  { %v3005_v38 = vrot.slane %v3004_v10, 4  ;;  %v1608_v24 = vsel %vm1607_vm13, %v4101_v58, %v1604_v13  ;;  %v1582_v16 = vor.u32 1.1754944e-38, %v1581_v12  ;;  %v2868_v58 = vadd.f32 %v6207_v60, %v6144_v18 }
 0x369   :  { %v1613_v32 = vsel %vm1610_vm9, %v1612_v28, %v1608_v24  ;;  %vm1580_vm8 = vcmp.eq.f32.partialorder %v1579_v56, 8.507059e+37  ;;  %v2867_v60 = vadd.f32 %v6218_v42, %v6144_v18 }
 0x36a   :  { %v3006_v23 = vadd.f32 %v3005_v38, %v3004_v10  ;;  %v1673_v10 = vmul.f32 %v5779_v21, %v1613_v32  ;;  %v1289_v38 = vpop.f32.mrf.mxu1 }
 0x36b   :  { %v4105_v52 = vpop.eup %4104  ;;  %v1290_v44 = vadd.f32 %v1289_v38, %v5739_v49  ;;  %v4138_v49 = vld [vmem:[%s6595_s1 + $0x28] sm:$0xff] }
 0x36c   :  { %v3007_v8 = vrot.slane %v3006_v23, 2  ;;  %v1571_v35 = vmul.f32 %v4105_v52, %v1414_v47  ;;  %v1713_v62 = vsel %vm594_vm2, %v1673_v10, 0.0  ;;  %vm1576_vm5 = vweird.f32 %v4105_v52 }
 0x36d   :  { %vm1577_vm7 = vmor %vm1575_vm6, %vm1576_vm5 }
 0x36e   :  { %v3008_v19 = vadd.f32 %v3007_v8, %v3006_v23  ;;  %v1572_v34 = vsub.f32 1.0, %v1571_v35  ;;  %v1355_v8 = vadd.f32 %v1323_v7, %v1290_v44 }
 0x36f   :  { %1711 = vadd.xlane.f32.xlu2 %v1710_v9 }
 0x370   :  { %v3009_v48 = vrot.slane %v3008_v19, 1  ;;  %v1573_v30 = vmul.f32 %v4105_v52, %v1572_v34  ;;  %v3762_v46 = vmul.f32 -1.442695, %v1355_v8 }
 0x372   :  { %v3010_v61 = vadd.f32 %v3009_v48, %v3008_v19  ;;  %v1574_v23 = vadd.f32 %v4105_v52, %v1573_v30  ;;  %v2956_v19 = vmul.f32 %v4138_v49, %v2899_v5  ;;  %4106 = vpow2.f32 %v3762_v46  ;;  %v6793_v48 = vld [vmem:[#allocation15_spill] sm:$0xff]  ;;  %v4139_v5 = vld [vmem:[%s6595_s1 + $0x30] sm:$0xff] }
 0x374   :  { %v3478_v55 = vsel %vm1123_vm15, %v3010_v61, %v3477_v41  ;;  %v1578_v41 = vsel %vm1577_vm7, %v4105_v52, %v1574_v23  ;;  %v2972_v9 = vmul.f32 %v6793_v48, %v2956_v19 }
 0x375   :  { %v6311_v26 = vsel %vm1126_vm0, %v3017_v33, %v3478_v55  ;;  %v1583_v1 = vsel %vm1580_vm8, %v1582_v16, %v1578_v41  ;;  %v6794_v16 = vld [vmem:[#allocation20_spill] sm:$0xff] }
 0x376   :  { %2913 = vperm.xlu1 %3836, %v2863_v25   ;;  %v1671_v50 = vmul.f32 %v5779_v21, %v1583_v1  ;;  %v3018_v61 = vsel %vm594_vm2, %v2972_v9, 0.0 }
 0x377   :  { %1720 = vadd.xlane.f32.xlu2 %v1719_v59  ;;  %v3019_v15 = vrot.slane %v3018_v61, 4 }
 0x378   :  { %v1707_v43 = vsel %vm594_vm2, %v1671_v50, 0.0  ;;  %v4107_v33 = vpop.eup %4106 }
 0x379   :  { %v1419_v55 = vadd.f32 1.0, %v4107_v33  ;;  %v3020_v51 = vadd.f32 %v3019_v15, %v3018_v61  ;;  %v4141_v61 = vld [vmem:[%s6595_s1 + $0x50] sm:$0xff] }
 0x37b   :  { %4108 = vrcp.f32 %v1419_v55  ;;  %v3021_v47 = vrot.slane %v3020_v51, 2  ;;  %v1656_v32 = vand.u32 2147483648, %v1419_v55  ;;  %vm1650_vm11 = vweird.f32 %v1419_v55 }
 0x37c   :  { %4110 = vpow2.f32 %v3760_v14  ;;  %v1654_v34 = vand.u32 2147483647, %v1419_v55 }
 0x37d   :  { %v3022_v29 = vadd.f32 %v3021_v47, %v3020_v51  ;;  %v1657_v38 = vor.u32 1.1754944e-38, %v1656_v32  ;;  %v6796_v51 = vld [vmem:[#allocation26_spill] sm:$0xff] }
 0x37e   :  { %vm1655_vm9 = vcmp.eq.f32.partialorder %v1654_v34, 8.507059e+37 }
 0x37f   :  { %v3023_v13 = vrot.slane %v3022_v29, 1 }
 0x380   :  { %v6338_v10 = vpop.xlane.xlu0 %1696 }
 0x381   :  { %v4109_v59 = vpop.eup %4108  ;;  %v3024_v35 = vadd.f32 %v3023_v13, %v3022_v29  ;;  %v1728_v29 = vadd.f32 %v6144_v18, %v6224_v22  ;;  %v4142_v22 = vld [vmem:[%s6595_s1 + $0x40] sm:$0xff] }
 0x382   :  { %v1646_v45 = vmul.f32 %v4109_v59, %v1419_v55  ;;  %v4111_v20 = vpop.eup %4110  ;;  %vm1651_vm12 = vweird.f32 %v4109_v59  ;;  %v6795_v55 = vld [vmem:[#allocation29_spill] sm:$0xff] }
 0x383   :  { %v1417_v63 = vadd.f32 1.0, %v4111_v20  ;;  %v6336_v0 = vsel %vm1129_vm1, %v3024_v35, %v6311_v26  ;;  %vm1652_vm13 = vmor %vm1650_vm11, %vm1651_vm12 }
 0x384   :  { %v1647_v52 = vsub.f32 1.0, %v1646_v45 }
 0x385   :  { %4112 = vrcp.f32 %v1417_v63  ;;  %v1626_v50 = vand.u32 2147483648, %v1417_v63  ;;  %vm1620_vm6 = vweird.f32 %v1417_v63 }
 0x386   :  { %v1648_v24 = vmul.f32 %v4109_v59, %v1647_v52 }
 0x387   :  { %v1627_v9 = vor.u32 1.1754944e-38, %v1626_v50 }
 0x388   :  { %v1649_v28 = vadd.f32 %v4109_v59, %v1648_v24 }
 0x389   :  { %1714 = vadd.xlane.f32.xlu0 %v1713_v62 }
 0x38a   :  { %v1653_v42 = vsel %vm1652_vm13, %v4109_v59, %v1649_v28 }
 0x38b   :  { %v4113_v57 = vpop.eup %4112 }
 0x38c   :  { %v1616_v62 = vmul.f32 %v4113_v57, %v1417_v63  ;;  %vm1621_vm5 = vweird.f32 %v4113_v57 }
 0x38d   :  { %v1691_v30 = vpop.xlane.xlu1 %1690  ;;  %vm1622_vm7 = vmor %vm1620_vm6, %vm1621_vm5 }
 0x38e   :  { %v1617_v7 = vsub.f32 1.0, %v1616_v62  ;;  %v1730_v32 = vadd.f32 %v6144_v18, %v1691_v30 }
 0x38f   :  { %1749 = vperm.xlu2 %3837, %v1727_v3   ;;  %v1658_v3 = vsel %vm1655_vm9, %v1657_v38, %v1653_v42 }
 0x390   :  { %v1676_v44 = vmul.f32 %v5779_v21, %v1658_v3  ;;  %v1618_v8 = vmul.f32 %v4113_v57, %v1617_v7 }
 0x392   :  { %v1722_v26 = vsel %vm594_vm2, %v1676_v44, 0.0  ;;  %v1619_v46 = vadd.f32 %v4113_v57, %v1618_v8 }
 0x393   :  { %v2919_v23 = vpop.permute.xlu0 %2918 }
 0x394   :  { %v1623_v19 = vsel %vm1622_vm7, %v4113_v57, %v1619_v46  ;;  %v6797_v57 = vld [vmem:[#allocation18_spill] sm:$0xff] }
 0x399   :  { %v1694_v53 = vpop.xlane.xlu2 %1693 }
 0x39a   :  { %v1731_v36 = vadd.f32 %v6144_v18, %v1694_v53  ;;  %v1624_v53 = vand.u32 2147483647, %v1417_v63 }
 0x39c   :  { %1769 = vperm.xlu2 %3837, %v1731_v36   ;;  %v4140_v36 = vld [vmem:[%s6595_s1 + $0x48] sm:$0xff]  ;;  %vm1625_vm8 = vcmp.eq.f32.partialorder %v1624_v53, 8.507059e+37 }
 0x39d   :  { %2938 = vperm.xlu0 %3835, %v2868_v58  }
 0x3a0   :  { %1708 = vadd.xlane.f32.xlu1 %v1707_v43  ;;  %v2960_v43 = vmul.f32 %v4140_v36, %v2919_v23 }
 0x3a1   :  { %v1703_v40 = vpop.xlane.xlu2 %1702 }
 0x3a2   :  { %v1734_v25 = vadd.f32 %v6144_v18, %v1703_v40  ;;  %v1628_v40 = vsel %vm1625_vm8, %v1627_v9, %v1623_v19  ;;  %v2976_v15 = vmul.f32 %v6795_v55, %v2960_v43 }
 0x3a3   :  { %v1674_v59 = vmul.f32 %v5779_v21, %v1628_v40 }
 0x3a4   :  { %1784 = vperm.xlu2 %3837, %v1734_v25   ;;  %v3046_v13 = vsel %vm594_vm2, %v2976_v15, 0.0 }
 0x3a5   :  { %v2904_v12 = vpop.permute.xlu1 %2903  ;;  %v1716_v20 = vsel %vm594_vm2, %v1674_v59, 0.0  ;;  %v3047_v35 = vrot.slane %v3046_v13, 4 }
 0x3a6   :  { %v2957_v56 = vmul.f32 %v4139_v5, %v2904_v12 }
 0x3a7   :  { %v3048_v21 = vadd.f32 %v3047_v35, %v3046_v13 }
 0x3a8   :  { %v2973_v1 = vmul.f32 %v6794_v16, %v2957_v56 }
 0x3a9   :  { %v3049_v44 = vrot.slane %v3048_v21, 2  ;;  %v2929_v19 = vpop.permute.xlu2 %2928 }
 0x3aa   :  { %v3025_v49 = vsel %vm594_vm2, %v2973_v1, 0.0 }
 0x3ab   :  { %v3026_v58 = vrot.slane %v3025_v49, 4  ;;  %v3050_v5 = vadd.f32 %v3049_v44, %v3048_v21 }
 0x3ad   :  { %v3027_v47 = vadd.f32 %v3026_v58, %v3025_v49  ;;  %v3051_v50 = vrot.slane %v3050_v5, 1  ;;  %v1726_v58 = vadd.f32 %v6144_v18, %v6227_v54 }
 0x3af   :  { %v3028_v52 = vrot.slane %v3027_v47, 2  ;;  %v3052_v43 = vadd.f32 %v3051_v50, %v3050_v5  ;;  %v2869_v50 = vadd.f32 %v6214_v39, %v6144_v18 }
 0x3b1   :  { %v3029_v24 = vadd.f32 %v3028_v52, %v3027_v47 }
 0x3b3   :  { %v3030_v38 = vrot.slane %v3029_v24, 1 }
 0x3b5   :  { %v3031_v12 = vadd.f32 %v3030_v38, %v3029_v24 }
 0x3b7   :  { %v6372_v1 = vsel %vm1132_vm3, %v3031_v12, %v6336_v0 }
 0x3b9   :  { %2933 = vperm.xlu1 %3836, %v2867_v60  }
 0x3be   :  { %v6345_v41 = vpop.xlane.xlu0 %1705 }
 0x3c7   :  { %1723 = vadd.xlane.f32.xlu0 %v1722_v26 }
 0x3d0   :  { %v1700_v45 = vpop.xlane.xlu1 %1699 }
 0x3d1   :  { %v2924_v33 = vpop.permute.xlu0 %2923  ;;  %v1733_v30 = vadd.f32 %v6144_v18, %v1700_v45 }
 0x3d2   :  { %v2961_v25 = vmul.f32 %v4141_v61, %v2924_v33  ;;  %v4143_v33 = vld [vmem:[%s6595_s1 + $0x58] sm:$0xff] }
 0x3d3   :  { %v2962_v40 = vmul.f32 %v4143_v33, %v2929_v19  ;;  %v4145_v19 = vld [vmem:[%s6595_s1 + $0x68] sm:$0xff] }
 0x3d4   :  { %v2977_v14 = vmul.f32 %v6796_v51, %v2961_v25  ;;  %v6798_v25 = vld [vmem:[#allocation24_spill] sm:$0xff] }
 0x3d5   :  { %v2978_v15 = vmul.f32 %v6798_v25, %v2962_v40 }
 0x3d6   :  { %v3053_v60 = vsel %vm594_vm2, %v2977_v14, 0.0  ;;  %v1729_v14 = vadd.f32 %v6144_v18, %v6222_v37 }
 0x3d7   :  { %v3054_v63 = vrot.slane %v3053_v60, 4  ;;  %v3060_v47 = vsel %vm594_vm2, %v2978_v15, 0.0 }
 0x3d9   :  { %v3055_v28 = vadd.f32 %v3054_v63, %v3053_v60  ;;  %v1732_v60 = vadd.f32 %v6144_v18, %v6338_v10 }
 0x3db   :  { %1754 = vperm.xlu0 %3835, %v1728_v29   ;;  %v3056_v62 = vrot.slane %v3055_v28, 2  ;;  %v3061_v29 = vrot.slane %v3060_v47, 4 }
 0x3dd   :  { %v3057_v26 = vadd.f32 %v3056_v62, %v3055_v28  ;;  %v3062_v45 = vadd.f32 %v3061_v29, %v3060_v47 }
 0x3df   :  { %v3058_v46 = vrot.slane %v3057_v26, 1  ;;  %v3063_v13 = vrot.slane %v3062_v45, 2 }
 0x3e1   :  { %v3059_v36 = vadd.f32 %v3058_v46, %v3057_v26  ;;  %v3064_v52 = vadd.f32 %v3063_v13, %v3062_v45  ;;  %v3342_v45 = vpop.f32.mrf.mxu2  ;;  %v6413_v13 = vld [vmem:[#allocation5] sm:$0x3f] }
 0x3e2   :  { %v1712_v24 = vpop.xlane.xlu2 %1711 }
 0x3e3   :  { %1717 = vadd.xlane.f32.xlu1 %v1716_v20  ;;  %1764 = vperm.xlu0 %3835, %v1730_v32   ;;  %v1735_v20 = vadd.f32 %v6144_v18, %v6345_v41  ;;  %v3065_v35 = vrot.slane %v3064_v52, 1  ;;  %v1737_v21 = vadd.f32 %v6144_v18, %v1712_v24  ;;  %v2862_v41 = vadd.f32 %v6185_v31, %v6144_v18 }
 0x3e5   :  { %v3066_v28 = vadd.f32 %v3065_v35, %v3064_v52  ;;  %v3419_v52 = vperm.slane %v6413_v13, 3  ;;  %v4157_v13 = vld [vmem:[%s6594_s0 + $0x40] sm:$0xff] }
 0x3e8   :  { %v2914_v34 = vpop.permute.xlu1 %2913 }
 0x3e9   :  { %v2959_v42 = vmul.f32 %v4142_v22, %v2914_v34 }
 0x3ea   :  { %v1721_v10 = vpop.xlane.xlu2 %1720 }
 0x3eb   :  { %v2975_v3 = vmul.f32 %v6797_v57, %v2959_v42  ;;  %1779 = vperm.xlu0 %3835, %v1733_v30   ;;  %v1740_v34 = vadd.f32 %v6144_v18, %v1721_v10  ;;  %v4144_v42 = vld [vmem:[%s6595_s1 + $0x60] sm:$0xff] }
 0x3ed   :  { %v3039_v23 = vsel %vm594_vm2, %v2975_v3, 0.0  ;;  %v6799_v3 = vld [vmem:[#allocation27_spill] sm:$0xff] }
 0x3ee   :  { %v3040_v7 = vrot.slane %v3039_v23, 4 }
 0x3f0   :  { %v3041_v56 = vadd.f32 %v3040_v7, %v3039_v23 }
 0x3f2   :  { %v3042_v8 = vrot.slane %v3041_v56, 2 }
 0x3f4   :  { %v3043_v53 = vadd.f32 %v3042_v8, %v3041_v56 }
 0x3f6   :  { %v3044_v49 = vrot.slane %v3043_v53, 1 }
 0x3f8   :  { %v3045_v9 = vadd.f32 %v3044_v49, %v3043_v53 }
 0x3fa   :  { %v3483_v61 = vsel %vm1117_vm10, %v3052_v43, %v3045_v9  ;;  %v6800_v43 = vld [vmem:[#allocation30_spill] sm:$0xff] }
 0x3fb   :  { %v3484_v0 = vsel %vm1120_vm14, %v3059_v36, %v3483_v61 }
 0x3fc   :  { %1744 = vperm.xlu1 %3836, %v1726_v58   ;;  %v1715_v59 = vpop.xlane.xlu0 %1714  ;;  %v3485_v32 = vsel %vm1123_vm15, %v3066_v28, %v3484_v0  ;;  %v2870_v58 = vadd.f32 %v6261_v2, %v6144_v18 }
 0x3fd   :  { %v1738_v54 = vadd.f32 %v6144_v18, %v1715_v59  ;;  %v3413_v59 = vpop.f32.mrf.mxu1 }
 0x3ff   :  { %1804 = vperm.xlu2 %3837, %v1738_v54  }
 0x404   :  { %1759 = vperm.xlu1 %3836, %v1729_v14  }
 0x40c   :  { %1774 = vperm.xlu1 %3836, %v1732_v60   ;;  %v3414_v60 = vadd.f32 %v3413_v59, %v3342_v45 }
 0x40e   :  { %v3420_v2 = vadd.f32 %v3419_v52, %v3414_v60 }
 0x40f   :  { %v2939_v5 = vpop.permute.xlu0 %2938 }
 0x410   :  { %v2964_v36 = vmul.f32 %v4145_v19, %v2939_v5  ;;  %v3817_v28 = vmul.f32 -1.442695, %v3420_v2 }
 0x412   :  { %v2980_v9 = vmul.f32 %v6800_v43, %v2964_v36  ;;  %4114 = vpow2.f32 %v3817_v28 }
 0x413   :  { %v1709_v63 = vpop.xlane.xlu1 %1708 }
 0x414   :  { %v1736_v37 = vadd.f32 %v6144_v18, %v1709_v63  ;;  %1789 = vperm.xlu1 %3836, %v1735_v20   ;;  %v3074_v33 = vsel %vm594_vm2, %v2980_v9, 0.0  ;;  %v1750_v63 = vpop.permute.xlu2 %1749 }
 0x415   :  { %v3075_v40 = vrot.slane %v3074_v33, 4 }
 0x416   :  { %1794 = vperm.xlu0 %3835, %v1736_v37   ;;  %v4147_v37 = vld [vmem:[%s6594_s0] sm:$0xff] }
 0x417   :  { %v3076_v39 = vadd.f32 %v3075_v40, %v3074_v33 }
 0x419   :  { %v3077_v61 = vrot.slane %v3076_v39, 2 }
 0x41b   :  { %v3078_v15 = vadd.f32 %v3077_v61, %v3076_v39  ;;  %v4154_v39 = vld [vmem:[%s6594_s0 + $0x38] sm:$0xff] }
 0x41d   :  { %v3079_v14 = vrot.slane %v3078_v15, 1 }
 0x41e   :  { %1799 = vperm.xlu0 %3835, %v1737_v21  }
 0x41f   :  { %v3080_v29 = vadd.f32 %v3079_v14, %v3078_v15 }
 0x426   :  { %1814 = vperm.xlu0 %3835, %v1740_v34   ;;  %v4149_v34 = vld [vmem:[%s6594_s0 + $0x18] sm:$0xff] }
 0x42b   :  { %v2934_v22 = vpop.permute.xlu1 %2933 }
 0x42c   :  { %v2963_v38 = vmul.f32 %v4144_v42, %v2934_v22 }
 0x42e   :  { %v2979_v62 = vmul.f32 %v6799_v3, %v2963_v38  ;;  %2908 = vperm.xlu0 %3835, %v2862_v41   ;;  %v4150_v41 = vld [vmem:[%s6594_s0 + $0x10] sm:$0xff] }
 0x430   :  { %v3067_v44 = vsel %vm594_vm2, %v2979_v62, 0.0 }
 0x431   :  { %v3068_v23 = vrot.slane %v3067_v44, 4 }
 0x433   :  { %v3069_v12 = vadd.f32 %v3068_v23, %v3067_v44 }
 0x435   :  { %v3070_v7 = vrot.slane %v3069_v12, 2 }
 0x437   :  { %v3071_v26 = vadd.f32 %v3070_v7, %v3069_v12  ;;  %v1770_v12 = vpop.permute.xlu2 %1769  ;;  %v4151_v7 = vld [vmem:[%s6594_s0 + $0x20] sm:$0xff] }
 0x439   :  { %v3072_v30 = vrot.slane %v3071_v26, 1 }
 0x43a   :  { %v1724_v31 = vpop.xlane.xlu0 %1723 }
 0x43b   :  { %v3073_v56 = vadd.f32 %v3072_v30, %v3071_v26  ;;  %v1741_v46 = vadd.f32 %v6144_v18, %v1724_v31 }
 0x43d   :  { %v3486_v8 = vsel %vm1126_vm0, %v3073_v56, %v3485_v32  ;;  %1819 = vperm.xlu2 %3837, %v1741_v46   ;;  %v4148_v32 = vld [vmem:[%s6594_s0 + $0x8] sm:$0xff] }
 0x43e   :  { %v1823_v21 = vmul.f32 %v4148_v32, %v1750_v63 }
 0x440   :  { %v1839_v38 = vmul.f32 %v6788_v17, %v1823_v21  ;;  %v4152_v17 = vld [vmem:[%s6594_s0 + $0x30] sm:$0xff] }
 0x442   :  { %v1861_v30 = vsel %vm594_vm2, %v1839_v38, 0.0 }
 0x445   :  { %2943 = vperm.xlu2 %3837, %v2869_v50   ;;  %v1862_v50 = vrot.slane %v1861_v30, 4 }
 0x44d   :  { %v1755_v0 = vpop.permute.xlu0 %1754 }
 0x44e   :  { %v1824_v42 = vmul.f32 %v4150_v41, %v1755_v0  ;;  %v1863_v0 = vadd.f32 %v1862_v50, %v1861_v30  ;;  %v4155_v50 = vld [vmem:[%s6595_s1 + $0x38] sm:$0xff] }
 0x450   :  { %v1864_v60 = vrot.slane %v1863_v0, 2 }
 0x452   :  { %v1865_v21 = vadd.f32 %v1864_v60, %v1863_v0  ;;  %v1785_v0 = vpop.permute.xlu2 %1784 }
 0x455   :  { %v1765_v54 = vpop.permute.xlu0 %1764 }
 0x456   :  { %v1718_v53 = vpop.xlane.xlu1 %1717  ;;  %v1826_v26 = vmul.f32 %v4151_v7, %v1765_v54 }
 0x457   :  { %v1739_v49 = vadd.f32 %v6144_v18, %v1718_v53  ;;  %v6417_v18 = vsel %vm1129_vm1, %v3080_v29, %v3486_v8  ;;  %v6801_v29 = vld [vmem:[#allocation22_spill] sm:$0xff] }
 0x459   :  { %1809 = vperm.xlu1 %3836, %v1739_v49   ;;  %v1842_v49 = vmul.f32 %v6791_v11, %v1826_v26 }
 0x45b   :  { %v1882_v15 = vsel %vm594_vm2, %v1842_v49, 0.0 }
 0x45c   :  { %v1883_v54 = vrot.slane %v1882_v15, 4 }
 0x45d   :  { %v1780_v24 = vpop.permute.xlu0 %1779 }
 0x45e   :  { %v1829_v61 = vmul.f32 %v4154_v39, %v1780_v24  ;;  %v1884_v24 = vadd.f32 %v1883_v54, %v1882_v15 }
 0x460   :  { %v1845_v45 = vmul.f32 %v6801_v29, %v1829_v61 }
 0x461   :  { %2948 = vperm.xlu1 %3836, %v2870_v58  }
 0x462   :  { %v1903_v28 = vsel %vm594_vm2, %v1845_v45, 0.0 }
 0x46e   :  { %v1745_v47 = vpop.permute.xlu1 %1744 }
 0x46f   :  { %v1822_v35 = vmul.f32 %v4147_v37, %v1745_v47 }
 0x471   :  { %v1838_v10 = vmul.f32 %v6789_v27, %v1822_v35  ;;  %v1840_v27 = vmul.f32 %v6790_v4, %v1824_v42  ;;  %v4153_v4 = vld [vmem:[%s6594_s0 + $0x28] sm:$0xff]  ;;  %v1904_v42 = vrot.slane %v1903_v28, 4 }
 0x472   :  { %v1827_v31 = vmul.f32 %v4153_v4, %v1770_v12  ;;  %v1866_v12 = vrot.slane %v1865_v21, 1 }
 0x473   :  { %v1854_v62 = vsel %vm594_vm2, %v1838_v10, 0.0  ;;  %v1868_v53 = vsel %vm594_vm2, %v1840_v27, 0.0  ;;  %v1905_v30 = vadd.f32 %v1904_v42, %v1903_v28  ;;  %v1805_v42 = vpop.permute.xlu2 %1804 }
 0x474   :  { %v1855_v56 = vrot.slane %v1854_v62, 4  ;;  %v1843_v33 = vmul.f32 %v6793_v48, %v1827_v31  ;;  %v1869_v40 = vrot.slane %v1868_v53, 4  ;;  %v1867_v4 = vadd.f32 %v1866_v12, %v1865_v21 }
 0x476   :  { %v1760_v20 = vpop.permute.xlu1 %1759  ;;  %v1856_v36 = vadd.f32 %v1855_v56, %v1854_v62  ;;  %v1870_v48 = vadd.f32 %v1869_v40, %v1868_v53 }
 0x477   :  { %v1825_v22 = vmul.f32 %v4149_v34, %v1760_v20 }
 0x478   :  { %v1857_v11 = vrot.slane %v1856_v36, 2  ;;  %v1871_v35 = vrot.slane %v1870_v48, 2 }
 0x479   :  { %v1841_v44 = vmul.f32 %v6792_v6, %v1825_v22  ;;  %v4115_v6 = vpop.eup %4114 }
 0x47a   :  { %v6453_v19 = vadd.f32 1.0, %v4115_v6  ;;  %v1858_v63 = vadd.f32 %v1857_v11, %v1856_v36 }
 0x47b   :  { %v1875_v46 = vsel %vm594_vm2, %v1841_v44, 0.0  ;;  %v1872_v44 = vadd.f32 %v1871_v35, %v1870_v48 }
 0x47c   :  { %v1876_v9 = vrot.slane %v1875_v46, 4  ;;  %4116 = vrcp.f32 %v6453_v19  ;;  %v1859_v41 = vrot.slane %v1858_v63, 1  ;;  %vm3435_vm11 = vweird.f32 %v6453_v19 }
 0x47e   :  { %v1775_v23 = vpop.permute.xlu1 %1774  ;;  %v1877_v47 = vadd.f32 %v1876_v9, %v1875_v46  ;;  %v1860_v26 = vadd.f32 %v1859_v41, %v1858_v63  ;;  %v1906_v9 = vrot.slane %v1905_v30, 2 }
 0x47f   :  { %v1828_v8 = vmul.f32 %v4152_v17, %v1775_v23  ;;  %v1885_v23 = vrot.slane %v1884_v24, 2  ;;  %v1873_v17 = vrot.slane %v1872_v44, 1 }
 0x480   :  { %v1878_v37 = vrot.slane %v1877_v47, 2  ;;  %v3512_v36 = vsel %vm1117_vm10, %v1867_v4, %v1860_v26 }
 0x481   :  { %v1844_v58 = vmul.f32 %v6794_v16, %v1828_v8  ;;  %v1889_v16 = vsel %vm594_vm2, %v1843_v33, 0.0  ;;  %v1886_v8 = vadd.f32 %v1885_v23, %v1884_v24  ;;  %v1874_v33 = vadd.f32 %v1873_v17, %v1872_v44  ;;  %v4156_v17 = vld [vmem:[%s6594_s0 + $0x48] sm:$0xff] }
 0x482   :  { %v1890_v20 = vrot.slane %v1889_v16, 4  ;;  %v6468_v32 = vpop.eup %4116  ;;  %v1879_v38 = vadd.f32 %v1878_v37, %v1877_v47  ;;  %v3439_v37 = vand.u32 2147483647, %v6453_v19 }
 0x483   :  { %v1896_v59 = vsel %vm594_vm2, %v1844_v58, 0.0  ;;  %v3431_v62 = vmul.f32 %v6468_v32, %v6453_v19  ;;  %v1887_v40 = vrot.slane %v1886_v8, 1  ;;  %v3513_v15 = vsel %vm1120_vm14, %v1874_v33, %v3512_v36 }
 0x484   :  { %v1897_v2 = vrot.slane %v1896_v59, 4  ;;  %v1891_v22 = vadd.f32 %v1890_v20, %v1889_v16  ;;  %v1880_v56 = vrot.slane %v1879_v38, 1  ;;  %v1907_v16 = vadd.f32 %v1906_v9, %v1905_v30  ;;  %v3416_v20 = vpop.f32.mrf.mxu1 }
 0x485   :  { %v3432_v6 = vsub.f32 1.0, %v3431_v62  ;;  %v1888_v45 = vadd.f32 %v1887_v40, %v1886_v8  ;;  %vm3436_vm12 = vweird.f32 %v6468_v32  ;;  %vm3440_vm9 = vcmp.eq.f32.partialorder %v3439_v37, 8.507059e+37 }
 0x486   :  { %v1898_v34 = vadd.f32 %v1897_v2, %v1896_v59  ;;  %v1892_v7 = vrot.slane %v1891_v22, 2  ;;  %v1881_v58 = vadd.f32 %v1880_v56, %v1879_v38  ;;  %v1908_v28 = vrot.slane %v1907_v16, 1  ;;  %vm3437_vm13 = vmor %vm3435_vm11, %vm3436_vm12 }
 0x487   :  { %v3433_v61 = vmul.f32 %v6468_v32, %v3432_v6 }
 0x488   :  { %v6441_v5 = vpop.permute.xlu0 %1794  ;;  %v1899_v27 = vrot.slane %v1898_v34, 2  ;;  %v1893_v49 = vadd.f32 %v1892_v7, %v1891_v22  ;;  %v3514_v48 = vsel %vm1123_vm15, %v1881_v58, %v3513_v15  ;;  %v1909_v12 = vadd.f32 %v1908_v28, %v1907_v16  ;;  %v1790_v7 = vpop.permute.xlu1 %1789  ;;  %v6802_v28 = vld [vmem:[#allocation34_spill] sm:$0xff] }
 0x489   :  { %v3434_v60 = vadd.f32 %v6468_v32, %v3433_v61  ;;  %v3515_v35 = vsel %vm1126_vm0, %v1888_v45, %v3514_v48  ;;  %v1831_v8 = vmul.f32 %v4156_v17, %v1790_v7 }
 0x48a   :  { %v1900_v46 = vadd.f32 %v1899_v27, %v1898_v34  ;;  %v1894_v59 = vrot.slane %v1893_v49, 1  ;;  %v3345_v34 = vpop.f32.mrf.mxu2 }
 0x48b   :  { %v3438_v22 = vsel %vm3437_vm13, %v6468_v32, %v3434_v60  ;;  %v3417_v41 = vadd.f32 %v3416_v20, %v3345_v34  ;;  %v1847_v9 = vmul.f32 %v6795_v55, %v1831_v8  ;;  %v4162_v20 = vld [vmem:[%s6595_s1 + $0x70] sm:$0xff] }
 0x48c   :  { %v1901_v11 = vrot.slane %v1900_v46, 1  ;;  %v1895_v24 = vadd.f32 %v1894_v59, %v1893_v49 }
 0x48d   :  { %v3421_v26 = vadd.f32 %v3419_v52, %v3417_v41  ;;  %v1830_v52 = vmul.f32 %v4157_v13, %v1785_v0  ;;  %v1917_v61 = vsel %vm594_vm2, %v1847_v9, 0.0  ;;  %v4160_v0 = vld [vmem:[%s6594_s0 + $0x60] sm:$0xff] }
 0x48e   :  { %v1902_v63 = vadd.f32 %v1901_v11, %v1900_v46  ;;  %v3516_v44 = vsel %vm1129_vm1, %v1895_v24, %v3515_v35  ;;  %v1918_v11 = vrot.slane %v1917_v61, 4 }
 0x48f   :  { %v3818_v46 = vmul.f32 -1.442695, %v3421_v26  ;;  %v1846_v40 = vmul.f32 %v6797_v57, %v1830_v52 }
 0x490   :  { %v6461_v14 = vpop.permute.xlu0 %1799  ;;  %v3517_v23 = vsel %vm1132_vm3, %v1902_v63, %v3516_v44 }
 0x491   :  { %v3518_v56 = vsel %vm1135_vm4, %v1909_v12, %v3517_v23  ;;  %4118 = vpow2.f32 %v3818_v46  ;;  %v1910_v15 = vsel %vm594_vm2, %v1846_v40, 0.0 }
 0x492   :  { %v1911_v16 = vrot.slane %v1910_v15, 4 }
 0x494   :  { %v1912_v35 = vadd.f32 %v1911_v16, %v1910_v15 }
 0x496   :  { %v1913_v44 = vrot.slane %v1912_v35, 2 }
 0x497   :  { %v4119_v57 = vpop.eup %4118 }
 0x498   :  { %v6470_v10 = vpop.permute.xlu0 %1814  ;;  %v6532_v60 = vadd.f32 1.0, %v4119_v57  ;;  %v1914_v17 = vadd.f32 %v1913_v44, %v1912_v35 }
 0x49a   :  { %4120 = vrcp.f32 %v6532_v60 }
 0x4a0   :  { %v2909_v31 = vpop.permute.xlu0 %2908 }
 0x4a1   :  { %v2958_v53 = vmul.f32 %v4155_v50, %v2909_v31  ;;  %v1820_v50 = vpop.permute.xlu2 %1819 }
 0x4a3   :  { %v2974_v39 = vmul.f32 %v6801_v29, %v2958_v53  ;;  %v3441_v29 = vand.u32 2147483648, %v6453_v19  ;;  %v4158_v53 = vld [vmem:[%s6594_s0 + $0x50] sm:$0xff] }
 0x4a4   :  { %v1832_v49 = vmul.f32 %v4158_v53, %v6441_v5 }
 0x4a5   :  { %v3032_v47 = vsel %vm594_vm2, %v2974_v39, 0.0  ;;  %v3442_v62 = vor.u32 1.1754944e-38, %v3441_v29 }
 0x4a6   :  { %v3033_v54 = vrot.slane %v3032_v47, 4  ;;  %v1848_v39 = vmul.f32 %v6796_v51, %v1832_v49 }
 0x4a7   :  { %v3443_v27 = vsel %vm3440_vm9, %v3442_v62, %v3438_v22 }
 0x4a8   :  { %v3034_v2 = vadd.f32 %v3033_v54, %v3032_v47  ;;  %v3494_v32 = vsub.f32 1.0, %v3443_v27  ;;  %v1924_v47 = vsel %vm594_vm2, %v1848_v39, 0.0 }
 0x4a9   :  { %v2944_v59 = vpop.permute.xlu2 %2943  ;;  %v1925_v45 = vrot.slane %v1924_v47, 4 }
 0x4aa   :  { %v3035_v21 = vrot.slane %v3034_v2, 2  ;;  %v3528_v31 = vmul.f32 %v3518_v56, %v3494_v32  ;;  %v2965_v63 = vmul.f32 %v4162_v20, %v2944_v59  ;;  %v6548_v32 = vpop.eup %4120 }
 0x4ab   :  { %v3446_v53 = vmul.f32 %v6548_v32, %v6532_v60 }
 0x4ac   :  { %v3036_v38 = vadd.f32 %v3035_v21, %v3034_v2  ;;  %v1919_v2 = vadd.f32 %v1918_v11, %v1917_v61  ;;  %v1926_v21 = vadd.f32 %v1925_v45, %v1924_v47  ;;  %v2981_v41 = vmul.f32 %v6802_v28, %v2965_v63 }
 0x4ad   :  { %v3447_v11 = vsub.f32 1.0, %v3446_v53 }
 0x4ae   :  { %v3037_v19 = vrot.slane %v3036_v38, 1  ;;  %v1920_v34 = vrot.slane %v1919_v2, 2  ;;  %v1927_v12 = vrot.slane %v1926_v21, 2  ;;  %v3081_v7 = vsel %vm594_vm2, %v2981_v41, 0.0 }
 0x4b0   :  { %v3038_v30 = vadd.f32 %v3037_v19, %v3036_v38  ;;  %v6803_v38 = vld [vmem:[#allocation33_spill] sm:$0xff]  ;;  %v1921_v19 = vadd.f32 %v1920_v34, %v1919_v2 }
 0x4b2   :  { %v3482_v6 = vsel %vm1135_vm4, %v3038_v30, %v6372_v1  ;;  %v4159_v1 = vld [vmem:[%s6594_s0 + $0x58] sm:$0xff]  ;;  %v1922_v13 = vrot.slane %v1921_v19, 1 }
 0x4b3   :  { %v3492_v4 = vmul.f32 %v3482_v6, %v3443_v27  ;;  %v1833_v58 = vmul.f32 %v4159_v1, %v6461_v14  ;;  %v1834_v14 = vmul.f32 %v4160_v0, %v1805_v42  ;;  %v1928_v6 = vadd.f32 %v1927_v12, %v1926_v21 }
 0x4b5   :  { %v6507_v36 = vadd.f32 %v3528_v31, %v3492_v4  ;;  %v1849_v55 = vmul.f32 %v6798_v25, %v1833_v58  ;;  %v1850_v48 = vmul.f32 %v6799_v3, %v1834_v14  ;;  %v4161_v25 = vld [vmem:[%s6594_s0 + $0x70] sm:$0xff]  ;;  %v4163_v3 = vld [vmem:[%s6594_s0 + $0x78] sm:$0xff]  ;;  %v3082_v4 = vrot.slane %v3081_v7, 4  ;;  %v4164_v31 = vld [vmem:[%s6594_s0 + $0x68] sm:$0xff] }
 0x4b6   :  { %v1836_v54 = vmul.f32 %v4161_v25, %v6470_v10  ;;  %v1837_v37 = vmul.f32 %v4163_v3, %v1820_v50  ;;  %v1915_v58 = vrot.slane %v1914_v17, 1  ;;  %v3448_v3 = vmul.f32 %v6548_v32, %v3447_v11 }
 0x4b7   :  { %v3532_v33 = vmul.f32 %v6507_v36, %v6507_v36  ;;  %v1931_v51 = vsel %vm594_vm2, %v1849_v55, 0.0  ;;  %v1938_v24 = vsel %vm594_vm2, %v1850_v48, 0.0  ;;  %v3083_v40 = vadd.f32 %v3082_v4, %v3081_v7 }
 0x4b8   :  { %v1932_v29 = vrot.slane %v1931_v51, 4  ;;  %v1852_v10 = vmul.f32 %v6802_v28, %v1836_v54  ;;  %v1939_v42 = vrot.slane %v1938_v24, 4  ;;  %v1853_v62 = vmul.f32 %v6803_v38, %v1837_v37 }
 0x4b9   :  { %v3534_v5 = vsel %vm594_vm2, %v3532_v33, 0.0  ;;  %v1929_v33 = vrot.slane %v1928_v6, 1  ;;  %v1916_v47 = vadd.f32 %v1915_v58, %v1914_v17  ;;  %v3084_v16 = vrot.slane %v3083_v40, 2 }
 0x4ba   :  { %3535 = vadd.xlane.f32.xlu2 %v3534_v5  ;;  %v1933_v22 = vadd.f32 %v1932_v29, %v1931_v51  ;;  %v1952_v23 = vsel %vm594_vm2, %v1852_v10, 0.0  ;;  %v1940_v26 = vadd.f32 %v1939_v42, %v1938_v24  ;;  %v1959_v56 = vsel %vm594_vm2, %v1853_v62, 0.0 }
 0x4bb   :  { %v1953_v30 = vrot.slane %v1952_v23, 4  ;;  %v1960_v50 = vrot.slane %v1959_v56, 4  ;;  %v1923_v5 = vadd.f32 %v1922_v13, %v1921_v19  ;;  %v1930_v59 = vadd.f32 %v1929_v33, %v1928_v6 }
 0x4bc   :  { %v1934_v27 = vrot.slane %v1933_v22, 2  ;;  %v1941_v49 = vrot.slane %v1940_v26, 2  ;;  %v3085_v24 = vadd.f32 %v3084_v16, %v3083_v40  ;;  %v3449_v62 = vadd.f32 %v6548_v32, %v3448_v3 }
 0x4bd   :  { %v1954_v9 = vadd.f32 %v1953_v30, %v1952_v23  ;;  %v1961_v55 = vadd.f32 %v1960_v50, %v1959_v56  ;;  %v3519_v25 = vsel %vm1117_vm10, %v1923_v5, %v1916_v47  ;;  %vm3451_vm10 = vweird.f32 %v6548_v32 }
 0x4be   :  { %v1935_v52 = vadd.f32 %v1934_v27, %v1933_v22  ;;  %v1942_v14 = vadd.f32 %v1941_v49, %v1940_v26  ;;  %v3520_v35 = vsel %vm1120_vm14, %v1930_v59, %v3519_v25  ;;  %v3456_v23 = vand.u32 2147483648, %v6532_v60 }
 0x4bf   :  { %v1955_v15 = vrot.slane %v1954_v9, 2  ;;  %v1962_v45 = vrot.slane %v1961_v55, 2  ;;  %v3086_v12 = vrot.slane %v3085_v24, 1  ;;  %vm3450_vm14 = vweird.f32 %v6532_v60 }
 0x4c0   :  { %v1936_v61 = vrot.slane %v1935_v52, 1  ;;  %v1943_v29 = vrot.slane %v1942_v14, 1  ;;  %v3454_v19 = vand.u32 2147483647, %v6532_v60  ;;  %v3457_v6 = vor.u32 1.1754944e-38, %v3456_v23 }
 0x4c1   :  { %v1956_v20 = vadd.f32 %v1955_v15, %v1954_v9  ;;  %v1963_v21 = vadd.f32 %v1962_v45, %v1961_v55  ;;  %v3087_v4 = vadd.f32 %v3086_v12, %v3085_v24 }
 0x4c2   :  { %v1937_v54 = vadd.f32 %v1936_v61, %v1935_v52  ;;  %v1944_v41 = vadd.f32 %v1943_v29, %v1942_v14  ;;  %vm3455_vm5 = vcmp.eq.f32.partialorder %v3454_v19, 8.507059e+37 }
 0x4c3   :  { %v1957_v42 = vrot.slane %v1956_v20, 1  ;;  %v1964_v7 = vrot.slane %v1963_v21, 1  ;;  %v3488_v53 = vsel %vm1132_vm3, %v3087_v4, %v6417_v18 }
 0x4c4   :  { %v3521_v10 = vsel %vm1123_vm15, %v1937_v54, %v3520_v35  ;;  %vm3452_vm15 = vmor %vm3450_vm14, %vm3451_vm10 }
 0x4c5   :  { %v3522_v27 = vsel %vm1126_vm0, %v1944_v41, %v3521_v10  ;;  %v1958_v56 = vadd.f32 %v1957_v42, %v1956_v20  ;;  %v3453_v17 = vsel %vm3452_vm15, %v6548_v32, %v3449_v62 }
 0x4c6   :  { %v3458_v52 = vsel %vm3455_vm5, %v3457_v6, %v3453_v17 }
 0x4c7   :  { %v3495_v49 = vsub.f32 1.0, %v3458_v52 }
 0x4cb   :  { %v1810_v8 = vpop.permute.xlu1 %1809 }
 0x4cc   :  { %v1835_v46 = vmul.f32 %v4164_v31, %v1810_v8 }
 0x4ce   :  { %v1851_v1 = vmul.f32 %v6800_v43, %v1835_v46  ;;  %v4165_v43 = vld [vmem:[%s6595_s1 + $0x78] sm:$0xff]  ;;  %v1965_v46 = vadd.f32 %v1964_v7, %v1963_v21  ;;  %s4276_s1 = smov [#allocation7]  }
 0x4cf   :  { %s3577_s4 = sshll.u32 %s4276_s1, 4  ;;  %s3578_s4 = int_to_ptr.vmem [resolvable:$true] %s3577_s4 }
 0x4d0   :  { %v1945_v39 = vsel %vm594_vm2, %v1851_v1, 0.0 }
 0x4d1   :  { %v1946_v0 = vrot.slane %v1945_v39, 4 }
 0x4d3   :  { %v1947_v57 = vadd.f32 %v1946_v0, %v1945_v39  ;;  %v2949_v51 = vpop.permute.xlu1 %2948 }
 0x4d4   :  { %v2966_v48 = vmul.f32 %v4165_v43, %v2949_v51 }
 0x4d5   :  { %v1948_v2 = vrot.slane %v1947_v57, 2 }
 0x4d6   :  { %v2982_v63 = vmul.f32 %v6803_v38, %v2966_v48 }
 0x4d7   :  { %v1949_v37 = vadd.f32 %v1948_v2, %v1947_v57 }
 0x4d8   :  { %v3088_v28 = vsel %vm594_vm2, %v2982_v63, 0.0 }
 0x4d9   :  { %v1950_v34 = vrot.slane %v1949_v37, 1  ;;  %v3089_v22 = vrot.slane %v3088_v28, 4 }
 0x4db   :  { %v1951_v38 = vadd.f32 %v1950_v34, %v1949_v37  ;;  %v3090_v44 = vadd.f32 %v3089_v22, %v3088_v28 }
 0x4dd   :  { %v3091_v26 = vrot.slane %v3090_v44, 2  ;;  %v3523_v30 = vsel %vm1129_vm1, %v1951_v38, %v3522_v27 }
 0x4de   :  { %v3524_v31 = vsel %vm1132_vm3, %v1958_v56, %v3523_v30 }
 0x4df   :  { %v3092_v8 = vadd.f32 %v3091_v26, %v3090_v44  ;;  %v3525_v50 = vsel %vm1135_vm4, %v1965_v46, %v3524_v31 }
 0x4e0   :  { %v3529_v32 = vmul.f32 %v3525_v50, %v3495_v49 }
 0x4e1   :  { %v3093_v13 = vrot.slane %v3092_v8, 1 }
 0x4e3   :  { %v3094_v60 = vadd.f32 %v3093_v13, %v3092_v8 }
 0x4e5   :  { %v3489_v9 = vsel %vm1135_vm4, %v3094_v60, %v3488_v53  ;;  %vm3570_vm4 = vcmask 257024  }
 0x4e6   :  { %v3493_v1 = vmul.f32 %v3489_v9, %v3458_v52 }
 0x4e8   :  { %v3531_v58 = vadd.f32 %v3529_v32, %v3493_v1 }
 0x4ea   :  { %v3533_v33 = vmul.f32 %v3531_v58, %v3531_v58 }
 0x4ec   :  { %v3537_v40 = vsel %vm594_vm2, %v3533_v33, 0.0 }
 0x4ed   :  { %3538 = vadd.xlane.f32.xlu0 %v3537_v40 }
 0x52d   :  { %v3536_v39 = vpop.xlane.xlu2 %3535 }
 0x52e   :  { %v3540_v5 = vmax.f32 %v3536_v39, 1e-24 }
 0x530   :  { %4122 = vrsqrt.f32 %v3540_v5  ;;  %vm3548_vm1 = vweird.f32 %v3540_v5 }
 0x536   :  { %v4123_v61 = vpop.eup %4122 }
 0x537   :  { %v3543_v55 = vmul.f32 %v4123_v61, %v3540_v5  ;;  %vm3549_vm0 = vweird.f32 %v4123_v61 }
 0x538   :  { %vm3550_vm3 = vmor %vm3548_vm1, %vm3549_vm0 }
 0x539   :  { %v3544_v0 = vmul.f32 %v4123_v61, %v3543_v55 }
 0x53b   :  { %v3545_v14 = vmul.f32 0.5, %v3544_v0 }
 0x53d   :  { %v3546_v15 = vsub.f32 1.5, %v3545_v14 }
 0x53f   :  { %v3547_v18 = vmul.f32 %v4123_v61, %v3546_v15 }
 0x541   :  { %v3551_v11 = vsel %vm3550_vm3, %v4123_v61, %v3547_v18 }
 0x542   :  { %v3562_v47 = vmul.f32 16.0, %v3551_v11 }
 0x544   :  { %v3564_v57 = vmul.f32 %v3562_v47, %v6507_v36 }
 0x546   :  { %3566 = vst.msk [vmem:[#allocation7] sm:$0xff] %vm594_vm2, %v3564_v57  ;;  %v3568_v51 = vpack.c.bf16 %v3564_v57, %v3564_v57 }
 0x548   :  { %3571 = vst.msk [vmem:[#allocation8] sm:$0xf] %vm3570_vm4, %v3568_v51 }
 0x560   :  { %v3539_v59 = vpop.xlane.xlu0 %3538 }
 0x561   :  { %v3541_v16 = vmax.f32 %v3539_v59, 1e-24 }
 0x563   :  { %4124 = vrsqrt.f32 %v3541_v16  ;;  %vm3558_vm7 = vweird.f32 %v3541_v16 }
 0x569   :  { %v4125_v43 = vpop.eup %4124 }
 0x56a   :  { %v3553_v48 = vmul.f32 %v4125_v43, %v3541_v16  ;;  %vm3559_vm6 = vweird.f32 %v4125_v43 }
 0x56b   :  { %vm3560_vm8 = vmor %vm3558_vm7, %vm3559_vm6 }
 0x56c   :  { %v3554_v25 = vmul.f32 %v4125_v43, %v3553_v48 }
 0x56e   :  { %v3555_v54 = vmul.f32 0.5, %v3554_v25 }
 0x570   :  { %v3556_v45 = vsub.f32 1.5, %v3555_v54 }
 0x572   :  { %v3557_v2 = vmul.f32 %v4125_v43, %v3556_v45 }
 0x574   :  { %v3561_v29 = vsel %vm3560_vm8, %v4125_v43, %v3557_v2 }
 0x575   :  { %v3563_v36 = vmul.f32 16.0, %v3561_v29 }
 0x577   :  { %v3565_v20 = vmul.f32 %v3563_v36, %v3531_v58 }
 0x579   :  { %v3569_v63 = vpack.c.bf16 %v3565_v20, %v3565_v20  ;;  %3567 = vst.msk [vmem:[#allocation7 + $0x8] sm:$0xff] %vm594_vm2, %v3565_v20 }
 0x57a   :  { %3585 = dma.vmem_to_hbm [thread:$0]  %s3578_s4, 256, %s3580_s18, [#allocation4], %s4271_s13, %s4271_s13, %s4272_s14  }
 0x57b   :  { %3572 = vst.msk [vmem:[#allocation8 + $0x4] sm:$0xf] %vm3570_vm4, %v3569_v63 }
 0x57c   :  { %3598 = dma.vmem_to_hbm [thread:$0]  %s3591_s19, 128, %s3593_s3, [#allocation9], %s4278_s7, %s4278_s7, %s4279_s22  }
 0x57d   :  { %4266 = dma.done.wait [#allocation4], 256  }
 0x57e   :  { %4267 = vsyncadd [#allocation4], 4294967040 }
 0x57f   :  { %4268 = dma.done.wait [#allocation9], 128  }
 0x580   :  { %4269 = vsyncadd [#allocation9], 4294967168 }
 0x581   :  { %3607 = vsyncpa [#allocation3], 1 }
 0x582   :  { %3608 = vsyncpa [#allocation6], 1 }
 0x583   :  { %3609 = vsyncpa [#allocation4], 1 }
 0x584   :  { %3610 = vsyncpa [#allocation9], 1 }

</bundles_post_ra>
